<compile_context>
chip_gen: v7x
topology: tpu7x:2x2x1
jax: 0.10.0
libtpu: 0.0.40
codegen_flags: <defaults>
</compile_context>

<pallas_src>
import math
import numpy as np
import jax
import jax.numpy as jnp
from jax.experimental import pallas as pl
from jax.experimental.pallas import tpu as pltpu


# ----------------------------------------------------------------------------
# fibonacci sphere grid (host-side, same formula as the PyTorch module)
# ----------------------------------------------------------------------------
def fibonacci_sphere_np(samples, r=1.0):
    phi = math.pi * (3.0 - math.sqrt(5.0))
    pts = []
    for i in range(samples):
        y = 1 - i / float(samples - 1) * 2 * r
        radius = math.sqrt(max(1.0 - y * y, 0.0))
        theta = phi * i
        pts.append((math.cos(theta) * radius, y, math.sin(theta) * radius))
    return np.asarray(pts, dtype=np.float32)  # (samples, 3)


def _leaky(v):  # nn.LeakyReLU default negative_slope = 0.01
    return jnp.where(v > 0, v, 0.01 * v)


def _fma_small_k(x, w):
    """x:(TN, >=K) f32, w:(K, H) f32 with K tiny (=3).

    Computed as K broadcast-FMAs on the VPU instead of a degenerate K=3 MXU
    matmul (which would pay full systolic fill/drain at ~2% utilization).
    """
    K = w.shape[0]
    acc = x[:, 0:1] * w[0:1, :]
    for k in range(1, K):
        acc = acc + x[:, k:k + 1] * w[k:k + 1, :]
    return acc


# ----------------------------------------------------------------------------
# Pallas kernel: one (point-tile, batch) block -> both folds fused
# ----------------------------------------------------------------------------
def _folding_kernel(c_ref, grid_ref, whh_ref, wout_ref, wk3_ref, bh_ref, bout_ref,
                    out_ref, p1_ref):
    g = grid_ref[...]                       # (TN, 3) f32 sphere points
    c = c_ref[0]                            # (2, H)  f32 rows: (c1, c2) per batch
    bh = bh_ref[...]                        # (4, H)  f32 hidden-layer biases
    bout = bout_ref[...]                    # (2, 8)  f32 output biases (zero-padded)

    def mm(a, w):                           # bf16 MXU matmul, f32 accumulation
        return jnp.dot(a.astype(jnp.bfloat16), w,
                       preferred_element_type=jnp.float32)

    # ---------------- fold1 ----------------
    # conv1: feat-part precomputed as c[0]; grid-part done as VPU FMAs.
    h = _leaky(_fma_small_k(g, wk3_ref[0]) + c[0:1, :])
    h = _leaky(mm(h, whh_ref[0]) + bh[0:1, :])                   # conv2
    new_code = _leaky(mm(h, whh_ref[1]) + bh[1:2, :])            # conv3
    p1 = mm(new_code, wout_ref[0]) + bout[0:1, :]                # conv4 -> (TN, 8), cols 3..7 = 0
    p1_ref[0] = p1.T[0:3, :]                                     # lane-dense (3, TN) store

    # ---------------- fold2 ----------------
    # conv1 input = concat(code, new_code, p1, grid): split matmuls / FMAs,
    # feat-part precomputed as c[1].
    z = (mm(new_code, whh_ref[2]) + _fma_small_k(p1, wk3_ref[1])
         + _fma_small_k(g, wk3_ref[2]) + c[1:2, :])
    z = _leaky(z)
    z = _leaky(mm(z, whh_ref[3]) + bh[2:3, :])                   # conv2
    z = _leaky(mm(z, whh_ref[4]) + bh[3:4, :])                   # conv3
    out = mm(z, wout_ref[1]) + bout[1:2, :]                      # conv4 -> (TN, 8)
    out_ref[0] = out.T[0:3, :]                                   # lane-dense (3, TN) store


# ----------------------------------------------------------------------------
# wrapper
# ----------------------------------------------------------------------------
def folding_net_dec_3d_sphere(feat, params, *, samples, r=1.0, tile_n=None):
    """feat: (B, F) float32.  Returns (out, p1, grid) each (B, samples, 3)."""
    B, F = feat.shape
    H = params["f1_w2"].shape[0]
    assert samples % 128 == 0, "samples must be a multiple of 128 for tiling"
    if tile_n is None:  # largest clean tile up to 1024 to amortize per-step overhead
        tile_n = next(t for t in (1024, 512, 256, 128) if samples % t == 0)
    assert samples % tile_n == 0
    n_tiles = samples // tile_n

    # sphere grid passed ONCE as (samples, 3); batch broadcast stays lazy.
    grid_pts = jnp.asarray(fibonacci_sphere_np(samples, r))        # (N, 3)

    # per-batch constant rows of each fold's first conv (tiny matmuls, hoisted)
    c1 = feat @ params["f1_wf"] + params["f1_b1"]                  # (B, H)
    c2 = feat @ params["f2_wf"] + params["f2_b1"]                  # (B, H)
    c12 = jnp.stack([c1, c2], axis=1)                              # (B, 2, H) f32

    # --- pack constant weights/biases into a few operands ---
    bf16 = jnp.bfloat16
    whh = jnp.stack([params["f1_w2"], params["f1_w3"], params["f2_wc"],
                     params["f2_w2"], params["f2_w3"]]).astype(bf16)        # (5, H, H)
    pad8w = lambda w: jnp.pad(w, ((0, 0), (0, 8 - w.shape[1])))
    wout = jnp.stack([pad8w(params["f1_w4"]),
                      pad8w(params["f2_w4"])]).astype(bf16)                  # (2, H, 8)
    wk3 = jnp.stack([params["f1_wg"], params["f2_wp"], params["f2_wg"]])     # (3, 3, H) f32
    bh = jnp.concatenate([params["f1_b2"], params["f1_b3"],
                          params["f2_b2"], params["f2_b3"]], axis=0)         # (4, H) f32
    pad8b = lambda b: jnp.pad(b, ((0, 0), (0, 8 - b.shape[1])))
    bout = jnp.concatenate([pad8b(params["f1_b4"]),
                            pad8b(params["f2_b4"])], axis=0)                 # (2, 8) f32

    const3 = lambda n, b: (0, 0, 0)
    const2 = lambda n, b: (0, 0)

    out_t, p1_t = pl.pallas_call(
        _folding_kernel,
        out_shape=(jax.ShapeDtypeStruct((B, 3, samples), jnp.float32),
                   jax.ShapeDtypeStruct((B, 3, samples), jnp.float32)),
        grid=(n_tiles, B),
        in_specs=[
            pl.BlockSpec((1, 2, H), lambda n, b: (b, 0, 0)),       # c12 (per batch)
            pl.BlockSpec((tile_n, 3), lambda n, b: (n, 0)),        # sphere grid tile
            pl.BlockSpec((5, H, H), const3),                       # H x H weights (bf16)
            pl.BlockSpec((2, H, 8), const3),                       # output weights (bf16, padded)
            pl.BlockSpec((3, 3, H), const3),                       # K=3 weights (f32, VPU)
            pl.BlockSpec((4, H), const2),                          # hidden biases
            pl.BlockSpec((2, 8), const2),                          # output biases (padded)
        ],
        out_specs=(pl.BlockSpec((1, 3, tile_n), lambda n, b: (b, 0, n)),
                   pl.BlockSpec((1, 3, tile_n), lambda n, b: (b, 0, n))),
        compiler_params=pltpu.CompilerParams(
            dimension_semantics=("parallel", "parallel")),
    )(c12, grid_pts, whh, wout, wk3, bh, bout)

    # layout plumbing back to the module's (B, samples, 3) convention
    out = jnp.transpose(out_t, (0, 2, 1))
    p1 = jnp.transpose(p1_t, (0, 2, 1))
    grid_full = jnp.broadcast_to(grid_pts[None], (B, samples, 3))
    return out, p1, grid_full


# ----------------------------------------------------------------------------
# deterministic parameter init (shapes match the PyTorch module's __init__;
# weights are stored pre-transposed as (in_features, out_features))
# ----------------------------------------------------------------------------
def make_params(key, input_features, hidden_size):
    F, H = input_features, hidden_size
    scale = 0.05
    shapes = {
        # fold1 : Conv1d(F+3, H, 1) split into (F,H) + (3,H), then HxH, HxH, Hx3
        "f1_wf": (F, H), "f1_wg": (3, H), "f1_b1": (1, H),
        "f1_w2": (H, H), "f1_b2": (1, H),
        "f1_w3": (H, H), "f1_b3": (1, H),
        "f1_w4": (H, 3), "f1_b4": (1, 3),
        # fold2 : Conv1d(F+H+6, H, 1) split into (F,H)+(H,H)+(3,H)+(3,H)
        "f2_wf": (F, H), "f2_wc": (H, H), "f2_wp": (3, H), "f2_wg": (3, H),
        "f2_b1": (1, H),
        "f2_w2": (H, H), "f2_b2": (1, H),
        "f2_w3": (H, H), "f2_b3": (1, H),
        "f2_w4": (H, 3), "f2_b4": (1, 3),
    }
    params = {}
    keys = jax.random.split(key, len(shapes))
    for k, (name, shp) in zip(keys, sorted(shapes.items())):
        params[name] = scale * jax.random.normal(k, shp, dtype=jnp.float32)
    return params


# ----------------------------------------------------------------------------
# pure-JAX reference (mirrors the PyTorch forward exactly) for verification
# ----------------------------------------------------------------------------
def reference(feat, params, *, samples, r=1.0):
    B, F = feat.shape
    grid_np = fibonacci_sphere_np(samples, r)
    g = jnp.broadcast_to(jnp.asarray(grid_np)[None], (B, samples, 3))
    code = jnp.broadcast_to(feat[:, None, :], (B, samples, F))

    dot = lambda a, b: jnp.dot(a, b, preferred_element_type=jnp.float32)

    # fold1
    h = _leaky(dot(code, params["f1_wf"]) + dot(g, params["f1_wg"]) + params["f1_b1"])
    h = _leaky(dot(h, params["f1_w2"]) + params["f1_b2"])
    new_code = _leaky(dot(h, params["f1_w3"]) + params["f1_b3"])
    p1 = dot(new_code, params["f1_w4"]) + params["f1_b4"]
    # fold2
    z = (dot(code, params["f2_wf"]) + dot(new_code, params["f2_wc"])
         + dot(p1, params["f2_wp"]) + dot(g, params["f2_wg"]) + params["f2_b1"])
    z = _leaky(z)
    z = _leaky(dot(z, params["f2_w2"]) + params["f2_b2"])
    z = _leaky(dot(z, params["f2_w3"]) + params["f2_b3"])
    out = dot(z, params["f2_w4"]) + params["f2_b4"]
    return out, p1, g


if __name__ == "__main__":
    # small shapes consistent with the module's forward
    B, F, H, SAMPLES, R = 2, 32, 128, 256, 1.0

    key = jax.random.PRNGKey(0)
    k_feat, k_par = jax.random.split(key)
    feat = jax.random.normal(k_feat, (B, F), dtype=jnp.float32)
    params = make_params(k_par, F, H)

    out, p1, grid = folding_net_dec_3d_sphere(feat, params, samples=SAMPLES, r=R)
    jax.block_until_ready((out, p1, grid))

    # verify against the plain-JAX reference of the PyTorch forward
    out_ref, p1_ref, grid_ref = reference(feat, params, samples=SAMPLES, r=R)
    np.testing.assert_allclose(np.asarray(out), np.asarray(out_ref),
                               rtol=1e-2, atol=1e-2)
    np.testing.assert_allclose(np.asarray(p1), np.asarray(p1_ref),
                               rtol=1e-2, atol=1e-2)
    np.testing.assert_allclose(np.asarray(grid), np.asarray(grid_ref),
                               rtol=1e-6, atol=1e-6)

    assert out.shape == (B, SAMPLES, 3) and p1.shape == (B, SAMPLES, 3) \
        and grid.shape == (B, SAMPLES, 3)
    print("KERNEL_OK")
</pallas_src>

<mosaic_0001>
module attributes {stable_mosaic.version = 11 : i64} {
  func.func @_folding_kernel(%arg0: i32, %arg1: i32, %arg2: memref<1x2x128xf32, #tpu.memory_space<vmem>>, %arg3: memref<256x3xf32, #tpu.memory_space<vmem>>, %arg4: memref<5x128x128xbf16, #tpu.memory_space<vmem>>, %arg5: memref<2x128x8xbf16, #tpu.memory_space<vmem>>, %arg6: memref<3x3x128xf32, #tpu.memory_space<vmem>>, %arg7: memref<4x128xf32, #tpu.memory_space<vmem>>, %arg8: memref<2x8xf32, #tpu.memory_space<vmem>>, %arg9: memref<1x3x256xf32, #tpu.memory_space<vmem>>, %arg10: memref<1x3x256xf32, #tpu.memory_space<vmem>>) attributes {dimension_semantics = [#tpu.dimension_semantics<parallel>, #tpu.dimension_semantics<parallel>], iteration_bounds = array<i64: 1, 2>, scalar_prefetch = 0 : i64, scratch_operands = 0 : i64, tpu.core_type = #tpu.core_type<tc>, window_params = [{transform_indices = @transform_0, window_bounds = array<i64: 1, 2, 128>}, {transform_indices = @transform_1, window_bounds = array<i64: 256, 3>}, {pipeline_mode = #tpu.pipeline_mode<synchronous>, transform_indices = @transform_2, window_bounds = array<i64: 5, 128, 128>}, {pipeline_mode = #tpu.pipeline_mode<synchronous>, transform_indices = @transform_3, window_bounds = array<i64: 2, 128, 8>}, {pipeline_mode = #tpu.pipeline_mode<synchronous>, transform_indices = @transform_4, window_bounds = array<i64: 3, 3, 128>}, {pipeline_mode = #tpu.pipeline_mode<synchronous>, transform_indices = @transform_5, window_bounds = array<i64: 4, 128>}, {pipeline_mode = #tpu.pipeline_mode<synchronous>, transform_indices = @transform_6, window_bounds = array<i64: 2, 8>}, {transform_indices = @transform_7, window_bounds = array<i64: 1, 3, 256>}, {transform_indices = @transform_8, window_bounds = array<i64: 1, 3, 256>}]} {
    %c0 = arith.constant 0 : index
    %c0_0 = arith.constant 0 : index
    %0 = vector.load %arg3[%c0, %c0_0] : memref<256x3xf32, #tpu.memory_space<vmem>>, vector<256x3xf32>
    %c0_1 = arith.constant 0 : index
    %c0_2 = arith.constant 0 : index
    %c0_3 = arith.constant 0 : index
    %1 = vector.load %arg2[%c0_1, %c0_2, %c0_3] : memref<1x2x128xf32, #tpu.memory_space<vmem>>, vector<1x2x128xf32>
    %2 = vector.shape_cast %1 : vector<1x2x128xf32> to vector<2x128xf32>
    %c0_4 = arith.constant 0 : index
    %c0_5 = arith.constant 0 : index
    %3 = vector.load %arg7[%c0_4, %c0_5] : memref<4x128xf32, #tpu.memory_space<vmem>>, vector<4x128xf32>
    %c0_6 = arith.constant 0 : index
    %c0_7 = arith.constant 0 : index
    %4 = vector.load %arg8[%c0_6, %c0_7] : memref<2x8xf32, #tpu.memory_space<vmem>>, vector<2x8xf32>
    %c0_8 = arith.constant 0 : index
    %c0_9 = arith.constant 0 : index
    %c0_10 = arith.constant 0 : index
    %5 = vector.load %arg6[%c0_8, %c0_9, %c0_10] : memref<3x3x128xf32, #tpu.memory_space<vmem>>, vector<1x3x128xf32>
    %6 = vector.shape_cast %5 : vector<1x3x128xf32> to vector<3x128xf32>
    %7 = vector.extract_strided_slice %0 {offsets = [0, 0], sizes = [256, 1], strides = [1, 1]} : vector<256x3xf32> to vector<256x1xf32>
    %8 = vector.extract_strided_slice %6 {offsets = [0, 0], sizes = [1, 128], strides = [1, 1]} : vector<3x128xf32> to vector<1x128xf32>
    %9 = vector.broadcast %7 : vector<256x1xf32> to vector<256x128xf32>
    %10 = vector.broadcast %8 : vector<1x128xf32> to vector<256x128xf32>
    %11 = arith.mulf %9, %10 : vector<256x128xf32>
    %12 = vector.extract_strided_slice %0 {offsets = [0, 1], sizes = [256, 1], strides = [1, 1]} : vector<256x3xf32> to vector<256x1xf32>
    %13 = vector.extract_strided_slice %6 {offsets = [1, 0], sizes = [1, 128], strides = [1, 1]} : vector<3x128xf32> to vector<1x128xf32>
    %14 = vector.broadcast %12 : vector<256x1xf32> to vector<256x128xf32>
    %15 = vector.broadcast %13 : vector<1x128xf32> to vector<256x128xf32>
    %16 = arith.mulf %14, %15 : vector<256x128xf32>
    %17 = arith.addf %11, %16 : vector<256x128xf32>
    %18 = vector.extract_strided_slice %0 {offsets = [0, 2], sizes = [256, 1], strides = [1, 1]} : vector<256x3xf32> to vector<256x1xf32>
    %19 = vector.extract_strided_slice %6 {offsets = [2, 0], sizes = [1, 128], strides = [1, 1]} : vector<3x128xf32> to vector<1x128xf32>
    %20 = vector.broadcast %18 : vector<256x1xf32> to vector<256x128xf32>
    %21 = vector.broadcast %19 : vector<1x128xf32> to vector<256x128xf32>
    %22 = arith.mulf %20, %21 : vector<256x128xf32>
    %23 = arith.addf %17, %22 : vector<256x128xf32>
    %24 = vector.extract_strided_slice %2 {offsets = [0, 0], sizes = [1, 128], strides = [1, 1]} : vector<2x128xf32> to vector<1x128xf32>
    %25 = vector.broadcast %24 : vector<1x128xf32> to vector<256x128xf32>
    %26 = arith.addf %23, %25 : vector<256x128xf32>
    %cst = arith.constant 0.000000e+00 : f32
    %27 = vector.broadcast %cst : f32 to vector<256x128xf32>
    %28 = arith.cmpf ogt, %26, %27 : vector<256x128xf32>
    %cst_11 = arith.constant 0.00999999977 : f32
    %29 = vector.broadcast %cst_11 : f32 to vector<256x128xf32>
    %30 = arith.mulf %29, %26 : vector<256x128xf32>
    %31 = arith.select %28, %26, %30 : vector<256x128xi1>, vector<256x128xf32>
    %c0_12 = arith.constant 0 : index
    %c0_13 = arith.constant 0 : index
    %c0_14 = arith.constant 0 : index
    %32 = vector.load %arg4[%c0_12, %c0_13, %c0_14] : memref<5x128x128xbf16, #tpu.memory_space<vmem>>, vector<1x128x128xbf16>
    %33 = vector.shape_cast %32 : vector<1x128x128xbf16> to vector<128x128xbf16>
    %34 = arith.truncf %31 : vector<256x128xf32> to vector<256x128xbf16>
    %cst_15 = arith.constant dense<0.000000e+00> : vector<256x128xf32>
    %35 = tpu.matmul %34, %33, %cst_15 {dimension_numbers = #tpu.dot_dimension_numbers<[1], [0], [0], [1], [0, 0, 1, 1], [], []>} : vector<256x128xbf16>, vector<128x128xbf16>, vector<256x128xf32> -> vector<256x128xf32>
    %36 = vector.extract_strided_slice %3 {offsets = [0, 0], sizes = [1, 128], strides = [1, 1]} : vector<4x128xf32> to vector<1x128xf32>
    %37 = vector.broadcast %36 : vector<1x128xf32> to vector<256x128xf32>
    %38 = arith.addf %35, %37 : vector<256x128xf32>
    %cst_16 = arith.constant 0.000000e+00 : f32
    %39 = vector.broadcast %cst_16 : f32 to vector<256x128xf32>
    %40 = arith.cmpf ogt, %38, %39 : vector<256x128xf32>
    %cst_17 = arith.constant 0.00999999977 : f32
    %41 = vector.broadcast %cst_17 : f32 to vector<256x128xf32>
    %42 = arith.mulf %41, %38 : vector<256x128xf32>
    %43 = arith.select %40, %38, %42 : vector<256x128xi1>, vector<256x128xf32>
    %c1 = arith.constant 1 : index
    %c0_18 = arith.constant 0 : index
    %c0_19 = arith.constant 0 : index
    %44 = vector.load %arg4[%c1, %c0_18, %c0_19] : memref<5x128x128xbf16, #tpu.memory_space<vmem>>, vector<1x128x128xbf16>
    %45 = vector.shape_cast %44 : vector<1x128x128xbf16> to vector<128x128xbf16>
    %46 = arith.truncf %43 : vector<256x128xf32> to vector<256x128xbf16>
    %cst_20 = arith.constant dense<0.000000e+00> : vector<256x128xf32>
    %47 = tpu.matmul %46, %45, %cst_20 {dimension_numbers = #tpu.dot_dimension_numbers<[1], [0], [0], [1], [0, 0, 1, 1], [], []>} : vector<256x128xbf16>, vector<128x128xbf16>, vector<256x128xf32> -> vector<256x128xf32>
    %48 = vector.extract_strided_slice %3 {offsets = [1, 0], sizes = [1, 128], strides = [1, 1]} : vector<4x128xf32> to vector<1x128xf32>
    %49 = vector.broadcast %48 : vector<1x128xf32> to vector<256x128xf32>
    %50 = arith.addf %47, %49 : vector<256x128xf32>
    %cst_21 = arith.constant 0.000000e+00 : f32
    %51 = vector.broadcast %cst_21 : f32 to vector<256x128xf32>
    %52 = arith.cmpf ogt, %50, %51 : vector<256x128xf32>
    %cst_22 = arith.constant 0.00999999977 : f32
    %53 = vector.broadcast %cst_22 : f32 to vector<256x128xf32>
    %54 = arith.mulf %53, %50 : vector<256x128xf32>
    %55 = arith.select %52, %50, %54 : vector<256x128xi1>, vector<256x128xf32>
    %c0_23 = arith.constant 0 : index
    %c0_24 = arith.constant 0 : index
    %c0_25 = arith.constant 0 : index
    %56 = vector.load %arg5[%c0_23, %c0_24, %c0_25] : memref<2x128x8xbf16, #tpu.memory_space<vmem>>, vector<1x128x8xbf16>
    %57 = vector.shape_cast %56 : vector<1x128x8xbf16> to vector<128x8xbf16>
    %58 = arith.truncf %55 : vector<256x128xf32> to vector<256x128xbf16>
    %cst_26 = arith.constant dense<0.000000e+00> : vector<256x8xf32>
    %59 = tpu.matmul %58, %57, %cst_26 {dimension_numbers = #tpu.dot_dimension_numbers<[1], [0], [0], [1], [0, 0, 1, 1], [], []>} : vector<256x128xbf16>, vector<128x8xbf16>, vector<256x8xf32> -> vector<256x8xf32>
    %60 = vector.extract_strided_slice %4 {offsets = [0, 0], sizes = [1, 8], strides = [1, 1]} : vector<2x8xf32> to vector<1x8xf32>
    %61 = vector.broadcast %60 : vector<1x8xf32> to vector<256x8xf32>
    %62 = arith.addf %59, %61 : vector<256x8xf32>
    %63 = tpu.transpose %62, [1, 0] : vector<256x8xf32> -> vector<8x256xf32>
    %64 = vector.extract_strided_slice %63 {offsets = [0, 0], sizes = [3, 256], strides = [1, 1]} : vector<8x256xf32> to vector<3x256xf32>
    %c0_27 = arith.constant 0 : index
    %c0_28 = arith.constant 0 : index
    %c0_29 = arith.constant 0 : index
    %65 = vector.load %arg10[%c0_27, %c0_28, %c0_29] : memref<1x3x256xf32, #tpu.memory_space<vmem>>, vector<1x3x256xf32>
    %66 = vector.shape_cast %65 : vector<1x3x256xf32> to vector<3x256xf32>
    %67 = vector.shape_cast %64 : vector<3x256xf32> to vector<1x3x256xf32>
    tpu.vector_store %arg10[%c0_27, %c0_28, %c0_29], %67 {strides = array<i32>} : memref<1x3x256xf32, #tpu.memory_space<vmem>>, vector<1x3x256xf32>,
    %c2 = arith.constant 2 : index
    %c0_30 = arith.constant 0 : index
    %c0_31 = arith.constant 0 : index
    %68 = vector.load %arg4[%c2, %c0_30, %c0_31] : memref<5x128x128xbf16, #tpu.memory_space<vmem>>, vector<1x128x128xbf16>
    %69 = vector.shape_cast %68 : vector<1x128x128xbf16> to vector<128x128xbf16>
    %70 = arith.truncf %55 : vector<256x128xf32> to vector<256x128xbf16>
    %cst_32 = arith.constant dense<0.000000e+00> : vector<256x128xf32>
    %71 = tpu.matmul %70, %69, %cst_32 {dimension_numbers = #tpu.dot_dimension_numbers<[1], [0], [0], [1], [0, 0, 1, 1], [], []>} : vector<256x128xbf16>, vector<128x128xbf16>, vector<256x128xf32> -> vector<256x128xf32>
    %c1_33 = arith.constant 1 : index
    %c0_34 = arith.constant 0 : index
    %c0_35 = arith.constant 0 : index
    %72 = vector.load %arg6[%c1_33, %c0_34, %c0_35] : memref<3x3x128xf32, #tpu.memory_space<vmem>>, vector<1x3x128xf32>
    %73 = vector.shape_cast %72 : vector<1x3x128xf32> to vector<3x128xf32>
    %74 = vector.extract_strided_slice %62 {offsets = [0, 0], sizes = [256, 1], strides = [1, 1]} : vector<256x8xf32> to vector<256x1xf32>
    %75 = vector.extract_strided_slice %73 {offsets = [0, 0], sizes = [1, 128], strides = [1, 1]} : vector<3x128xf32> to vector<1x128xf32>
    %76 = vector.broadcast %74 : vector<256x1xf32> to vector<256x128xf32>
    %77 = vector.broadcast %75 : vector<1x128xf32> to vector<256x128xf32>
    %78 = arith.mulf %76, %77 : vector<256x128xf32>
    %79 = vector.extract_strided_slice %62 {offsets = [0, 1], sizes = [256, 1], strides = [1, 1]} : vector<256x8xf32> to vector<256x1xf32>
    %80 = vector.extract_strided_slice %73 {offsets = [1, 0], sizes = [1, 128], strides = [1, 1]} : vector<3x128xf32> to vector<1x128xf32>
    %81 = vector.broadcast %79 : vector<256x1xf32> to vector<256x128xf32>
    %82 = vector.broadcast %80 : vector<1x128xf32> to vector<256x128xf32>
    %83 = arith.mulf %81, %82 : vector<256x128xf32>
    %84 = arith.addf %78, %83 : vector<256x128xf32>
    %85 = vector.extract_strided_slice %62 {offsets = [0, 2], sizes = [256, 1], strides = [1, 1]} : vector<256x8xf32> to vector<256x1xf32>
    %86 = vector.extract_strided_slice %73 {offsets = [2, 0], sizes = [1, 128], strides = [1, 1]} : vector<3x128xf32> to vector<1x128xf32>
    %87 = vector.broadcast %85 : vector<256x1xf32> to vector<256x128xf32>
    %88 = vector.broadcast %86 : vector<1x128xf32> to vector<256x128xf32>
    %89 = arith.mulf %87, %88 : vector<256x128xf32>
    %90 = arith.addf %84, %89 : vector<256x128xf32>
    %91 = arith.addf %71, %90 : vector<256x128xf32>
    %c2_36 = arith.constant 2 : index
    %c0_37 = arith.constant 0 : index
    %c0_38 = arith.constant 0 : index
    %92 = vector.load %arg6[%c2_36, %c0_37, %c0_38] : memref<3x3x128xf32, #tpu.memory_space<vmem>>, vector<1x3x128xf32>
    %93 = vector.shape_cast %92 : vector<1x3x128xf32> to vector<3x128xf32>
    %94 = vector.extract_strided_slice %0 {offsets = [0, 0], sizes = [256, 1], strides = [1, 1]} : vector<256x3xf32> to vector<256x1xf32>
    %95 = vector.extract_strided_slice %93 {offsets = [0, 0], sizes = [1, 128], strides = [1, 1]} : vector<3x128xf32> to vector<1x128xf32>
    %96 = vector.broadcast %94 : vector<256x1xf32> to vector<256x128xf32>
    %97 = vector.broadcast %95 : vector<1x128xf32> to vector<256x128xf32>
    %98 = arith.mulf %96, %97 : vector<256x128xf32>
    %99 = vector.extract_strided_slice %0 {offsets = [0, 1], sizes = [256, 1], strides = [1, 1]} : vector<256x3xf32> to vector<256x1xf32>
    %100 = vector.extract_strided_slice %93 {offsets = [1, 0], sizes = [1, 128], strides = [1, 1]} : vector<3x128xf32> to vector<1x128xf32>
    %101 = vector.broadcast %99 : vector<256x1xf32> to vector<256x128xf32>
    %102 = vector.broadcast %100 : vector<1x128xf32> to vector<256x128xf32>
    %103 = arith.mulf %101, %102 : vector<256x128xf32>
    %104 = arith.addf %98, %103 : vector<256x128xf32>
    %105 = vector.extract_strided_slice %0 {offsets = [0, 2], sizes = [256, 1], strides = [1, 1]} : vector<256x3xf32> to vector<256x1xf32>
    %106 = vector.extract_strided_slice %93 {offsets = [2, 0], sizes = [1, 128], strides = [1, 1]} : vector<3x128xf32> to vector<1x128xf32>
    %107 = vector.broadcast %105 : vector<256x1xf32> to vector<256x128xf32>
    %108 = vector.broadcast %106 : vector<1x128xf32> to vector<256x128xf32>
    %109 = arith.mulf %107, %108 : vector<256x128xf32>
    %110 = arith.addf %104, %109 : vector<256x128xf32>
    %111 = arith.addf %91, %110 : vector<256x128xf32>
    %112 = vector.extract_strided_slice %2 {offsets = [1, 0], sizes = [1, 128], strides = [1, 1]} : vector<2x128xf32> to vector<1x128xf32>
    %113 = vector.broadcast %112 : vector<1x128xf32> to vector<256x128xf32>
    %114 = arith.addf %111, %113 : vector<256x128xf32>
    %cst_39 = arith.constant 0.000000e+00 : f32
    %115 = vector.broadcast %cst_39 : f32 to vector<256x128xf32>
    %116 = arith.cmpf ogt, %114, %115 : vector<256x128xf32>
    %cst_40 = arith.constant 0.00999999977 : f32
    %117 = vector.broadcast %cst_40 : f32 to vector<256x128xf32>
    %118 = arith.mulf %117, %114 : vector<256x128xf32>
    %119 = arith.select %116, %114, %118 : vector<256x128xi1>, vector<256x128xf32>
    %c3 = arith.constant 3 : index
    %c0_41 = arith.constant 0 : index
    %c0_42 = arith.constant 0 : index
    %120 = vector.load %arg4[%c3, %c0_41, %c0_42] : memref<5x128x128xbf16, #tpu.memory_space<vmem>>, vector<1x128x128xbf16>
    %121 = vector.shape_cast %120 : vector<1x128x128xbf16> to vector<128x128xbf16>
    %122 = arith.truncf %119 : vector<256x128xf32> to vector<256x128xbf16>
    %cst_43 = arith.constant dense<0.000000e+00> : vector<256x128xf32>
    %123 = tpu.matmul %122, %121, %cst_43 {dimension_numbers = #tpu.dot_dimension_numbers<[1], [0], [0], [1], [0, 0, 1, 1], [], []>} : vector<256x128xbf16>, vector<128x128xbf16>, vector<256x128xf32> -> vector<256x128xf32>
    %124 = vector.extract_strided_slice %3 {offsets = [2, 0], sizes = [1, 128], strides = [1, 1]} : vector<4x128xf32> to vector<1x128xf32>
    %125 = vector.broadcast %124 : vector<1x128xf32> to vector<256x128xf32>
    %126 = arith.addf %123, %125 : vector<256x128xf32>
    %cst_44 = arith.constant 0.000000e+00 : f32
    %127 = vector.broadcast %cst_44 : f32 to vector<256x128xf32>
    %128 = arith.cmpf ogt, %126, %127 : vector<256x128xf32>
    %cst_45 = arith.constant 0.00999999977 : f32
    %129 = vector.broadcast %cst_45 : f32 to vector<256x128xf32>
    %130 = arith.mulf %129, %126 : vector<256x128xf32>
    %131 = arith.select %128, %126, %130 : vector<256x128xi1>, vector<256x128xf32>
    %c4 = arith.constant 4 : index
    %c0_46 = arith.constant 0 : index
    %c0_47 = arith.constant 0 : index
    %132 = vector.load %arg4[%c4, %c0_46, %c0_47] : memref<5x128x128xbf16, #tpu.memory_space<vmem>>, vector<1x128x128xbf16>
    %133 = vector.shape_cast %132 : vector<1x128x128xbf16> to vector<128x128xbf16>
    %134 = arith.truncf %131 : vector<256x128xf32> to vector<256x128xbf16>
    %cst_48 = arith.constant dense<0.000000e+00> : vector<256x128xf32>
    %135 = tpu.matmul %134, %133, %cst_48 {dimension_numbers = #tpu.dot_dimension_numbers<[1], [0], [0], [1], [0, 0, 1, 1], [], []>} : vector<256x128xbf16>, vector<128x128xbf16>, vector<256x128xf32> -> vector<256x128xf32>
    %136 = vector.extract_strided_slice %3 {offsets = [3, 0], sizes = [1, 128], strides = [1, 1]} : vector<4x128xf32> to vector<1x128xf32>
    %137 = vector.broadcast %136 : vector<1x128xf32> to vector<256x128xf32>
    %138 = arith.addf %135, %137 : vector<256x128xf32>
    %cst_49 = arith.constant 0.000000e+00 : f32
    %139 = vector.broadcast %cst_49 : f32 to vector<256x128xf32>
    %140 = arith.cmpf ogt, %138, %139 : vector<256x128xf32>
    %cst_50 = arith.constant 0.00999999977 : f32
    %141 = vector.broadcast %cst_50 : f32 to vector<256x128xf32>
    %142 = arith.mulf %141, %138 : vector<256x128xf32>
    %143 = arith.select %140, %138, %142 : vector<256x128xi1>, vector<256x128xf32>
    %c1_51 = arith.constant 1 : index
    %c0_52 = arith.constant 0 : index
    %c0_53 = arith.constant 0 : index
    %144 = vector.load %arg5[%c1_51, %c0_52, %c0_53] : memref<2x128x8xbf16, #tpu.memory_space<vmem>>, vector<1x128x8xbf16>
    %145 = vector.shape_cast %144 : vector<1x128x8xbf16> to vector<128x8xbf16>
    %146 = arith.truncf %143 : vector<256x128xf32> to vector<256x128xbf16>
    %cst_54 = arith.constant dense<0.000000e+00> : vector<256x8xf32>
    %147 = tpu.matmul %146, %145, %cst_54 {dimension_numbers = #tpu.dot_dimension_numbers<[1], [0], [0], [1], [0, 0, 1, 1], [], []>} : vector<256x128xbf16>, vector<128x8xbf16>, vector<256x8xf32> -> vector<256x8xf32>
    %148 = vector.extract_strided_slice %4 {offsets = [1, 0], sizes = [1, 8], strides = [1, 1]} : vector<2x8xf32> to vector<1x8xf32>
    %149 = vector.broadcast %148 : vector<1x8xf32> to vector<256x8xf32>
    %150 = arith.addf %147, %149 : vector<256x8xf32>
    %151 = tpu.transpose %150, [1, 0] : vector<256x8xf32> -> vector<8x256xf32>
    %152 = vector.extract_strided_slice %151 {offsets = [0, 0], sizes = [3, 256], strides = [1, 1]} : vector<8x256xf32> to vector<3x256xf32>
    %c0_55 = arith.constant 0 : index
    %c0_56 = arith.constant 0 : index
    %c0_57 = arith.constant 0 : index
    %153 = vector.load %arg9[%c0_55, %c0_56, %c0_57] : memref<1x3x256xf32, #tpu.memory_space<vmem>>, vector<1x3x256xf32>
    %154 = vector.shape_cast %153 : vector<1x3x256xf32> to vector<3x256xf32>
    %155 = vector.shape_cast %152 : vector<3x256xf32> to vector<1x3x256xf32>
    tpu.vector_store %arg9[%c0_55, %c0_56, %c0_57], %155 {strides = array<i32>} : memref<1x3x256xf32, #tpu.memory_space<vmem>>, vector<1x3x256xf32>,
    return
  }
  func.func @transform_0(%arg0: i32, %arg1: i32) -> (i32, i32, i32) {
    %c0_i32 = arith.constant 0 : i32
    %c0_i32_0 = arith.constant 0 : i32
    %c0_i32_1 = arith.constant 0 : i32
    return %arg1, %c0_i32, %c0_i32_0 : i32, i32, i32
  }
  func.func @transform_1(%arg0: i32, %arg1: i32) -> (i32, i32) {
    %c0_i32 = arith.constant 0 : i32
    %c0_i32_0 = arith.constant 0 : i32
    return %arg0, %c0_i32 : i32, i32
  }
  func.func @transform_2(%arg0: i32, %arg1: i32) -> (i32, i32, i32) {
    %c0_i32 = arith.constant 0 : i32
    %c0_i32_0 = arith.constant 0 : i32
    %c0_i32_1 = arith.constant 0 : i32
    %c0_i32_2 = arith.constant 0 : i32
    return %c0_i32, %c0_i32_0, %c0_i32_1 : i32, i32, i32
  }
  func.func @transform_3(%arg0: i32, %arg1: i32) -> (i32, i32, i32) {
    %c0_i32 = arith.constant 0 : i32
    %c0_i32_0 = arith.constant 0 : i32
    %c0_i32_1 = arith.constant 0 : i32
    %c0_i32_2 = arith.constant 0 : i32
    return %c0_i32, %c0_i32_0, %c0_i32_1 : i32, i32, i32
  }
  func.func @transform_4(%arg0: i32, %arg1: i32) -> (i32, i32, i32) {
    %c0_i32 = arith.constant 0 : i32
    %c0_i32_0 = arith.constant 0 : i32
    %c0_i32_1 = arith.constant 0 : i32
    %c0_i32_2 = arith.constant 0 : i32
    return %c0_i32, %c0_i32_0, %c0_i32_1 : i32, i32, i32
  }
  func.func @transform_5(%arg0: i32, %arg1: i32) -> (i32, i32) {
    %c0_i32 = arith.constant 0 : i32
    %c0_i32_0 = arith.constant 0 : i32
    %c0_i32_1 = arith.constant 0 : i32
    return %c0_i32, %c0_i32_0 : i32, i32
  }
  func.func @transform_6(%arg0: i32, %arg1: i32) -> (i32, i32) {
    %c0_i32 = arith.constant 0 : i32
    %c0_i32_0 = arith.constant 0 : i32
    %c0_i32_1 = arith.constant 0 : i32
    return %c0_i32, %c0_i32_0 : i32, i32
  }
  func.func @transform_7(%arg0: i32, %arg1: i32) -> (i32, i32, i32) {
    %c0_i32 = arith.constant 0 : i32
    %c0_i32_0 = arith.constant 0 : i32
    return %arg1, %c0_i32, %arg0 : i32, i32, i32
  }
  func.func @transform_8(%arg0: i32, %arg1: i32) -> (i32, i32, i32) {
    %c0_i32 = arith.constant 0 : i32
    %c0_i32_0 = arith.constant 0 : i32
    return %arg1, %c0_i32, %arg0 : i32, i32, i32
  }
}

</mosaic_0001>

<bundles_post_ra>
// kernel: tpu_custom_call.1
= control target key start
LH: loop header
LB: loop body
LE: loop exit
PB: predicated region body
PF: predicated region fallthrough
CT: control target
= control target key end

     0   :  { %s5388_s27 = smov 0   ;;  %s5390_s28 = smov 0   ;;  %s7288_s0 = inlined_call_operand.vmem [shape: f32[2,2,128], index: 0, kind: input, shape index: {}]   ;;  %s7289_s1 = inlined_call_operand.vmem [shape: f32[256,3], index: 1, kind: input, shape index: {}]   ;;  %s7290_s2 = inlined_call_operand.vmem [shape: bf16[5,128,128], index: 2, kind: input, shape index: {}]   ;;  %s7291_s3 = inlined_call_operand.vmem [shape: bf16[2,128,8], index: 3, kind: input, shape index: {}]   ;;  %s7292_s4 = inlined_call_operand.vmem [shape: f32[3,3,128], index: 4, kind: input, shape index: {}]   ;;  %s7293_s5 = inlined_call_operand.vmem [shape: f32[4,128], index: 5, kind: input, shape index: {}]   ;;  %s7294_s6 = inlined_call_operand.vmem [shape: f32[2,8], index: 6, kind: input, shape index: {}]   ;;  %s7295_s7 = inlined_call_operand.vmem [shape: f32[2,3,256], index: 7, kind: output, shape index: {0}]   ;;  %s7296_s8 = inlined_call_operand.vmem [shape: f32[2,3,256], index: 8, kind: output, shape index: {1}]  }
   0x1   :  { %s5392_s29 = smov 0  }
   0x2 LB: > { %s28_s30 = sadd.s32 1, %s5334_s28  ;;  %p4430_p0 = scmp.ge.s32.totalorder %s5338_s29, 1  ;;  %s5338_s29 = sphi %s5392_s29, %s19_s29   ;;  %s5334_s28 = sphi %s5390_s28, %s7622_s28   ;;  %s5330_s27 = sphi %s5388_s27, %s7621_s27  }
   0x3   : > { %p29_p1 = scmp.ge.s32.totalorder %s28_s30, 2  ;;  %p291_p2 = scmp.lt.s32.totalorder %s5338_s29, 3 }
   0x5   : > { %s7624_s30 = smov (%p29_p1, %s28_s30), 0  ;;  %p292_p3 = pnand %p4430_p0, %p291_p2 }
   0x7   : > { %295 = sbr.rel (%p292_p3) target bundleno = 2059 (0x80b), region = 48 }
   0xe   : > { %v5411_v0 = vld [vmem:[%s7289_s1 + $0x10] sm:$0xff]  ;;  %v5416_v1 = vld [vmem:[%s7289_s1] sm:$0xff]  ;;  %v7305_v2 = vmov 1   ;;  %v5425_v3 = vld [vmem:[%s7289_s1 + $0x28] sm:$0xff]  ;;  %v7297_v7 = vmov 0   ;;  %v7299_v8 = vmov 2   ;;  %v569_v60 = vlaneseq }
   0xf   : > { %5127 = vset.pattern.permute.xlu0 %v7305_v2  ;;  %5125 = vset.pattern.permute.xlu1 %v7305_v2  ;;  %v5430_v4 = vld [vmem:[%s7289_s1 + $0x8] sm:$0xff]  ;;  %v5437_v5 = vld [vmem:[%s7289_s1 + $0x30] sm:$0xff]  ;;  %v376_v6 = vld [vmem:[%s7289_s1 + $0x18] sm:$0xff]  ;;  %p342_p4 = scmp.lt.s32.totalorder %s5330_s27, 1 }
  0x10   : > { %614 = vperm.xlu0 %5127, %v5411_v0   ;;  %606 = vperm.xlu1 %5125, %v5416_v1   ;;  %v5448_v9 = vld [vmem:[%s7289_s1 + $0x20] sm:$0xff]  ;;  %v380_v10 = vld [vmem:[%s7289_s1 + $0x38] sm:$0xff]  ;;  %v5461_v11 = vld [vmem:[%s7289_s1 + $0x48] sm:$0xff]  ;;  %v5685_v63 = vshrl.u32 %v569_v60, 7 }
  0x11   : > { %v5468_v12 = vld [vmem:[%s7289_s1 + $0x60] sm:$0xff]  ;;  %v5473_v13 = vld [vmem:[%s7289_s1 + $0x78] sm:$0xff]  ;;  %v5481_v14 = vld [vmem:[%s7289_s1 + $0x88] sm:$0xff]  ;;  %s7626_s27 = smov (!%p342_p4, %s5330_s27), 1 }
  0x12   : > { %v5488_v15 = vld [vmem:[%s7289_s1 + $0xa0] sm:$0xff]  ;;  %v5495_v16 = vld [vmem:[%s7289_s1 + $0xb8] sm:$0xff]  ;;  %v5506_v18 = vld [vmem:[%s7289_s1 + $0xc8] sm:$0xff]  ;;  %7408 = vst [vmem:[#allocation12_spill] sm:$0xff] %v5685_v63  ;;  %s4431_s15 = sshll.u32 %s7626_s27, 1 }
  0x13   : > { %v5257_v17 = vld [vmem:[%s7290_s2] sm:$0xff]   ;;  %v5258_v19 = vld [vmem:[%s7290_s2 + $0x8] sm:$0xff]   ;;  %v5259_v20 = vld [vmem:[%s7290_s2 + $0x10] sm:$0xff]   ;;  %s5735_s18 = scalar_lea.vmem %s7288_s0, %s4431_s15 }
  0x14   : > { %626 = vperm.xlu0 %5127, %v5425_v3   ;;  %610 = vperm.xlu1 %5125, %v5430_v4   ;;  %v5260_v21 = vld [vmem:[%s7290_s2 + $0x18] sm:$0xff]   ;;  %v5261_v22 = vld [vmem:[%s7290_s2 + $0x20] sm:$0xff]   ;;  %v5262_v24 = vld [vmem:[%s7290_s2 + $0x28] sm:$0xff]  }
  0x15   : > { %4746 = vmatprep.subr.bf16.mxu0 %v5257_v17  ;;  %5082 = vmatprep.subr.bf16.mxu1 %v5257_v17  ;;  %v381_v23 = vld [vmem:[%s7289_s1 + $0x40] sm:$0xff]  ;;  %v5263_v25 = vld [vmem:[%s7290_s2 + $0x30] sm:$0xff]   ;;  %v5264_v26 = vld [vmem:[%s7290_s2 + $0x38] sm:$0xff]  }
  0x16   : > { %4747 = vmatpush3.bf16.msra.mxu0 %v5257_v17  ;;  %5090 = vmatpush3.bf16.msra.mxu1 %v5257_v17  ;;  %v383_v27 = vld [vmem:[%s7289_s1 + $0x50] sm:$0xff]  ;;  %v384_v28 = vld [vmem:[%s7289_s1 + $0x58] sm:$0xff]  ;;  %v5575_v31 = vld [vmem:[%s7289_s1 + $0xe0] sm:$0xff] }
  0x17   : > { %4748 = vmatprep.subr.bf16.mxu0 %v5258_v19  ;;  %5083 = vmatprep.subr.bf16.mxu1 %v5258_v19  ;;  %v5560_v29 = vld [vmem:[%s7289_s1 + $0x90] sm:$0xff]  ;;  %v386_v32 = vld [vmem:[%s7289_s1 + $0x68] sm:$0xff]  ;;  %v389_v41 = vld [vmem:[%s7289_s1 + $0x80] sm:$0xff] }
  0x18   : > { %630 = vperm.xlu0 %5127, %v5437_v5   ;;  %5126 = vset.pattern.permute.xlu1 %v7297_v7  ;;  %v5569_v30 = vld [vmem:[%s7289_s1 + $0xd0] sm:$0xff]  ;;  %v5595_v34 = vld [vmem:[%s7289_s1 + $0xa8] sm:$0xff]  ;;  %v392_v49 = vld [vmem:[%s7289_s1 + $0x98] sm:$0xff] }
  0x19   : > { %426 = vperm.xlu1 %5126, %v376_v6   ;;  %v387_v33 = vld [vmem:[%s7289_s1 + $0x70] sm:$0xff]  ;;  %v5618_v40 = vld [vmem:[%s7289_s1 + $0xe8] sm:$0xff]  ;;  %v5653_v50 = vld [vmem:[%s7289_s1 + $0xf8] sm:$0xff] }
  0x1a   : > { %4749 = vmatpush3.bf16.msra.mxu0 %v5258_v19  ;;  %5091 = vmatpush3.bf16.msra.mxu1 %v5258_v19  ;;  %v5602_v35 = vld [vmem:[%s7289_s1 + $0xb0] sm:$0xff] }
  0x1b   : > { %4750 = vmatprep.subr.bf16.mxu0 %v5259_v20  ;;  %5084 = vmatprep.subr.bf16.mxu1 %v5259_v20  ;;  %v5632_v44 = vld [vmem:[%s7289_s1 + $0xf0] sm:$0xff] }
  0x1c   : > { %5133 = vset.pattern.permute.xlu0 %v7299_v8 }
  0x1d   : > { %806 = vperm.xlu0 %5133, %v5430_v4   ;;  %5128 = vset.pattern.permute.xlu1 %v7305_v2 }
  0x1e   : > { %618 = vperm.xlu1 %5128, %v376_v6   ;;  %4751 = vmatpush3.bf16.msra.mxu0 %v5259_v20 }
  0x1f   : > { %5092 = vmatpush3.bf16.msra.mxu1 %v5259_v20  ;;  %4752 = vmatprep.subr.bf16.mxu0 %v5260_v21 }
  0x20   : > { %5085 = vmatprep.subr.bf16.mxu1 %v5260_v21 }
  0x21   : > { %818 = vperm.xlu0 %5133, %v5448_v9  }
  0x22   : > { %5129 = vset.pattern.permute.xlu1 %v7299_v8  ;;  %4753 = vmatpush3.bf16.msra.mxu0 %v5260_v21 }
  0x23   : > { %802 = vperm.xlu1 %5129, %v5416_v1   ;;  %5093 = vmatpush3.bf16.msra.mxu1 %v5260_v21 }
  0x24   : > { %4754 = vmatprep.subr.bf16.mxu0 %v5261_v22  ;;  %5086 = vmatprep.subr.bf16.mxu1 %v5261_v22 }
  0x25   : > { %830 = vperm.xlu0 %5133, %v380_v10  }
  0x26   : > { %4755 = vmatpush3.bf16.msra.mxu0 %v5261_v22 }
  0x27   : > { %810 = vperm.xlu1 %5129, %v5411_v0   ;;  %5094 = vmatpush3.bf16.msra.mxu1 %v5261_v22 }
  0x28   : > { %4756 = vmatprep.subr.bf16.mxu0 %v5262_v24  ;;  %5087 = vmatprep.subr.bf16.mxu1 %v5262_v24 }
  0x29   : > { %838 = vperm.xlu0 %5133, %v5461_v11  }
  0x2a   : > { %4757 = vmatpush3.bf16.msra.mxu0 %v5262_v24 }
  0x2b   : > { %814 = vperm.xlu1 %5129, %v376_v6   ;;  %5095 = vmatpush3.bf16.msra.mxu1 %v5262_v24  ;;  %v408_v6 = vld [vmem:[%s7292_s4] sm:$0x7] }
  0x2c   : > { %4758 = vmatprep.subr.bf16.mxu0 %v5263_v25  ;;  %5088 = vmatprep.subr.bf16.mxu1 %v5263_v25 }
  0x2d   : > { %850 = vperm.xlu0 %5133, %v5468_v12  }
  0x2e   : > { %4759 = vmatpush3.bf16.msra.mxu0 %v5263_v25 }
  0x2f   : > { %5130 = vset.pattern.permute.xlu1 %v7297_v7  ;;  %5096 = vmatpush3.bf16.msra.mxu1 %v5263_v25  ;;  %v405_v25 = vld [vmem:[%s5735_s18] sm:$0x3] }
  0x30   : > { %436 = vperm.xlu1 %5130, %v5425_v3   ;;  %4760 = vmatprep.subr.bf16.mxu0 %v5264_v26 }
  0x31   : > { %862 = vperm.xlu0 %5133, %v5473_v13   ;;  %5089 = vmatprep.subr.bf16.mxu1 %v5264_v26 }
  0x32   : > { %4761 = vmatpush3.bf16.msra.mxu0 %v5264_v26 }
  0x33   : > { %5097 = vmatpush3.bf16.msra.mxu1 %v5264_v26 }
  0x34   : > { %5131 = vset.pattern.permute.xlu1 %v7305_v2 }
  0x35   : > { %870 = vperm.xlu0 %5133, %v5481_v14   ;;  %622 = vperm.xlu1 %5131, %v5448_v9  }
  0x39   : > { %882 = vperm.xlu0 %5133, %v5488_v15   ;;  %5132 = vset.pattern.permute.xlu1 %v7297_v7 }
  0x3a   : > { %441 = vperm.xlu1 %5132, %v5437_v5  }
  0x3d   : > { %894 = vperm.xlu0 %5133, %v5495_v16  }
  0x3e   : > { %446 = vperm.xlu1 %5132, %v380_v10  }
  0x41   : > { %902 = vperm.xlu0 %5133, %v5506_v18  }
  0x42   : > { %5134 = vset.pattern.permute.xlu1 %v7305_v2 }
  0x43   : > { %634 = vperm.xlu1 %5134, %v380_v10  }
  0x45   : > { %5161 = vset.pattern.permute.xlu0 %v7297_v7 }
  0x46   : > { %411 = vperm.xlu0 %5161, %v5416_v1  }
  0x47   : > { %5135 = vset.pattern.permute.xlu1 %v7299_v8 }
  0x48   : > { %822 = vperm.xlu1 %5135, %v5425_v3   ;;  %v5693_v3 = vsub.s32 0, %v5685_v63 }
  0x4a   : > { %416 = vperm.xlu0 %5161, %v5430_v4   ;;  %v5699_v4 = vsub.s32 1, %v5685_v63  ;;  %v5712_v10 = vrot.slane %v408_v6, %v5693_v3 }
  0x4c   : > { %826 = vperm.xlu1 %5135, %v5437_v5   ;;  %7411 = vst [vmem:[#allocation15_spill] sm:$0xff] %v5699_v4 }
  0x4e   : > { %421 = vperm.xlu0 %5161, %v5411_v0  }
  0x50   : > { %5136 = vset.pattern.permute.xlu1 %v7297_v7 }
  0x51   : > { %451 = vperm.xlu1 %5136, %v381_v23  }
  0x52   : > { %431 = vperm.xlu0 %5161, %v5448_v9   ;;  %v5708_v9 = vsub.s32 2, %v5685_v63 }
  0x54   : > { %7413 = vst [vmem:[#allocation17_spill] sm:$0xff] %v5708_v9 }
  0x55   : > { %5137 = vset.pattern.permute.xlu1 %v7305_v2 }
  0x56   : > { %456 = vperm.xlu0 %5161, %v5461_v11   ;;  %638 = vperm.xlu1 %5137, %v381_v23  }
  0x5a   : > { %461 = vperm.xlu0 %5161, %v383_v27   ;;  %642 = vperm.xlu1 %5137, %v5461_v11  }
  0x5e   : > { %471 = vperm.xlu0 %5161, %v5468_v12   ;;  %5138 = vset.pattern.permute.xlu1 %v7297_v7 }
  0x5f   : > { %466 = vperm.xlu1 %5138, %v384_v28  }
  0x62   : > { %496 = vperm.xlu0 %5161, %v5481_v14  }
  0x63   : > { %5139 = vset.pattern.permute.xlu1 %v7305_v2 }
  0x64   : > { %650 = vperm.xlu1 %5139, %v384_v28  }
  0x66   : > { %501 = vperm.xlu0 %5161, %v5560_v29  }
  0x68   : > { %5140 = vset.pattern.permute.xlu1 %v7299_v8 }
  0x69   : > { %834 = vperm.xlu1 %5140, %v381_v23  }
  0x6a   : > { %511 = vperm.xlu0 %5161, %v5488_v15  }
  0x6d   : > { %842 = vperm.xlu1 %5140, %v383_v27  }
  0x6e   : > { %536 = vperm.xlu0 %5161, %v5506_v18  }
  0x71   : > { %846 = vperm.xlu1 %5140, %v384_v28  }
  0x72   : > { %541 = vperm.xlu0 %5161, %v5569_v30  }
  0x75   : > { %5141 = vset.pattern.permute.xlu1 %v7297_v7 }
  0x76   : > { %551 = vperm.xlu0 %5161, %v5575_v31   ;;  %476 = vperm.xlu1 %5141, %v386_v32  }
  0x7a   : > { %5162 = vset.pattern.permute.xlu0 %v7305_v2  ;;  %5142 = vset.pattern.permute.xlu1 %v7305_v2 }
  0x7b   : > { %646 = vperm.xlu0 %5162, %v383_v27   ;;  %654 = vperm.xlu1 %5142, %v5468_v12   ;;  %v5718_v12 = vrot.slane %v408_v6, %v5699_v4 }
  0x7f   : > { %658 = vperm.xlu0 %5162, %v386_v32   ;;  %5143 = vset.pattern.permute.xlu1 %v7297_v7 }
  0x80   : > { %481 = vperm.xlu1 %5143, %v387_v33  }
  0x83   : > { %662 = vperm.xlu0 %5162, %v387_v33  }
  0x84   : > { %486 = vperm.xlu1 %5143, %v5473_v13  }
  0x87   : > { %678 = vperm.xlu0 %5162, %v5560_v29  }
  0x88   : > { %5144 = vset.pattern.permute.xlu1 %v7305_v2 }
  0x89   : > { %666 = vperm.xlu1 %5144, %v5473_v13   ;;  %v5721_v13 = vrot.slane %v408_v6, %v5708_v9 }
  0x8b   : > { %690 = vperm.xlu0 %5162, %v5595_v34  }
  0x8d   : > { %5145 = vset.pattern.permute.xlu1 %v7299_v8 }
  0x8e   : > { %854 = vperm.xlu1 %5145, %v386_v32  }
  0x8f   : > { %v5605_v36 = vpop.permute.xlu0 %614  ;;  %694 = vperm.xlu0 %5162, %v5602_v35   ;;  %v5608_v37 = vpop.permute.xlu1 %606 }
  0x90   : > { %v737_v17 = vmul.f32 %v5718_v12, %v5608_v37 }
  0x92   : > { %858 = vperm.xlu1 %5145, %v387_v33  }
  0x93   : > { %v5610_v38 = vpop.permute.xlu0 %626  ;;  %710 = vperm.xlu0 %5162, %v5569_v30   ;;  %v5613_v39 = vpop.permute.xlu1 %610 }
  0x94   : > { %7398 = vst [vmem:[#allocation2_spill] sm:$0xff] %v5610_v38  ;;  %v738_v27 = vmul.f32 %v5718_v12, %v5613_v39 }
  0x96   : > { %5146 = vset.pattern.permute.xlu1 %v7297_v7 }
  0x97   : > { %v5624_v42 = vpop.permute.xlu0 %630  ;;  %722 = vperm.xlu0 %5162, %v5618_v40   ;;  %491 = vperm.xlu1 %5146, %v389_v41  }
  0x98   : > { %7399 = vst [vmem:[#allocation3_spill] sm:$0xff] %v5624_v42  ;;  %v5627_v43 = vpop.permute.xlu1 %426 }
  0x9b   : > { %726 = vperm.xlu0 %5162, %v5632_v44   ;;  %5147 = vset.pattern.permute.xlu1 %v7305_v2 }
  0x9c   : > { %v5636_v45 = vpop.permute.xlu0 %806  ;;  %670 = vperm.xlu1 %5147, %v389_v41  }
  0x9d   : > { %v5638_v46 = vpop.permute.xlu1 %618 }
  0x9e   : > { %v740_v19 = vmul.f32 %v5718_v12, %v5638_v46 }
  0x9f   : > { %5167 = vset.pattern.permute.xlu0 %v7299_v8 }
  0xa0   : > { %v5641_v47 = vpop.permute.xlu0 %818  ;;  %674 = vperm.xlu1 %5147, %v5481_v14   ;;  %914 = vperm.xlu0 %5167, %v5575_v31  }
  0xa1   : > { %7400 = vst [vmem:[#allocation4_spill] sm:$0xff] %v5641_v47 }
  0xa2   : > { %v5645_v48 = vpop.permute.xlu1 %802 }
  0xa3   : > { %v933_v24 = vmul.f32 %v5721_v13, %v5645_v48 }
  0xa4   : > { %v5655_v51 = vpop.permute.xlu0 %830  ;;  %5148 = vset.pattern.permute.xlu1 %v7297_v7  ;;  %926 = vperm.xlu0 %5167, %v5653_v50  }
  0xa5   : > { %506 = vperm.xlu1 %5148, %v392_v49  }
  0xa6   : > { %v5659_v52 = vpop.permute.xlu1 %810 }
  0xa8   : > { %v5661_v53 = vpop.permute.xlu0 %838  ;;  %5169 = vset.pattern.permute.xlu0 %v7297_v7 }
  0xa9   : > { %7401 = vst [vmem:[#allocation5_spill] sm:$0xff] %v5661_v53  ;;  %5149 = vset.pattern.permute.xlu1 %v7305_v2 }
  0xaa   : > { %682 = vperm.xlu1 %5149, %v392_v49   ;;  %v5665_v54 = vpop.permute.xlu1 %814 }
  0xab   : > { %v936_v22 = vmul.f32 %v5721_v13, %v5665_v54 }
  0xac   : > { %v5667_v55 = vpop.permute.xlu0 %850 }
  0xad   : > { %7402 = vst [vmem:[#allocation6_spill] sm:$0xff] %v5667_v55 }
  0xae   : > { %5150 = vset.pattern.permute.xlu1 %v7299_v8  ;;  %v935_v8 = vmul.f32 %v5721_v13, %v5659_v52 }
  0xaf   : > { %866 = vperm.xlu1 %5150, %v389_v41   ;;  %v5670_v56 = vpop.permute.xlu1 %436  ;;  %v5755_v41 = vrot.slane %v405_v25, %v5693_v3 }
  0xb0   : > { %7403 = vst [vmem:[#allocation7_spill] sm:$0xff] %v5670_v56  ;;  %v5672_v57 = vpop.permute.xlu0 %862 }
  0xb1   : > { %7404 = vst [vmem:[#allocation8_spill] sm:$0xff] %v5672_v57 }
  0xb3   : > { %874 = vperm.xlu1 %5150, %v5560_v29  }
  0xb4   : > { %v5675_v58 = vpop.permute.xlu0 %870  ;;  %v5677_v59 = vpop.permute.xlu1 %622 }
  0xb5   : > { %7405 = vst [vmem:[#allocation9_spill] sm:$0xff] %v5675_v58  ;;  %7406 = vst [vmem:[#allocation10_spill] sm:$0xff] %v5677_v59 }
  0xb7   : > { %878 = vperm.xlu1 %5150, %v392_v49   ;;  %v578_v49 = vmul.f32 %v5712_v10, %v5670_v56 }
  0xb8   : > { %v5679_v61 = vpop.permute.xlu0 %882 }
  0xb9   : > { %7407 = vst [vmem:[#allocation11_spill] sm:$0xff] %v5679_v61  ;;  %v5681_v62 = vpop.permute.xlu1 %441 }
  0xbb   : > { %5151 = vset.pattern.permute.xlu1 %v7297_v7 }
  0xbc   : > { %v5687_v0 = vpop.permute.xlu0 %894  ;;  %516 = vperm.xlu1 %5151, %v5595_v34  }
  0xbd   : > { %7409 = vst [vmem:[#allocation13_spill] sm:$0xff] %v5687_v0  ;;  %v5690_v1 = vpop.permute.xlu1 %446 }
  0xbe   : > { %7410 = vst [vmem:[#allocation14_spill] sm:$0xff] %v5690_v1 }
  0xc0   : > { %v5701_v5 = vpop.permute.xlu0 %902  ;;  %5152 = vset.pattern.permute.xlu1 %v7305_v2 }
  0xc1   : > { %7412 = vst [vmem:[#allocation16_spill] sm:$0xff] %v5701_v5  ;;  %686 = vperm.xlu1 %5152, %v5488_v15   ;;  %v576_v15 = vmul.f32 %v5712_v10, %v5627_v43 }
  0xc2   : > { %v5714_v11 = vpop.permute.xlu1 %634 }
  0xc3   : > { %7414 = vst [vmem:[#allocation18_spill] sm:$0xff] %v5714_v11  ;;  %v772_v28 = vadd.f32 %v740_v19, %v576_v15  ;;  %v934_v15 = vmul.f32 %v5721_v13, %v5636_v45  ;;  %v580_v19 = vmul.f32 %v5712_v10, %v5690_v1 }
  0xc5   : > { %v5723_v14 = vpop.permute.xlu0 %411  ;;  %5153 = vset.pattern.permute.xlu1 %v7297_v7  ;;  %v968_v33 = vadd.f32 %v936_v22, %v772_v28  ;;  %v743_v28 = vmul.f32 %v5718_v12, %v5624_v42 }
  0xc6   : > { %v573_v20 = vmul.f32 %v5712_v10, %v5723_v14  ;;  %521 = vperm.xlu1 %5153, %v5602_v35  }
  0xc7   : > { %v5740_v21 = vpop.permute.xlu1 %822  ;;  %v1004_v63 = vadd.f32 %v5755_v41, %v968_v33 }
  0xc8   : > { %7415 = vst [vmem:[#allocation19_spill] sm:$0xff] %v5740_v21  ;;  %v769_v23 = vadd.f32 %v737_v17, %v573_v20  ;;  %v739_v17 = vmul.f32 %v5718_v12, %v5605_v36  ;;  %v744_v20 = vmul.f32 %v5718_v12, %v5714_v11 }
  0xc9   : > { %v5747_v26 = vpop.permute.xlu0 %416  ;;  %vm1036_vm2 = vcmp.gt.f32.partialorder %v1004_v63, 0.0 }
  0xca   : > { %v574_v29 = vmul.f32 %v5712_v10, %v5747_v26  ;;  %526 = vperm.xlu1 %5153, %v5495_v16   ;;  %v965_v32 = vadd.f32 %v933_v24, %v769_v23  ;;  %v742_v23 = vmul.f32 %v5718_v12, %v5610_v38  ;;  %v938_v24 = vmul.f32 %v5721_v13, %v5740_v21 }
  0xcb   : > { %v5759_v6 = vpop.permute.xlu1 %826 }
  0xcc   : > { %v770_v60 = vadd.f32 %v738_v27, %v574_v29  ;;  %7416 = vst [vmem:[#allocation20_spill] sm:$0xff] %v5759_v6  ;;  %v1001_v27 = vadd.f32 %v5755_v41, %v965_v32  ;;  %v579_v29 = vmul.f32 %v5712_v10, %v5681_v62  ;;  %v774_v21 = vadd.f32 %v742_v23, %v578_v49 }
  0xcd   : > { %v5769_v22 = vpop.permute.xlu0 %421  ;;  %v741_v32 = vmul.f32 %v5718_v12, %v5677_v59  ;;  %v939_v11 = vmul.f32 %v5721_v13, %v5759_v6  ;;  %v7418_v23 = vmov 2  }
  0xce   : > { %v575_v25 = vmul.f32 %v5712_v10, %v5769_v22  ;;  %5154 = vset.pattern.permute.xlu1 %v7305_v2  ;;  %v966_v7 = vadd.f32 %v934_v15, %v770_v60  ;;  %v776_v2 = vadd.f32 %v744_v20, %v580_v19  ;;  %v970_v60 = vadd.f32 %v938_v24, %v774_v21 }
  0xcf   : > { %698 = vperm.xlu1 %5154, %v5495_v16   ;;  %v1065_v49 = vmul.f32 0.01, %v1001_v27  ;;  %vm1033_vm0 = vcmp.gt.f32.partialorder %v1001_v27, 0.0  ;;  %v937_v19 = vmul.f32 %v5721_v13, %v5641_v47  ;;  %v940_v20 = vmul.f32 %v5721_v13, %v5655_v51 }
  0xd0   : > { %v771_v38 = vadd.f32 %v739_v17, %v575_v25  ;;  %v5787_v56 = vpop.permute.xlu1 %451  ;;  %v1002_v16 = vadd.f32 %v5755_v41, %v966_v7  ;;  %v775_v17 = vadd.f32 %v743_v28, %v579_v29  ;;  %v1068_v28 = vmul.f32 0.01, %v1004_v63 }
  0xd1   : > { %v5793_v1 = vpop.permute.xlu0 %431  ;;  %v972_v29 = vadd.f32 %v940_v20, %v776_v2  ;;  %v1097_v47 = vsel %vm1033_vm0, %v1001_v27, %v1065_v49 }
  0xd2   : > { %7417 = vst [vmem:[#allocation21_spill] sm:$0xff] %v5793_v1  ;;  %v967_v15 = vadd.f32 %v935_v8, %v771_v38  ;;  %v577_v33 = vmul.f32 %v5712_v10, %v5793_v1  ;;  %vm1034_vm1 = vcmp.gt.f32.partialorder %v1002_v16, 0.0  ;;  %v1066_v25 = vmul.f32 0.01, %v1002_v16 }
  0xd3   : > { %5155 = vset.pattern.permute.xlu1 %v7418_v23  ;;  %v971_v8 = vadd.f32 %v939_v11, %v775_v17  ;;  %v1006_v1 = vadd.f32 %v5755_v41, %v970_v60  ;;  %v1100_v2 = vsel %vm1036_vm2, %v1004_v63, %v1068_v28 }
  0xd4   : > { %v773_v59 = vadd.f32 %v741_v32, %v577_v33  ;;  %886 = vperm.xlu1 %5155, %v5595_v34   ;;  %v1003_v7 = vadd.f32 %v5755_v41, %v967_v15  ;;  %v1098_v24 = vsel %vm1034_vm1, %v1002_v16, %v1066_v25  ;;  %v7422_v33 = vmov 0  }
  0xd5   : > { %v5805_v38 = vpop.permute.xlu0 %456  ;;  %v5807_v21 = vpop.permute.xlu1 %638  ;;  %v1145_v42 = vpack.c.bf16 %v1098_v24, %v1097_v47  ;;  %v1007_v32 = vadd.f32 %v5755_v41, %v971_v8  ;;  %v1070_v47 = vmul.f32 0.01, %v1006_v1  ;;  %vm1038_vm5 = vcmp.gt.f32.partialorder %v1006_v1, 0.0 }
  0xd6   : > { %7419 = vst [vmem:[#allocation22_spill] sm:$0xff] %v5805_v38  ;;  %7420 = vst [vmem:[#allocation23_spill] sm:$0xff] %v5807_v21  ;;  %v969_v6 = vadd.f32 %v937_v19, %v773_v59  ;;  %vm1035_vm3 = vcmp.gt.f32.partialorder %v1003_v7, 0.0  ;;  %v1067_v34 = vmul.f32 0.01, %v1003_v7  ;;  %v5821_v59 = vld [vmem:[%s7289_s1 + $0xc0] sm:$0xff]  ;;  %v582_v20 = vmul.f32 %v5712_v10, %v5805_v38 }
  0xd7   : > { %4762 = vmatprep.mubr.bf16.mxu0 %v1145_v42  ;;  %v1071_v17 = vmul.f32 0.01, %v1007_v32  ;;  %v1102_v25 = vsel %vm1038_vm5, %v1006_v1, %v1070_v47  ;;  %vm1039_vm6 = vcmp.gt.f32.partialorder %v1007_v32, 0.0  ;;  %v942_v1 = vmul.f32 %v5721_v13, %v5661_v53 }
  0xd8   : > { %890 = vperm.xlu1 %5155, %v5602_v35   ;;  %v1005_v11 = vadd.f32 %v5755_v41, %v969_v6  ;;  %v1008_v35 = vadd.f32 %v5755_v41, %v972_v29  ;;  %v1099_v27 = vsel %vm1035_vm3, %v1003_v7, %v1067_v34  ;;  %v7425_v29 = vmov 1  }
  0xd9   : > { %v5814_v15 = vpop.permute.xlu0 %461  ;;  %v5816_v16 = vpop.permute.xlu1 %642  ;;  %v1146_v60 = vpack.c.bf16 %v1100_v2, %v1099_v27  ;;  %v1103_v34 = vsel %vm1039_vm6, %v1007_v32, %v1071_v17  ;;  %v581_v27 = vmul.f32 %v5712_v10, %v5787_v56 }
  0xda   : > { %7421 = vst [vmem:[#allocation24_spill] sm:$0xff] %v5816_v16  ;;  %vm1037_vm4 = vcmp.gt.f32.partialorder %v1005_v11, 0.0  ;;  %v1069_v6 = vmul.f32 0.01, %v1005_v11  ;;  %v746_v42 = vmul.f32 %v5718_v12, %v5816_v16  ;;  %v1072_v8 = vmul.f32 0.01, %v1008_v35 }
  0xdb   : > { %4763 = vmatmul.mubr.bf16.vlgmr.msra.gmra.mrb[0].mxu0 %v1146_v60  ;;  %vm1040_vm7 = vcmp.gt.f32.partialorder %v1008_v35, 0.0 }
  0xdc   : > { %5156 = vset.pattern.permute.xlu1 %v7422_v33  ;;  %v1101_v63 = vsel %vm1037_vm4, %v1005_v11, %v1069_v6  ;;  %v778_v24 = vadd.f32 %v746_v42, %v582_v20  ;;  %v1104_v11 = vsel %vm1040_vm7, %v1008_v35, %v1072_v8  ;;  %v745_v6 = vmul.f32 %v5718_v12, %v5807_v21 }
  0xdd   : > { %v5827_v49 = vpop.permute.xlu0 %471  ;;  %531 = vperm.xlu1 %5156, %v5821_v59   ;;  %v1147_v7 = vpack.c.bf16 %v1102_v25, %v1101_v63  ;;  %v1148_v47 = vpack.c.bf16 %v1104_v11, %v1103_v34  ;;  %v400_v25 = vld [vmem:[%s7289_s1 + $0xd8] sm:$0xff]  ;;  %v945_v21 = vmul.f32 %v5721_v13, %v5667_v55 }
  0xde   : > { %7423 = vst [vmem:[#allocation25_spill] sm:$0xff] %v5827_v49  ;;  %v5830_v19 = vpop.permute.xlu1 %466  ;;  %v974_v60 = vadd.f32 %v942_v1, %v778_v24  ;;  %v777_v63 = vadd.f32 %v745_v6, %v581_v27 }
  0xdf   : > { %4766 = vmatprep.mubr.bf16.mxu0 %v1147_v7 }
  0xe0   : > { %v1010_v20 = vadd.f32 %v5755_v41, %v974_v60 }
  0xe1   : > { %v5834_v28 = vpop.permute.xlu0 %496  ;;  %5157 = vset.pattern.permute.xlu1 %v7425_v29 }
  0xe2   : > { %7424 = vst [vmem:[#allocation26_spill] sm:$0xff] %v5834_v28  ;;  %702 = vperm.xlu1 %5157, %v5821_v59   ;;  %v1074_v34 = vmul.f32 0.01, %v1010_v20  ;;  %vm1042_vm8 = vcmp.gt.f32.partialorder %v1010_v20, 0.0 }
  0xe3   : > { %v5840_v2 = vpop.permute.xlu1 %650  ;;  %4767 = vmatmul.mubr.bf16.gmra.mrb[4].mxu0 %v1148_v47 }
  0xe4   : > { %v1106_v6 = vsel %vm1042_vm8, %v1010_v20, %v1074_v34 }
  0xe5   : > { %v5846_v42 = vpop.permute.xlu0 %501 }
  0xe6   : > { %7426 = vst [vmem:[#allocation27_spill] sm:$0xff] %v5846_v42  ;;  %706 = vperm.xlu1 %5157, %v5506_v18  }
  0xe8   : > { %v5849_v32 = vpop.permute.xlu1 %834 }
  0xe9   : > { %7427 = vst [vmem:[#allocation28_spill] sm:$0xff] %v5849_v32  ;;  %v941_v35 = vmul.f32 %v5721_v13, %v5849_v32  ;;  %v5853_v17 = vpop.permute.xlu0 %511 }
  0xea   : > { %7428 = vst [vmem:[#allocation29_spill] sm:$0xff] %v5853_v17  ;;  %5158 = vset.pattern.permute.xlu1 %v7422_v33 }
  0xeb   : > { %v973_v7 = vadd.f32 %v941_v35, %v777_v63  ;;  %546 = vperm.xlu1 %5158, %v400_v25   ;;  %v584_v63 = vmul.f32 %v5712_v10, %v5830_v19  ;;  %v748_v35 = vmul.f32 %v5718_v12, %v5840_v2 }
  0xec   : > { %v5860_v8 = vpop.permute.xlu1 %842 }
  0xed   : > { %v1009_v18 = vadd.f32 %v5755_v41, %v973_v7  ;;  %v5863_v24 = vpop.permute.xlu0 %536  ;;  %v780_v20 = vadd.f32 %v748_v35, %v584_v63 }
  0xee   : > { %7429 = vst [vmem:[#allocation30_spill] sm:$0xff] %v5863_v24 }
  0xef   : > { %vm1041_vm9 = vcmp.gt.f32.partialorder %v1009_v18, 0.0  ;;  %v1073_v1 = vmul.f32 0.01, %v1009_v18  ;;  %5159 = vset.pattern.permute.xlu1 %v7425_v29 }
  0xf0   : > { %714 = vperm.xlu1 %5159, %v400_v25   ;;  %v5866_v11 = vpop.permute.xlu1 %846 }
  0xf1   : > { %7430 = vst [vmem:[#allocation31_spill] sm:$0xff] %v5866_v11  ;;  %v5868_v47 = vpop.permute.xlu0 %541  ;;  %v1105_v27 = vsel %vm1041_vm9, %v1009_v18, %v1073_v1  ;;  %v944_v7 = vmul.f32 %v5721_v13, %v5866_v11  ;;  %v583_v1 = vmul.f32 %v5712_v10, %v5814_v15 }
  0xf2   : > { %7431 = vst [vmem:[#allocation32_spill] sm:$0xff] %v5868_v47  ;;  %v1149_v60 = vpack.c.bf16 %v1106_v6, %v1105_v27 }
  0xf3   : > { %v976_v18 = vadd.f32 %v944_v7, %v780_v20 }
  0xf4   : > { %4770 = vmatprep.mubr.bf16.mxu0 %v1149_v60  ;;  %5160 = vset.pattern.permute.xlu1 %v7418_v23  ;;  %v943_v60 = vmul.f32 %v5721_v13, %v5860_v8 }
  0xf5   : > { %v5877_v53 = vpop.permute.xlu0 %551  ;;  %v5879_v38 = vpop.permute.xlu1 %476  ;;  %898 = vperm.xlu1 %5160, %v5821_v59   ;;  %v1012_v16 = vadd.f32 %v5755_v41, %v976_v18 }
  0xf6   : > { %7432 = vst [vmem:[#allocation33_spill] sm:$0xff] %v5877_v53  ;;  %7433 = vst [vmem:[#allocation34_spill] sm:$0xff] %v5879_v38 }
  0xf7   : > { %v1076_v7 = vmul.f32 0.01, %v1012_v16  ;;  %vm1044_vm10 = vcmp.gt.f32.partialorder %v1012_v16, 0.0 }
  0xf9   : > { %906 = vperm.xlu1 %5160, %v5569_v30  }
  0xfa   : > { %v5883_v34 = vpop.permute.xlu0 %646  ;;  %v5889_v6 = vpop.permute.xlu1 %654 }
  0xfb   : > { %v747_v27 = vmul.f32 %v5718_v12, %v5883_v34  ;;  %7434 = vst [vmem:[#allocation35_spill] sm:$0xff] %v5889_v6  ;;  %v749_v20 = vmul.f32 %v5718_v12, %v5889_v6 }
  0xfd   : > { %v779_v59 = vadd.f32 %v747_v27, %v583_v1  ;;  %910 = vperm.xlu1 %5160, %v400_v25   ;;  %v585_v25 = vmul.f32 %v5712_v10, %v5827_v49  ;;  %v1108_v27 = vsel %vm1044_vm10, %v1012_v16, %v1076_v7 }
  0xff   : > { %v975_v63 = vadd.f32 %v943_v60, %v779_v59  ;;  %v5894_v35 = vpop.permute.xlu1 %481  ;;  %v781_v59 = vadd.f32 %v749_v20, %v585_v25 }
 0x100   : > { %7435 = vst [vmem:[#allocation36_spill] sm:$0xff] %v5894_v35  ;;  %v587_v25 = vmul.f32 %v5712_v10, %v5894_v35 }
 0x101   : > { %v1011_v30 = vadd.f32 %v5755_v41, %v975_v63  ;;  %5163 = vset.pattern.permute.xlu1 %v7422_v33  ;;  %v5905_v63 = vpop.permute.xlu0 %658  ;;  %v977_v20 = vadd.f32 %v945_v21, %v781_v59 }
 0x102   : > { %556 = vperm.xlu1 %5163, %v5618_v40   ;;  %7437 = vst [vmem:[#allocation38_spill] sm:$0xff] %v5905_v63  ;;  %v750_v7 = vmul.f32 %v5718_v12, %v5905_v63 }
 0x103   : > { %v5901_v32 = vpop.permute.xlu1 %486  ;;  %vm1043_vm11 = vcmp.gt.f32.partialorder %v1011_v30, 0.0  ;;  %v1075_v18 = vmul.f32 0.01, %v1011_v30  ;;  %v1013_v59 = vadd.f32 %v5755_v41, %v977_v20 }
 0x104   : > { %7436 = vst [vmem:[#allocation37_spill] sm:$0xff] %v5901_v32  ;;  %v588_v11 = vmul.f32 %v5712_v10, %v5901_v32 }
 0x105   : > { %v1107_v1 = vsel %vm1043_vm11, %v1011_v30, %v1075_v18  ;;  %v586_v30 = vmul.f32 %v5712_v10, %v5879_v38  ;;  %v1077_v49 = vmul.f32 0.01, %v1013_v59  ;;  %vm1045_vm12 = vcmp.gt.f32.partialorder %v1013_v59, 0.0 }
 0x106   : > { %v1150_v60 = vpack.c.bf16 %v1108_v27, %v1107_v1  ;;  %5164 = vset.pattern.permute.xlu1 %v7425_v29  ;;  %v5926_v1 = vpop.permute.xlu0 %662 }
 0x107   : > { %718 = vperm.xlu1 %5164, %v5575_v31   ;;  %v948_v31 = vmul.f32 %v5721_v13, %v5672_v57  ;;  %7439 = vst [vmem:[#allocation40_spill] sm:$0xff] %v5926_v1  ;;  %v751_v63 = vmul.f32 %v5718_v12, %v5926_v1 }
 0x108   : > { %v5911_v6 = vpop.permute.xlu1 %666  ;;  %4771 = vmatmul.mubr.bf16.gmra.mrb[8].mxu0 %v1150_v60  ;;  %v782_v60 = vadd.f32 %v750_v7, %v586_v30 }
 0x109   : > { %7438 = vst [vmem:[#allocation39_spill] sm:$0xff] %v5911_v6  ;;  %v752_v16 = vmul.f32 %v5718_v12, %v5911_v6  ;;  %v783_v57 = vadd.f32 %v751_v63, %v587_v25  ;;  %v4501_v6 = vld [vmem:[%s7292_s4 + $0x8] sm:$0x7] }
 0x10a   : > { %v6560_v1 = vrot.slane %v4501_v6, %v5693_v3 }
 0x10b   : > { %v784_v18 = vadd.f32 %v752_v16, %v588_v11  ;;  %5165 = vset.pattern.permute.xlu1 %v7422_v33 }
 0x10c   : > { %561 = vperm.xlu1 %5165, %v5632_v44  }
 0x10d   : > { %v5929_v27 = vpop.permute.xlu1 %854  ;;  %v980_v21 = vadd.f32 %v948_v31, %v784_v18 }
 0x10e   : > { %7440 = vst [vmem:[#allocation41_spill] sm:$0xff] %v5929_v27  ;;  %v946_v11 = vmul.f32 %v5721_v13, %v5929_v27 }
 0x10f   : > { %v1016_v7 = vadd.f32 %v5755_v41, %v980_v21 }
 0x110   : > { %v978_v16 = vadd.f32 %v946_v11, %v782_v60  ;;  %566 = vperm.xlu1 %5165, %v5653_v50   ;;  %v1109_v11 = vsel %vm1045_vm12, %v1013_v59, %v1077_v49  ;;  %v590_v59 = vmul.f32 %v5712_v10, %v5834_v28 }
 0x111   : > { %v5937_v38 = vpop.permute.xlu1 %858  ;;  %v1080_v25 = vmul.f32 0.01, %v1016_v7  ;;  %vm1048_vm14 = vcmp.gt.f32.partialorder %v1016_v7, 0.0 }
 0x112   : > { %7441 = vst [vmem:[#allocation42_spill] sm:$0xff] %v5937_v38  ;;  %v1014_v55 = vadd.f32 %v5755_v41, %v978_v16  ;;  %v947_v30 = vmul.f32 %v5721_v13, %v5937_v38  ;;  %v6557_v38 = vrot.slane %v4501_v6, %v5699_v4 }
 0x114   : > { %v979_v18 = vadd.f32 %v947_v30, %v783_v57  ;;  %vm1046_vm13 = vcmp.gt.f32.partialorder %v1014_v55, 0.0  ;;  %v1078_v31 = vmul.f32 0.01, %v1014_v55  ;;  %5166 = vset.pattern.permute.xlu1 %v7425_v29  ;;  %v1112_v30 = vsel %vm1048_vm14, %v1016_v7, %v1080_v25  ;;  %v5968_v25 = vpop.permute.xlu0 %678 }
 0x115   : > { %730 = vperm.xlu1 %5166, %v5653_v50   ;;  %v5265_v50 = vld [vmem:[%s7290_s2 + $0x40] sm:$0xff]   ;;  %7447 = vst [vmem:[#allocation48_spill] sm:$0xff] %v5968_v25 }
 0x116   : > { %v1015_v20 = vadd.f32 %v5755_v41, %v979_v18  ;;  %v5946_v60 = vpop.permute.xlu1 %491  ;;  %v1110_v63 = vsel %vm1046_vm13, %v1014_v55, %v1078_v31  ;;  %4794 = vmatprep.subr.bf16.mxu1 %v5265_v50  ;;  %v950_v31 = vmul.f32 %v5721_v13, %v5675_v58 }
 0x117   : > { %7442 = vst [vmem:[#allocation43_spill] sm:$0xff] %v5946_v60  ;;  %v1151_v16 = vpack.c.bf16 %v1110_v63, %v1109_v11 }
 0x118   : > { %vm1047_vm15 = vcmp.gt.f32.partialorder %v1015_v20, 0.0  ;;  %v1079_v21 = vmul.f32 0.01, %v1015_v20 }
 0x119   : > { %5168 = vset.pattern.permute.xlu1 %v7418_v23  ;;  %4774 = vmatprep.mubr.bf16.mxu0 %v1151_v16  ;;  %v755_v16 = vmul.f32 %v5718_v12, %v5968_v25 }
 0x11a   : > { %v1111_v57 = vsel %vm1047_vm15, %v1015_v20, %v1079_v21  ;;  %918 = vperm.xlu1 %5168, %v5618_v40  }
 0x11b   : > { %v5950_v27 = vpop.permute.xlu1 %670  ;;  %v1152_v18 = vpack.c.bf16 %v1112_v30, %v1111_v57 }
 0x11c   : > { %7443 = vst [vmem:[#allocation44_spill] sm:$0xff] %v5950_v27  ;;  %v753_v11 = vmul.f32 %v5718_v12, %v5950_v27 }
 0x11d   : > { %4775 = vmatmul.mubr.bf16.gmra.mrb[12].mxu0 %v1152_v18 }
 0x11e   : > { %922 = vperm.xlu1 %5168, %v5632_v44   ;;  %v589_v44 = vmul.f32 %v5712_v10, %v5946_v60 }
 0x11f   : > { %v5956_v55 = vpop.permute.xlu1 %674 }
 0x120   : > { %7444 = vst [vmem:[#allocation45_spill] sm:$0xff] %v5956_v55  ;;  %v754_v49 = vmul.f32 %v5718_v12, %v5956_v55  ;;  %v785_v30 = vadd.f32 %v753_v11, %v589_v44 }
 0x122   : > { %v786_v7 = vadd.f32 %v754_v49, %v590_v59  ;;  %v591_v49 = vmul.f32 %v5712_v10, %v5846_v42 }
 0x124   : > { %v5962_v40 = vpop.permute.xlu1 %506  ;;  %v982_v63 = vadd.f32 %v950_v31, %v786_v7  ;;  %v787_v7 = vadd.f32 %v755_v16, %v591_v49 }
 0x125   : > { %7445 = vst [vmem:[#allocation46_spill] sm:$0xff] %v5962_v40  ;;  %v592_v31 = vmul.f32 %v5712_v10, %v5962_v40 }
 0x126   : > { %v1018_v57 = vadd.f32 %v5755_v41, %v982_v63 }
 0x128   : > { %v1082_v28 = vmul.f32 0.01, %v1018_v57  ;;  %vm1050_vm0 = vcmp.gt.f32.partialorder %v1018_v57, 0.0 }
 0x129   : > { %v5966_v20 = vpop.permute.xlu1 %682 }
 0x12a   : > { %7446 = vst [vmem:[#allocation47_spill] sm:$0xff] %v5966_v20  ;;  %v756_v55 = vmul.f32 %v5718_v12, %v5966_v20  ;;  %v1114_v16 = vsel %vm1050_vm0, %v1018_v57, %v1082_v28 }
 0x12e   : > { %v5976_v21 = vpop.permute.xlu1 %866 }
 0x12f   : > { %7448 = vst [vmem:[#allocation49_spill] sm:$0xff] %v5976_v21  ;;  %v949_v18 = vmul.f32 %v5721_v13, %v5976_v21 }
 0x131   : > { %v981_v59 = vadd.f32 %v949_v18, %v785_v30  ;;  %v788_v18 = vadd.f32 %v756_v55, %v592_v31  ;;  %v5269_v31 = vld [vmem:[%s7290_s2 + $0x60] sm:$0xff]  }
 0x132   : > { %v5985_v58 = vpop.permute.xlu1 %874 }
 0x133   : > { %7449 = vst [vmem:[#allocation50_spill] sm:$0xff] %v5985_v58  ;;  %v951_v63 = vmul.f32 %v5721_v13, %v5985_v58  ;;  %v1017_v44 = vadd.f32 %v5755_v41, %v981_v59 }
 0x135   : > { %v983_v11 = vadd.f32 %v951_v63, %v787_v7  ;;  %vm1049_vm1 = vcmp.gt.f32.partialorder %v1017_v44, 0.0  ;;  %v1081_v21 = vmul.f32 0.01, %v1017_v44 }
 0x136   : > { %v5992_v30 = vpop.permute.xlu1 %878 }
 0x137   : > { %7450 = vst [vmem:[#allocation51_spill] sm:$0xff] %v5992_v30  ;;  %v1019_v49 = vadd.f32 %v5755_v41, %v983_v11  ;;  %v952_v27 = vmul.f32 %v5721_v13, %v5992_v30  ;;  %v1113_v60 = vsel %vm1049_vm1, %v1017_v44, %v1081_v21  ;;  %v5266_v21 = vld [vmem:[%s7290_s2 + $0x48] sm:$0xff]   ;;  %v953_v11 = vmul.f32 %v5721_v13, %v5679_v61 }
 0x138   : > { %v1153_v20 = vpack.c.bf16 %v1114_v16, %v1113_v60  ;;  %v6026_v16 = vpop.permute.xlu0 %690 }
 0x139   : > { %v984_v40 = vadd.f32 %v952_v27, %v788_v18  ;;  %v1083_v7 = vmul.f32 0.01, %v1019_v49  ;;  %vm1051_vm2 = vcmp.gt.f32.partialorder %v1019_v49, 0.0  ;;  %v5267_v27 = vld [vmem:[%s7290_s2 + $0x50] sm:$0xff]   ;;  %7455 = vst [vmem:[#allocation56_spill] sm:$0xff] %v6026_v16 }
 0x13a   : > { %4778 = vmatprep.mubr.bf16.mxu1 %v1153_v20 }
 0x13b   : > { %v1020_v58 = vadd.f32 %v5755_v41, %v984_v40  ;;  %v5998_v59 = vpop.permute.xlu1 %516  ;;  %v1115_v25 = vsel %vm1051_vm2, %v1019_v49, %v1083_v7  ;;  %v5268_v40 = vld [vmem:[%s7290_s2 + $0x58] sm:$0xff]  }
 0x13c   : > { %7451 = vst [vmem:[#allocation52_spill] sm:$0xff] %v5998_v59  ;;  %v594_v7 = vmul.f32 %v5712_v10, %v5998_v59 }
 0x13d   : > { %vm1052_vm3 = vcmp.gt.f32.partialorder %v1020_v58, 0.0  ;;  %v1084_v63 = vmul.f32 0.01, %v1020_v58 }
 0x13f   : > { %v1116_v28 = vsel %vm1052_vm3, %v1020_v58, %v1084_v63 }
 0x140   : > { %v6000_v55 = vpop.permute.xlu1 %686  ;;  %v1154_v57 = vpack.c.bf16 %v1116_v28, %v1115_v25  ;;  %v5270_v28 = vld [vmem:[%s7290_s2 + $0x68] sm:$0xff]  }
 0x141   : > { %7452 = vst [vmem:[#allocation53_spill] sm:$0xff] %v6000_v55  ;;  %v757_v58 = vmul.f32 %v5718_v12, %v6000_v55 }
 0x142   : > { %4779 = vmatmul.mubr.bf16.vlgmr.msra.gmra.mrb[0].mxu1 %v1154_v57 }
 0x143   : > { %4795 = vmatpush3.bf16.msra.mxu1 %v5265_v50  ;;  %v593_v50 = vmul.f32 %v5712_v10, %v5853_v17 }
 0x144   : > { %4796 = vmatprep.subr.bf16.mxu1 %v5266_v21 }
 0x145   : > { %v6008_v60 = vpop.permute.xlu1 %521  ;;  %v789_v25 = vadd.f32 %v757_v58, %v593_v50  ;;  %v6045_v50 = vpop.permute.xlu0 %694 }
 0x146   : > { %7453 = vst [vmem:[#allocation54_spill] sm:$0xff] %v6008_v60  ;;  %v595_v58 = vmul.f32 %v5712_v10, %v6008_v60  ;;  %7458 = vst [vmem:[#allocation59_spill] sm:$0xff] %v6045_v50 }
 0x147   : > { %4797 = vmatpush3.bf16.msra.mxu1 %v5266_v21  ;;  %v985_v63 = vadd.f32 %v953_v11, %v789_v25  ;;  %v956_v21 = vmul.f32 %v5721_v13, %v5687_v0 }
 0x148   : > { %4798 = vmatprep.subr.bf16.mxu1 %v5267_v27 }
 0x149   : > { %v6015_v20 = vpop.permute.xlu1 %526 }
 0x14a   : > { %7454 = vst [vmem:[#allocation55_spill] sm:$0xff] %v6015_v20  ;;  %v596_v44 = vmul.f32 %v5712_v10, %v6015_v20 }
 0x14b   : > { %4799 = vmatpush3.bf16.msra.mxu1 %v5267_v27  ;;  %v758_v27 = vmul.f32 %v5718_v12, %v6026_v16  ;;  %v759_v16 = vmul.f32 %v5718_v12, %v6045_v50 }
 0x14c   : > { %4800 = vmatprep.subr.bf16.mxu1 %v5268_v40 }
 0x14d   : > { %v790_v25 = vadd.f32 %v758_v27, %v594_v7  ;;  %v791_v0 = vadd.f32 %v759_v16, %v595_v58  ;;  %v5272_v27 = vld [vmem:[%s7290_s2 + $0x78] sm:$0xff]  }
 0x14e   : > { %v6028_v18 = vpop.permute.xlu1 %698 }
 0x14f   : > { %7456 = vst [vmem:[#allocation57_spill] sm:$0xff] %v6028_v18  ;;  %v760_v49 = vmul.f32 %v5718_v12, %v6028_v18  ;;  %4801 = vmatpush3.bf16.msra.mxu1 %v5268_v40 }
 0x150   : > { %4802 = vmatprep.subr.bf16.mxu1 %v5269_v31 }
 0x151   : > { %v792_v57 = vadd.f32 %v760_v49, %v596_v44  ;;  %v1021_v44 = vadd.f32 %v5755_v41, %v985_v63  ;;  %v5271_v49 = vld [vmem:[%s7290_s2 + $0x70] sm:$0xff]  }
 0x153   : > { %v6043_v40 = vpop.permute.xlu1 %886  ;;  %4803 = vmatpush3.bf16.msra.mxu1 %v5269_v31  ;;  %v988_v11 = vadd.f32 %v956_v21, %v792_v57  ;;  %v1085_v21 = vmul.f32 0.01, %v1021_v44  ;;  %vm1053_vm4 = vcmp.gt.f32.partialorder %v1021_v44, 0.0 }
 0x154   : > { %7457 = vst [vmem:[#allocation58_spill] sm:$0xff] %v6043_v40  ;;  %v954_v59 = vmul.f32 %v5721_v13, %v6043_v40  ;;  %4804 = vmatprep.subr.bf16.mxu1 %v5270_v28 }
 0x155   : > { %v1024_v63 = vadd.f32 %v5755_v41, %v988_v11 }
 0x156   : > { %v986_v61 = vadd.f32 %v954_v59, %v790_v25 }
 0x157   : > { %v6055_v31 = vpop.permute.xlu1 %890  ;;  %4805 = vmatpush3.bf16.msra.mxu1 %v5270_v28  ;;  %v1088_v25 = vmul.f32 0.01, %v1024_v63  ;;  %vm1056_vm6 = vcmp.gt.f32.partialorder %v1024_v63, 0.0 }
 0x158   : > { %7459 = vst [vmem:[#allocation60_spill] sm:$0xff] %v6055_v31  ;;  %v1022_v7 = vadd.f32 %v5755_v41, %v986_v61  ;;  %v955_v57 = vmul.f32 %v5721_v13, %v6055_v31  ;;  %4806 = vmatprep.subr.bf16.mxu1 %v5271_v49  ;;  %v1117_v61 = vsel %vm1053_vm4, %v1021_v44, %v1085_v21 }
 0x159   : > { %v1120_v18 = vsel %vm1056_vm6, %v1024_v63, %v1088_v25  ;;  %v598_v44 = vmul.f32 %v5712_v10, %v5863_v24 }
 0x15a   : > { %v987_v40 = vadd.f32 %v955_v57, %v791_v0  ;;  %vm1054_vm5 = vcmp.gt.f32.partialorder %v1022_v7, 0.0  ;;  %v1086_v59 = vmul.f32 0.01, %v1022_v7 }
 0x15b   : > { %4807 = vmatpush3.bf16.msra.mxu1 %v5271_v49 }
 0x15c   : > { %v1023_v16 = vadd.f32 %v5755_v41, %v987_v40  ;;  %v6065_v28 = vpop.permute.xlu1 %531  ;;  %v1118_v58 = vsel %vm1054_vm5, %v1022_v7, %v1086_v59  ;;  %4808 = vmatprep.subr.bf16.mxu1 %v5272_v27  ;;  %v6081_v59 = vpop.permute.xlu0 %710 }
 0x15d   : > { %7460 = vst [vmem:[#allocation61_spill] sm:$0xff] %v6065_v28  ;;  %v1155_v17 = vpack.c.bf16 %v1118_v58, %v1117_v61  ;;  %7465 = vst [vmem:[#allocation66_spill] sm:$0xff] %v6081_v59 }
 0x15e   : > { %vm1055_vm7 = vcmp.gt.f32.partialorder %v1023_v16, 0.0  ;;  %v1087_v11 = vmul.f32 0.01, %v1023_v16 }
 0x15f   : > { %4782 = vmatprep.mubr.bf16.mxu1 %v1155_v17  ;;  %4809 = vmatpush3.bf16.msra.mxu1 %v5272_v27  ;;  %v958_v17 = vmul.f32 %v5721_v13, %v5701_v5 }
 0x160   : > { %v1119_v55 = vsel %vm1055_vm7, %v1023_v16, %v1087_v11  ;;  %v763_v16 = vmul.f32 %v5718_v12, %v6081_v59 }
 0x161   : > { %v6067_v0 = vpop.permute.xlu1 %702  ;;  %v1156_v57 = vpack.c.bf16 %v1120_v18, %v1119_v55  ;;  %v597_v55 = vmul.f32 %v5712_v10, %v6065_v28 }
 0x162   : > { %7461 = vst [vmem:[#allocation62_spill] sm:$0xff] %v6067_v0  ;;  %v761_v18 = vmul.f32 %v5718_v12, %v6067_v0 }
 0x163   : > { %4783 = vmatmul.mubr.bf16.gmra.mrb[4].mxu1 %v1156_v57  ;;  %v599_v57 = vmul.f32 %v5712_v10, %v5868_v47 }
 0x164   : > { %v793_v25 = vadd.f32 %v761_v18, %v597_v55 }
 0x165   : > { %v6069_v49 = vpop.permute.xlu1 %706 }
 0x166   : > { %7462 = vst [vmem:[#allocation63_spill] sm:$0xff] %v6069_v49  ;;  %v762_v40 = vmul.f32 %v5718_v12, %v6069_v49 }
 0x168   : > { %v794_v21 = vadd.f32 %v762_v40, %v598_v44  ;;  %v795_v44 = vadd.f32 %v763_v16, %v599_v57 }
 0x16a   : > { %v6075_v7 = vpop.permute.xlu1 %546  ;;  %v990_v63 = vadd.f32 %v958_v17, %v794_v21 }
 0x16b   : > { %7463 = vst [vmem:[#allocation64_spill] sm:$0xff] %v6075_v7  ;;  %v600_v21 = vmul.f32 %v5712_v10, %v6075_v7 }
 0x16c   : > { %v1026_v58 = vadd.f32 %v5755_v41, %v990_v63 }
 0x16e   : > { %v1090_v5 = vmul.f32 0.01, %v1026_v58  ;;  %vm1058_vm8 = vcmp.gt.f32.partialorder %v1026_v58, 0.0 }
 0x16f   : > { %v6079_v27 = vpop.permute.xlu1 %714 }
 0x170   : > { %7464 = vst [vmem:[#allocation65_spill] sm:$0xff] %v6079_v27  ;;  %v764_v24 = vmul.f32 %v5718_v12, %v6079_v27  ;;  %v1122_v16 = vsel %vm1058_vm8, %v1026_v58, %v1090_v5 }
 0x174   : > { %v6089_v61 = vpop.permute.xlu1 %898 }
 0x175   : > { %7466 = vst [vmem:[#allocation67_spill] sm:$0xff] %v6089_v61  ;;  %v957_v11 = vmul.f32 %v5721_v13, %v6089_v61 }
 0x177   : > { %v989_v40 = vadd.f32 %v957_v11, %v793_v25  ;;  %v796_v11 = vadd.f32 %v764_v24, %v600_v21 }
 0x178   : > { %v6098_v17 = vpop.permute.xlu1 %906 }
 0x179   : > { %7467 = vst [vmem:[#allocation68_spill] sm:$0xff] %v6098_v17  ;;  %v1025_v63 = vadd.f32 %v5755_v41, %v989_v40  ;;  %v959_v55 = vmul.f32 %v5721_v13, %v6098_v17  ;;  %v6113_v17 = vpop.permute.xlu0 %722 }
 0x17a   : > { %7470 = vst [vmem:[#allocation71_spill] sm:$0xff] %v6113_v17 }
 0x17b   : > { %v991_v18 = vadd.f32 %v959_v55, %v795_v44  ;;  %vm1057_vm9 = vcmp.gt.f32.partialorder %v1025_v63, 0.0  ;;  %v1089_v49 = vmul.f32 0.01, %v1025_v63 }
 0x17c   : > { %v6105_v25 = vpop.permute.xlu1 %910 }
 0x17d   : > { %7468 = vst [vmem:[#allocation69_spill] sm:$0xff] %v6105_v25  ;;  %v1027_v57 = vadd.f32 %v5755_v41, %v991_v18  ;;  %v960_v61 = vmul.f32 %v5721_v13, %v6105_v25  ;;  %v1121_v7 = vsel %vm1057_vm9, %v1025_v63, %v1089_v49  ;;  %v6117_v49 = vpop.permute.xlu0 %726  ;;  %v601_v63 = vmul.f32 %v5712_v10, %v5877_v53 }
 0x17e   : > { %v1157_v27 = vpack.c.bf16 %v1122_v16, %v1121_v7  ;;  %7472 = vst [vmem:[#allocation73_spill] sm:$0xff] %v6117_v49 }
 0x17f   : > { %v992_v0 = vadd.f32 %v960_v61, %v796_v11  ;;  %v1091_v44 = vmul.f32 0.01, %v1027_v57  ;;  %vm1059_vm10 = vcmp.gt.f32.partialorder %v1027_v57, 0.0 }
 0x180   : > { %4786 = vmatprep.mubr.bf16.mxu1 %v1157_v27 }
 0x181   : > { %v1028_v40 = vadd.f32 %v5755_v41, %v992_v0  ;;  %v6111_v28 = vpop.permute.xlu1 %556  ;;  %v1123_v5 = vsel %vm1059_vm10, %v1027_v57, %v1091_v44  ;;  %v6123_v27 = vpop.permute.xlu0 %914 }
 0x182   : > { %7469 = vst [vmem:[#allocation70_spill] sm:$0xff] %v6111_v28  ;;  %7474 = vst [vmem:[#allocation75_spill] sm:$0xff] %v6123_v27  ;;  %v961_v16 = vmul.f32 %v5721_v13, %v6123_v27 }
 0x183   : > { %vm1060_vm11 = vcmp.gt.f32.partialorder %v1028_v40, 0.0  ;;  %v1092_v55 = vmul.f32 0.01, %v1028_v40 }
 0x185   : > { %v1124_v24 = vsel %vm1060_vm11, %v1028_v40, %v1092_v55  ;;  %v6133_v57 = vpop.permute.xlu0 %926  ;;  %v602_v55 = vmul.f32 %v5712_v10, %v6111_v28 }
 0x186   : > { %v6115_v58 = vpop.permute.xlu1 %718  ;;  %v1158_v21 = vpack.c.bf16 %v1124_v24, %v1123_v5  ;;  %7476 = vst [vmem:[#allocation77_spill] sm:$0xff] %v6133_v57  ;;  %v964_v24 = vmul.f32 %v5721_v13, %v6133_v57 }
 0x187   : > { %7471 = vst [vmem:[#allocation72_spill] sm:$0xff] %v6115_v58  ;;  %v765_v0 = vmul.f32 %v5718_v12, %v6115_v58 }
 0x188   : > { %4787 = vmatmul.mubr.bf16.gmra.mrb[8].mxu1 %v1158_v21 }
 0x189   : > { %v797_v18 = vadd.f32 %v765_v0, %v601_v63  ;;  %v766_v0 = vmul.f32 %v5718_v12, %v6113_v17 }
 0x18b   : > { %v6119_v7 = vpop.permute.xlu1 %561  ;;  %v993_v5 = vadd.f32 %v961_v16, %v797_v18  ;;  %v798_v27 = vadd.f32 %v766_v0, %v602_v55  ;;  %v767_v18 = vmul.f32 %v5718_v12, %v6117_v49 }
 0x18c   : > { %7473 = vst [vmem:[#allocation74_spill] sm:$0xff] %v6119_v7  ;;  %v603_v63 = vmul.f32 %v5712_v10, %v6119_v7 }
 0x18d   : > { %v1029_v53 = vadd.f32 %v5755_v41, %v993_v5 }
 0x18f   : > { %v6125_v61 = vpop.permute.xlu1 %566  ;;  %v1093_v0 = vmul.f32 0.01, %v1029_v53  ;;  %vm1061_vm12 = vcmp.gt.f32.partialorder %v1029_v53, 0.0 }
 0x190   : > { %7475 = vst [vmem:[#allocation76_spill] sm:$0xff] %v6125_v61  ;;  %v604_v11 = vmul.f32 %v5712_v10, %v6125_v61 }
 0x191   : > { %v1125_v7 = vsel %vm1061_vm12, %v1029_v53, %v1093_v0 }
 0x194   : > { %v6135_v40 = vpop.permute.xlu1 %730 }
 0x195   : > { %7477 = vst [vmem:[#allocation78_spill] sm:$0xff] %v6135_v40  ;;  %v768_v44 = vmul.f32 %v5718_v12, %v6135_v40 }
 0x197   : > { %v800_v21 = vadd.f32 %v768_v44, %v604_v11  ;;  %v799_v11 = vadd.f32 %v767_v18, %v603_v63 }
 0x199   : > { %v6147_v61 = vpop.permute.xlu1 %918  ;;  %v996_v40 = vadd.f32 %v964_v24, %v800_v21 }
 0x19a   : > { %7478 = vst [vmem:[#allocation79_spill] sm:$0xff] %v6147_v61  ;;  %v962_v28 = vmul.f32 %v5721_v13, %v6147_v61 }
 0x19b   : > { %v1032_v17 = vadd.f32 %v5755_v41, %v996_v40 }
 0x19c   : > { %v994_v16 = vadd.f32 %v962_v28, %v798_v27 }
 0x19d   : > { %v6154_v44 = vpop.permute.xlu1 %922  ;;  %v1096_v28 = vmul.f32 0.01, %v1032_v17  ;;  %vm1064_vm14 = vcmp.gt.f32.partialorder %v1032_v17, 0.0 }
 0x19e   : > { %7479 = vst [vmem:[#allocation80_spill] sm:$0xff] %v6154_v44  ;;  %v1030_v10 = vadd.f32 %v5755_v41, %v994_v16  ;;  %v963_v55 = vmul.f32 %v5721_v13, %v6154_v44  ;;  %v6164_v13 = vld [vmem:[%s7293_s5] sm:$0xf] }
 0x19f   : > { %v1128_v18 = vsel %vm1064_vm14, %v1032_v17, %v1096_v28 }
 0x1a0   : > { %v995_v5 = vadd.f32 %v963_v55, %v799_v11  ;;  %vm1062_vm13 = vcmp.gt.f32.partialorder %v1030_v10, 0.0  ;;  %v1094_v24 = vmul.f32 0.01, %v1030_v10 }
 0x1a2   : > { %v1031_v21 = vadd.f32 %v5755_v41, %v995_v5  ;;  %v1126_v12 = vsel %vm1062_vm13, %v1030_v10, %v1094_v24  ;;  %v6168_v41 = vrot.slane %v6164_v13, %v5693_v3 }
 0x1a3   : > { %v1159_v27 = vpack.c.bf16 %v1126_v12, %v1125_v7 }
 0x1a4   : > { %vm1063_vm15 = vcmp.gt.f32.partialorder %v1031_v21, 0.0  ;;  %v1095_v63 = vmul.f32 0.01, %v1031_v21 }
 0x1a5   : > { %4790 = vmatprep.mubr.bf16.mxu1 %v1159_v27 }
 0x1a6   : > { %v1127_v40 = vsel %vm1063_vm15, %v1031_v21, %v1095_v63 }
 0x1a7   : > { %v1160_v16 = vpack.c.bf16 %v1128_v18, %v1127_v40 }
 0x1a9   : > { %4791 = vmatmul.mubr.bf16.gmra.mrb[12].mxu1 %v1160_v16 }
 0x1ae   : > { %v4764_v53 = vpop.f32.mrb[0].mxu0 }
 0x1af   : > { %v1256_v7 = vadd.f32 %v4764_v53, %v6168_v41  ;;  %v1247_v11 = vpop.f32.mrb[1].mxu0 }
 0x1b0   : > { %v1248_v10 = vadd.f32 %v1247_v11, %v6168_v41  ;;  %v4765_v55 = vpop.f32.mrb[2].mxu0 }
 0x1b1   : > { %v1408_v0 = vmul.f32 0.01, %v1256_v7  ;;  %v1259_v17 = vadd.f32 %v4765_v55, %v6168_v41  ;;  %v1250_v5 = vpop.f32.mrb[3].mxu0  ;;  %vm1376_vm0 = vcmp.gt.f32.partialorder %v1256_v7, 0.0 }
 0x1b2   : > { %v1406_v24 = vmul.f32 0.01, %v1248_v10  ;;  %v1251_v21 = vadd.f32 %v1250_v5, %v6168_v41  ;;  %vm1374_vm1 = vcmp.gt.f32.partialorder %v1248_v10, 0.0 }
 0x1b3   : > { %vm1377_vm2 = vcmp.gt.f32.partialorder %v1259_v17, 0.0  ;;  %v1409_v12 = vmul.f32 0.01, %v1259_v17  ;;  %v1440_v27 = vsel %vm1376_vm0, %v1256_v7, %v1408_v0 }
 0x1b4   : > { %vm1375_vm3 = vcmp.gt.f32.partialorder %v1251_v21, 0.0  ;;  %v1407_v28 = vmul.f32 0.01, %v1251_v21  ;;  %v1438_v16 = vsel %vm1374_vm1, %v1248_v10, %v1406_v24 }
 0x1b5   : > { %v1441_v63 = vsel %vm1377_vm2, %v1259_v17, %v1409_v12 }
 0x1b6   : > { %v1488_v40 = vpack.c.bf16 %v1441_v63, %v1440_v27  ;;  %v4768_v18 = vpop.f32.mrb[4].mxu0  ;;  %v1439_v53 = vsel %vm1375_vm3, %v1251_v21, %v1407_v28 }
 0x1b7   : > { %v1272_v11 = vadd.f32 %v4768_v18, %v6168_v41  ;;  %v1263_v44 = vpop.f32.mrb[5].mxu0  ;;  %v1487_v55 = vpack.c.bf16 %v1439_v53, %v1438_v16 }
 0x1b8   : > { %v1264_v49 = vadd.f32 %v1263_v44, %v6168_v41  ;;  %v4769_v61 = vpop.f32.mrb[6].mxu0 }
 0x1b9   : > { %v1412_v57 = vmul.f32 0.01, %v1272_v11  ;;  %v1275_v5 = vadd.f32 %v4769_v61, %v6168_v41  ;;  %v1266_v58 = vpop.f32.mrb[7].mxu0  ;;  %4810 = vmatprep.mubr.bf16.mxu1 %v1487_v55  ;;  %vm1380_vm4 = vcmp.gt.f32.partialorder %v1272_v11, 0.0 }
 0x1ba   : > { %v1410_v25 = vmul.f32 0.01, %v1264_v49  ;;  %v1267_v7 = vadd.f32 %v1266_v58, %v6168_v41  ;;  %4811 = vmatmul.mubr.bf16.vlgmr.msra.gmra.mrb[16].mxu1 %v1488_v40  ;;  %vm1378_vm5 = vcmp.gt.f32.partialorder %v1264_v49, 0.0 }
 0x1bb   : > { %vm1381_vm6 = vcmp.gt.f32.partialorder %v1275_v5, 0.0  ;;  %v1413_v10 = vmul.f32 0.01, %v1275_v5  ;;  %v1444_v17 = vsel %vm1380_vm4, %v1272_v11, %v1412_v57 }
 0x1bc   : > { %vm1379_vm7 = vcmp.gt.f32.partialorder %v1267_v7, 0.0  ;;  %v1411_v0 = vmul.f32 0.01, %v1267_v7  ;;  %v1442_v21 = vsel %vm1378_vm5, %v1264_v49, %v1410_v25 }
 0x1bd   : > { %v1445_v24 = vsel %vm1381_vm6, %v1275_v5, %v1413_v10 }
 0x1be   : > { %v1443_v44 = vsel %vm1379_vm7, %v1267_v7, %v1411_v0  ;;  %v1490_v12 = vpack.c.bf16 %v1445_v24, %v1444_v17  ;;  %v5273_v24 = vld [vmem:[%s7291_s3] sm:$0xff]  }
 0x1bf   : > { %v1489_v28 = vpack.c.bf16 %v1443_v44, %v1442_v21  ;;  %v5274_v21 = vld [vmem:[%s7290_s2 + $0x80] sm:$0xff]   ;;  %4842 = vmatprep.subr.bf16.mxu0 %v5273_v24 }
 0x1c0   : > { %4890 = vmatprep.subr.bf16.mxu1 %v5274_v21  ;;  %4843 = vmatpush3.bf16.msra.mxu0 %v5273_v24  ;;  %v5278_v24 = vld [vmem:[%s7290_s2 + $0x90] sm:$0xff]  }
 0x1c1   : > { %4814 = vmatprep.mubr.bf16.mxu1 %v1489_v28  ;;  %4891 = vmatpush3.bf16.msra.mxu1 %v5274_v21  ;;  %v5279_v21 = vld [vmem:[%s7291_s3 + $0x18] sm:$0xff]  }
 0x1c2   : > { %4815 = vmatmul.mubr.bf16.gmra.mrb[20].mxu1 %v1490_v12 }
 0x1db   : > { %v4772_v61 = vpop.f32.mrb[8].mxu0 }
 0x1dc   : > { %v1288_v27 = vadd.f32 %v4772_v61, %v6168_v41  ;;  %v1279_v63 = vpop.f32.mrb[9].mxu0 }
 0x1dd   : > { %v1280_v58 = vadd.f32 %v1279_v63, %v6168_v41  ;;  %v4773_v40 = vpop.f32.mrb[10].mxu0 }
 0x1de   : > { %v1416_v18 = vmul.f32 0.01, %v1288_v27  ;;  %v1291_v16 = vadd.f32 %v4773_v40, %v6168_v41  ;;  %v1282_v53 = vpop.f32.mrb[11].mxu0  ;;  %vm1384_vm8 = vcmp.gt.f32.partialorder %v1288_v27, 0.0 }
 0x1df   : > { %v1414_v57 = vmul.f32 0.01, %v1280_v58  ;;  %v1283_v25 = vadd.f32 %v1282_v53, %v6168_v41  ;;  %vm1382_vm9 = vcmp.gt.f32.partialorder %v1280_v58, 0.0 }
 0x1e0   : > { %vm1385_vm10 = vcmp.gt.f32.partialorder %v1291_v16, 0.0  ;;  %v1417_v49 = vmul.f32 0.01, %v1291_v16  ;;  %v1448_v55 = vsel %vm1384_vm8, %v1288_v27, %v1416_v18 }
 0x1e1   : > { %vm1383_vm11 = vcmp.gt.f32.partialorder %v1283_v25, 0.0  ;;  %v1415_v11 = vmul.f32 0.01, %v1283_v25  ;;  %v1446_v7 = vsel %vm1382_vm9, %v1280_v58, %v1414_v57 }
 0x1e2   : > { %v1449_v5 = vsel %vm1385_vm10, %v1291_v16, %v1417_v49 }
 0x1e3   : > { %v1447_v10 = vsel %vm1383_vm11, %v1283_v25, %v1415_v11  ;;  %v1492_v0 = vpack.c.bf16 %v1449_v5, %v1448_v55 }
 0x1e4   : > { %v1491_v17 = vpack.c.bf16 %v1447_v10, %v1446_v7  ;;  %v5275_v10 = vld [vmem:[%s7291_s3 + $0x8] sm:$0xff]  }
 0x1e5   : > { %4844 = vmatprep.subr.bf16.mxu0 %v5275_v10 }
 0x1e6   : > { %4818 = vmatprep.mubr.bf16.mxu1 %v1491_v17  ;;  %4845 = vmatpush3.bf16.msra.mxu0 %v5275_v10  ;;  %v5277_v17 = vld [vmem:[%s7291_s3 + $0x10] sm:$0xff]  }
 0x1e7   : > { %4819 = vmatmul.mubr.bf16.gmra.mrb[24].mxu1 %v1492_v0  ;;  %v5276_v0 = vld [vmem:[%s7290_s2 + $0x88] sm:$0xff]   ;;  %4846 = vmatprep.subr.bf16.mxu0 %v5277_v17 }
 0x1e8   : > { %4892 = vmatprep.subr.bf16.mxu1 %v5276_v0 }
 0x1e9   : > { %4893 = vmatpush3.bf16.msra.mxu1 %v5276_v0 }
 0x1ea   : > { %4894 = vmatprep.subr.bf16.mxu1 %v5278_v24  ;;  %4847 = vmatpush3.bf16.msra.mxu0 %v5277_v17 }
 0x1eb   : > { %4848 = vmatprep.subr.bf16.mxu0 %v5279_v21 }
 0x1ed   : > { %4895 = vmatpush3.bf16.msra.mxu1 %v5278_v24 }
 0x1ee   : > { %4849 = vmatpush3.bf16.msra.mxu0 %v5279_v21 }
 0x1f0   : > { %v4776_v44 = vpop.f32.mrb[12].mxu0 }
 0x1f1   : > { %v1304_v12 = vadd.f32 %v4776_v44, %v6168_v41  ;;  %v1295_v28 = vpop.f32.mrb[13].mxu0  ;;  %v5280_v44 = vld [vmem:[%s7290_s2 + $0x98] sm:$0xff]  }
 0x1f2   : > { %v1296_v61 = vadd.f32 %v1295_v28, %v6168_v41  ;;  %v4777_v27 = vpop.f32.mrb[14].mxu0  ;;  %4896 = vmatprep.subr.bf16.mxu1 %v5280_v44  ;;  %v5282_v28 = vld [vmem:[%s7290_s2 + $0xa0] sm:$0xff]  }
 0x1f3   : > { %v1420_v63 = vmul.f32 0.01, %v1304_v12  ;;  %v1307_v58 = vadd.f32 %v4777_v27, %v6168_v41  ;;  %v1298_v40 = vpop.f32.mrb[15].mxu0  ;;  %vm1388_vm12 = vcmp.gt.f32.partialorder %v1304_v12, 0.0  ;;  %4897 = vmatpush3.bf16.msra.mxu1 %v5280_v44  ;;  %v5284_v27 = vld [vmem:[%s7290_s2 + $0xa8] sm:$0xff]  }
 0x1f4   : > { %v1418_v18 = vmul.f32 0.01, %v1296_v61  ;;  %v1299_v16 = vadd.f32 %v1298_v40, %v6168_v41  ;;  %vm1386_vm13 = vcmp.gt.f32.partialorder %v1296_v61, 0.0  ;;  %4898 = vmatprep.subr.bf16.mxu1 %v5282_v28 }
 0x1f5   : > { %vm1389_vm14 = vcmp.gt.f32.partialorder %v1307_v58, 0.0  ;;  %v1421_v53 = vmul.f32 0.01, %v1307_v58  ;;  %v1452_v25 = vsel %vm1388_vm12, %v1304_v12, %v1420_v63  ;;  %v5281_v12 = vld [vmem:[%s7291_s3 + $0x20] sm:$0xff]   ;;  %v5285_v63 = vld [vmem:[%s7291_s3 + $0x30] sm:$0xff]  }
 0x1f6   : > { %vm1387_vm15 = vcmp.gt.f32.partialorder %v1299_v16, 0.0  ;;  %v1419_v57 = vmul.f32 0.01, %v1299_v16  ;;  %v1450_v11 = vsel %vm1386_vm13, %v1296_v61, %v1418_v18  ;;  %4850 = vmatprep.subr.bf16.mxu0 %v5281_v12  ;;  %v5283_v61 = vld [vmem:[%s7291_s3 + $0x28] sm:$0xff]  }
 0x1f7   : > { %v1453_v49 = vsel %vm1389_vm14, %v1307_v58, %v1421_v53  ;;  %4851 = vmatpush3.bf16.msra.mxu0 %v5281_v12  ;;  %4899 = vmatpush3.bf16.msra.mxu1 %v5282_v28  ;;  %v5286_v58 = vld [vmem:[%s7290_s2 + $0xb0] sm:$0xff]  }
 0x1f8   : > { %v1451_v55 = vsel %vm1387_vm15, %v1299_v16, %v1419_v57  ;;  %v1494_v5 = vpack.c.bf16 %v1453_v49, %v1452_v25  ;;  %4852 = vmatprep.subr.bf16.mxu0 %v5283_v61  ;;  %4900 = vmatprep.subr.bf16.mxu1 %v5284_v27 }
 0x1f9   : > { %v1493_v7 = vpack.c.bf16 %v1451_v55, %v1450_v11  ;;  %v5287_v55 = vld [vmem:[%s7291_s3 + $0x38] sm:$0xff]  }
 0x1fb   : > { %4822 = vmatprep.mubr.bf16.mxu1 %v1493_v7  ;;  %4853 = vmatpush3.bf16.msra.mxu0 %v5283_v61 }
 0x1fc   : > { %4823 = vmatmul.mubr.bf16.gmra.mrb[28].mxu1 %v1494_v5  ;;  %4854 = vmatprep.subr.bf16.mxu0 %v5285_v63  ;;  %v5288_v5 = vld [vmem:[%s7290_s2 + $0xb8] sm:$0xff]  }
 0x1fd   : > { %4901 = vmatpush3.bf16.msra.mxu1 %v5284_v27 }
 0x1fe   : > { %4902 = vmatprep.subr.bf16.mxu1 %v5286_v58 }
 0x1ff   : > { %4855 = vmatpush3.bf16.msra.mxu0 %v5285_v63 }
 0x200   : > { %4856 = vmatprep.subr.bf16.mxu0 %v5287_v55 }
 0x201   : > { %4903 = vmatpush3.bf16.msra.mxu1 %v5286_v58 }
 0x202   : > { %4904 = vmatprep.subr.bf16.mxu1 %v5288_v5 }
 0x203   : > { %4857 = vmatpush3.bf16.msra.mxu0 %v5287_v55 }
 0x205   : > { %4905 = vmatpush3.bf16.msra.mxu1 %v5288_v5 }
 0x215   : > { %v4780_v40 = vpop.f32.mrb[0].mxu1 }
 0x216   : > { %v1320_v18 = vadd.f32 %v4780_v40, %v6168_v41  ;;  %v1311_v16 = vpop.f32.mrb[1].mxu1 }
 0x217   : > { %v1312_v53 = vadd.f32 %v1311_v16, %v6168_v41  ;;  %v4781_v57 = vpop.f32.mrb[2].mxu1 }
 0x218   : > { %v1424_v25 = vmul.f32 0.01, %v1320_v18  ;;  %v1323_v49 = vadd.f32 %v4781_v57, %v6168_v41  ;;  %v1314_v11 = vpop.f32.mrb[3].mxu1  ;;  %vm1392_vm0 = vcmp.gt.f32.partialorder %v1320_v18, 0.0 }
 0x219   : > { %v1422_v7 = vmul.f32 0.01, %v1312_v53  ;;  %v1315_v10 = vadd.f32 %v1314_v11, %v6168_v41  ;;  %vm1390_vm1 = vcmp.gt.f32.partialorder %v1312_v53, 0.0 }
 0x21a   : > { %vm1393_vm2 = vcmp.gt.f32.partialorder %v1323_v49, 0.0  ;;  %v1425_v0 = vmul.f32 0.01, %v1323_v49  ;;  %v1456_v24 = vsel %vm1392_vm0, %v1320_v18, %v1424_v25 }
 0x21b   : > { %vm1391_vm3 = vcmp.gt.f32.partialorder %v1315_v10, 0.0  ;;  %v1423_v17 = vmul.f32 0.01, %v1315_v10  ;;  %v1454_v44 = vsel %vm1390_vm1, %v1312_v53, %v1422_v7 }
 0x21c   : > { %v1457_v21 = vsel %vm1393_vm2, %v1323_v49, %v1425_v0 }
 0x21d   : > { %v1455_v12 = vsel %vm1391_vm3, %v1315_v10, %v1423_v17  ;;  %v1496_v28 = vpack.c.bf16 %v1457_v21, %v1456_v24 }
 0x21e   : > { %v1495_v61 = vpack.c.bf16 %v1455_v12, %v1454_v44 }
 0x220   : > { %4826 = vmatprep.mubr.bf16.mxu1 %v1495_v61 }
 0x221   : > { %4827 = vmatmul.mubr.bf16.gmra.mrb[32].mxu1 %v1496_v28 }
 0x236   : > { %v4784_v27 = vpop.f32.mrb[4].mxu1 }
 0x237   : > { %v1336_v63 = vadd.f32 %v4784_v27, %v6168_v41  ;;  %v1327_v58 = vpop.f32.mrb[5].mxu1 }
 0x238   : > { %v1328_v40 = vadd.f32 %v1327_v58, %v6168_v41  ;;  %v4785_v16 = vpop.f32.mrb[6].mxu1 }
 0x239   : > { %v1428_v57 = vmul.f32 0.01, %v1336_v63  ;;  %v1339_v11 = vadd.f32 %v4785_v16, %v6168_v41  ;;  %v1330_v55 = vpop.f32.mrb[7].mxu1  ;;  %vm1396_vm4 = vcmp.gt.f32.partialorder %v1336_v63, 0.0 }
 0x23a   : > { %v1426_v18 = vmul.f32 0.01, %v1328_v40  ;;  %v1331_v53 = vadd.f32 %v1330_v55, %v6168_v41  ;;  %vm1394_vm5 = vcmp.gt.f32.partialorder %v1328_v40, 0.0 }
 0x23b   : > { %vm1397_vm6 = vcmp.gt.f32.partialorder %v1339_v11, 0.0  ;;  %v1429_v25 = vmul.f32 0.01, %v1339_v11  ;;  %v1460_v5 = vsel %vm1396_vm4, %v1336_v63, %v1428_v57 }
 0x23c   : > { %vm1395_vm7 = vcmp.gt.f32.partialorder %v1331_v53, 0.0  ;;  %v1427_v49 = vmul.f32 0.01, %v1331_v53  ;;  %v1458_v10 = vsel %vm1394_vm5, %v1328_v40, %v1426_v18 }
 0x23d   : > { %v1461_v7 = vsel %vm1397_vm6, %v1339_v11, %v1429_v25 }
 0x23e   : > { %v1459_v0 = vsel %vm1395_vm7, %v1331_v53, %v1427_v49  ;;  %v1498_v17 = vpack.c.bf16 %v1461_v7, %v1460_v5 }
 0x23f   : > { %v1497_v24 = vpack.c.bf16 %v1459_v0, %v1458_v10 }
 0x241   : > { %4830 = vmatprep.mubr.bf16.mxu1 %v1497_v24 }
 0x242   : > { %4831 = vmatmul.mubr.bf16.gmra.mrb[36].mxu1 %v1498_v17 }
 0x25b   : > { %v4788_v21 = vpop.f32.mrb[8].mxu1 }
 0x25c   : > { %v1352_v44 = vadd.f32 %v4788_v21, %v6168_v41  ;;  %v1343_v12 = vpop.f32.mrb[9].mxu1 }
 0x25d   : > { %v1344_v28 = vadd.f32 %v1343_v12, %v6168_v41  ;;  %v4789_v61 = vpop.f32.mrb[10].mxu1 }
 0x25e   : > { %v1432_v27 = vmul.f32 0.01, %v1352_v44  ;;  %v1355_v58 = vadd.f32 %v4789_v61, %v6168_v41  ;;  %v1346_v16 = vpop.f32.mrb[11].mxu1  ;;  %vm1400_vm8 = vcmp.gt.f32.partialorder %v1352_v44, 0.0 }
 0x25f   : > { %v1430_v63 = vmul.f32 0.01, %v1344_v28  ;;  %v1347_v40 = vadd.f32 %v1346_v16, %v6168_v41  ;;  %vm1398_vm9 = vcmp.gt.f32.partialorder %v1344_v28, 0.0 }
 0x260   : > { %vm1401_vm10 = vcmp.gt.f32.partialorder %v1355_v58, 0.0  ;;  %v1433_v57 = vmul.f32 0.01, %v1355_v58  ;;  %v1464_v55 = vsel %vm1400_vm8, %v1352_v44, %v1432_v27 }
 0x261   : > { %vm1399_vm11 = vcmp.gt.f32.partialorder %v1347_v40, 0.0  ;;  %v1431_v11 = vmul.f32 0.01, %v1347_v40  ;;  %v1462_v53 = vsel %vm1398_vm9, %v1344_v28, %v1430_v63 }
 0x262   : > { %v1465_v18 = vsel %vm1401_vm10, %v1355_v58, %v1433_v57 }
 0x263   : > { %v1463_v25 = vsel %vm1399_vm11, %v1347_v40, %v1431_v11  ;;  %v1500_v49 = vpack.c.bf16 %v1465_v18, %v1464_v55  ;;  %v6252_v18 = vrot.slane %v6164_v13, %v5699_v4 }
 0x264   : > { %v1499_v5 = vpack.c.bf16 %v1463_v25, %v1462_v53 }
 0x266   : > { %4834 = vmatprep.mubr.bf16.mxu1 %v1499_v5 }
 0x267   : > { %4835 = vmatmul.mubr.bf16.gmra.mrb[40].mxu1 %v1500_v49 }
 0x27c   : > { %v4792_v7 = vpop.f32.mrb[12].mxu1 }
 0x27d   : > { %v1368_v10 = vadd.f32 %v4792_v7, %v6168_v41  ;;  %v1359_v0 = vpop.f32.mrb[13].mxu1 }
 0x27e   : > { %v1360_v17 = vadd.f32 %v1359_v0, %v6168_v41  ;;  %v4793_v24 = vpop.f32.mrb[14].mxu1 }
 0x27f   : > { %v1436_v21 = vmul.f32 0.01, %v1368_v10  ;;  %v1371_v12 = vadd.f32 %v4793_v24, %v6168_v41  ;;  %v1362_v61 = vpop.f32.mrb[15].mxu1  ;;  %vm1404_vm12 = vcmp.gt.f32.partialorder %v1368_v10, 0.0 }
 0x280   : > { %v1434_v44 = vmul.f32 0.01, %v1360_v17  ;;  %v1363_v28 = vadd.f32 %v1362_v61, %v6168_v41  ;;  %vm1402_vm13 = vcmp.gt.f32.partialorder %v1360_v17, 0.0 }
 0x281   : > { %vm1405_vm14 = vcmp.gt.f32.partialorder %v1371_v12, 0.0  ;;  %v1437_v27 = vmul.f32 0.01, %v1371_v12  ;;  %v1468_v16 = vsel %vm1404_vm12, %v1368_v10, %v1436_v21 }
 0x282   : > { %vm1403_vm15 = vcmp.gt.f32.partialorder %v1363_v28, 0.0  ;;  %v1435_v58 = vmul.f32 0.01, %v1363_v28  ;;  %v1466_v40 = vsel %vm1402_vm13, %v1360_v17, %v1434_v44 }
 0x283   : > { %v1469_v63 = vsel %vm1405_vm14, %v1371_v12, %v1437_v27 }
 0x284   : > { %v1467_v57 = vsel %vm1403_vm15, %v1363_v28, %v1435_v58  ;;  %v1502_v11 = vpack.c.bf16 %v1469_v63, %v1468_v16 }
 0x285   : > { %v1501_v55 = vpack.c.bf16 %v1467_v57, %v1466_v40 }
 0x287   : > { %4838 = vmatprep.mubr.bf16.mxu1 %v1501_v55 }
 0x288   : > { %4839 = vmatmul.mubr.bf16.gmra.mrb[44].mxu1 %v1502_v11 }
 0x28d   : > { %v4812_v53 = vpop.f32.mrb[16].mxu1 }
 0x28e   : > { %v1598_v41 = vadd.f32 %v4812_v53, %v6252_v18  ;;  %v1589_v25 = vpop.f32.mrb[17].mxu1 }
 0x28f   : > { %v1590_v49 = vadd.f32 %v1589_v25, %v6252_v18  ;;  %v4813_v5 = vpop.f32.mrb[18].mxu1 }
 0x290   : > { %v1750_v7 = vmul.f32 0.01, %v1598_v41  ;;  %v1601_v10 = vadd.f32 %v4813_v5, %v6252_v18  ;;  %v1592_v0 = vpop.f32.mrb[19].mxu1  ;;  %vm1718_vm0 = vcmp.gt.f32.partialorder %v1598_v41, 0.0 }
 0x291   : > { %v1748_v17 = vmul.f32 0.01, %v1590_v49  ;;  %v1593_v24 = vadd.f32 %v1592_v0, %v6252_v18  ;;  %vm1716_vm1 = vcmp.gt.f32.partialorder %v1590_v49, 0.0 }
 0x292   : > { %vm1719_vm2 = vcmp.gt.f32.partialorder %v1601_v10, 0.0  ;;  %v1751_v21 = vmul.f32 0.01, %v1601_v10  ;;  %v1782_v12 = vsel %vm1718_vm0, %v1598_v41, %v1750_v7 }
 0x293   : > { %vm1717_vm3 = vcmp.gt.f32.partialorder %v1593_v24, 0.0  ;;  %v1749_v13 = vmul.f32 0.01, %v1593_v24  ;;  %v1780_v27 = vsel %vm1716_vm1, %v1590_v49, %v1748_v17 }
 0x294   : > { %v1783_v61 = vsel %vm1719_vm2, %v1601_v10, %v1751_v21 }
 0x295   : > { %v1829_v44 = vpack.c.bf16 %v1783_v61, %v1782_v12  ;;  %v4816_v28 = vpop.f32.mrb[20].mxu1  ;;  %v1781_v58 = vsel %vm1717_vm3, %v1593_v24, %v1749_v13 }
 0x296   : > { %v1614_v16 = vadd.f32 %v4816_v28, %v6252_v18  ;;  %v1605_v63 = vpop.f32.mrb[21].mxu1  ;;  %v1828_v40 = vpack.c.bf16 %v1781_v58, %v1780_v27 }
 0x297   : > { %v1606_v57 = vadd.f32 %v1605_v63, %v6252_v18  ;;  %v4817_v11 = vpop.f32.mrb[22].mxu1 }
 0x298   : > { %v1754_v55 = vmul.f32 0.01, %v1614_v16  ;;  %v1617_v53 = vadd.f32 %v4817_v11, %v6252_v18  ;;  %v1608_v25 = vpop.f32.mrb[23].mxu1  ;;  %4858 = vmatprep.mubr.bf16.mxu0 %v1828_v40  ;;  %4906 = vmatprep.mubr.bf16.mxu1 %v1828_v40  ;;  %vm1722_vm4 = vcmp.gt.f32.partialorder %v1614_v16, 0.0 }
 0x299   : > { %v1752_v41 = vmul.f32 0.01, %v1606_v57  ;;  %v1609_v5 = vadd.f32 %v1608_v25, %v6252_v18  ;;  %4859 = vmatmul.mubr.bf16.vlgmr.msra.gmra.mrb[16].mxu0 %v1829_v44  ;;  %4907 = vmatmul.mubr.bf16.vlgmr.msra.gmra.mrb[48].mxu1 %v1829_v44  ;;  %vm1720_vm5 = vcmp.gt.f32.partialorder %v1606_v57, 0.0 }
 0x29a   : > { %vm1723_vm6 = vcmp.gt.f32.partialorder %v1617_v53, 0.0  ;;  %v1755_v49 = vmul.f32 0.01, %v1617_v53  ;;  %v1786_v10 = vsel %vm1722_vm4, %v1614_v16, %v1754_v55 }
 0x29b   : > { %vm1721_vm7 = vcmp.gt.f32.partialorder %v1609_v5, 0.0  ;;  %v1753_v7 = vmul.f32 0.01, %v1609_v5  ;;  %v1784_v17 = vsel %vm1720_vm5, %v1606_v57, %v1752_v41 }
 0x29c   : > { %v1787_v0 = vsel %vm1723_vm6, %v1617_v53, %v1755_v49 }
 0x29d   : > { %v1785_v24 = vsel %vm1721_vm7, %v1609_v5, %v1753_v7  ;;  %v1831_v21 = vpack.c.bf16 %v1787_v0, %v1786_v10 }
 0x29e   : > { %v1830_v13 = vpack.c.bf16 %v1785_v24, %v1784_v17 }
 0x2a0   : > { %4862 = vmatprep.mubr.bf16.mxu0 %v1830_v13  ;;  %4910 = vmatprep.mubr.bf16.mxu1 %v1830_v13 }
 0x2a1   : > { %4863 = vmatmul.mubr.bf16.gmra.mrb[20].mxu0 %v1831_v21  ;;  %4911 = vmatmul.mubr.bf16.gmra.mrb[52].mxu1 %v1831_v21 }
 0x2ba   : > { %v4820_v12 = vpop.f32.mrb[24].mxu1 }
 0x2bb   : > { %v1630_v61 = vadd.f32 %v4820_v12, %v6252_v18  ;;  %v1621_v28 = vpop.f32.mrb[25].mxu1 }
 0x2bc   : > { %v1622_v44 = vadd.f32 %v1621_v28, %v6252_v18  ;;  %v4821_v27 = vpop.f32.mrb[26].mxu1 }
 0x2bd   : > { %v1758_v58 = vmul.f32 0.01, %v1630_v61  ;;  %v1633_v63 = vadd.f32 %v4821_v27, %v6252_v18  ;;  %v1624_v16 = vpop.f32.mrb[27].mxu1  ;;  %vm1726_vm8 = vcmp.gt.f32.partialorder %v1630_v61, 0.0 }
 0x2be   : > { %v1756_v40 = vmul.f32 0.01, %v1622_v44  ;;  %v1625_v57 = vadd.f32 %v1624_v16, %v6252_v18  ;;  %vm1724_vm9 = vcmp.gt.f32.partialorder %v1622_v44, 0.0 }
 0x2bf   : > { %vm1727_vm10 = vcmp.gt.f32.partialorder %v1633_v63, 0.0  ;;  %v1759_v11 = vmul.f32 0.01, %v1633_v63  ;;  %v1790_v53 = vsel %vm1726_vm8, %v1630_v61, %v1758_v58 }
 0x2c0   : > { %vm1725_vm11 = vcmp.gt.f32.partialorder %v1625_v57, 0.0  ;;  %v1757_v55 = vmul.f32 0.01, %v1625_v57  ;;  %v1788_v41 = vsel %vm1724_vm9, %v1622_v44, %v1756_v40 }
 0x2c1   : > { %v1791_v25 = vsel %vm1727_vm10, %v1633_v63, %v1759_v11 }
 0x2c2   : > { %v1789_v5 = vsel %vm1725_vm11, %v1625_v57, %v1757_v55  ;;  %v1833_v49 = vpack.c.bf16 %v1791_v25, %v1790_v53 }
 0x2c3   : > { %v1832_v7 = vpack.c.bf16 %v1789_v5, %v1788_v41 }
 0x2c5   : > { %4866 = vmatprep.mubr.bf16.mxu0 %v1832_v7  ;;  %4914 = vmatprep.mubr.bf16.mxu1 %v1832_v7 }
 0x2c6   : > { %4867 = vmatmul.mubr.bf16.gmra.mrb[24].mxu0 %v1833_v49  ;;  %4915 = vmatmul.mubr.bf16.gmra.mrb[56].mxu1 %v1833_v49 }
 0x2cf   : > { %v4824_v10 = vpop.f32.mrb[28].mxu1 }
 0x2d0   : > { %v1646_v0 = vadd.f32 %v4824_v10, %v6252_v18  ;;  %v1637_v17 = vpop.f32.mrb[29].mxu1 }
 0x2d1   : > { %v1638_v24 = vadd.f32 %v1637_v17, %v6252_v18  ;;  %v4825_v21 = vpop.f32.mrb[30].mxu1 }
 0x2d2   : > { %v1762_v13 = vmul.f32 0.01, %v1646_v0  ;;  %v1649_v12 = vadd.f32 %v4825_v21, %v6252_v18  ;;  %v1640_v61 = vpop.f32.mrb[31].mxu1  ;;  %vm1730_vm12 = vcmp.gt.f32.partialorder %v1646_v0, 0.0 }
 0x2d3   : > { %v1760_v28 = vmul.f32 0.01, %v1638_v24  ;;  %v1641_v44 = vadd.f32 %v1640_v61, %v6252_v18  ;;  %vm1728_vm13 = vcmp.gt.f32.partialorder %v1638_v24, 0.0 }
 0x2d4   : > { %vm1731_vm14 = vcmp.gt.f32.partialorder %v1649_v12, 0.0  ;;  %v1763_v27 = vmul.f32 0.01, %v1649_v12  ;;  %v1794_v63 = vsel %vm1730_vm12, %v1646_v0, %v1762_v13 }
 0x2d5   : > { %vm1729_vm15 = vcmp.gt.f32.partialorder %v1641_v44, 0.0  ;;  %v1761_v58 = vmul.f32 0.01, %v1641_v44  ;;  %v1792_v40 = vsel %vm1728_vm13, %v1638_v24, %v1760_v28 }
 0x2d6   : > { %v1795_v16 = vsel %vm1731_vm14, %v1649_v12, %v1763_v27 }
 0x2d7   : > { %v1793_v57 = vsel %vm1729_vm15, %v1641_v44, %v1761_v58  ;;  %v1835_v11 = vpack.c.bf16 %v1795_v16, %v1794_v63 }
 0x2d8   : > { %v1834_v55 = vpack.c.bf16 %v1793_v57, %v1792_v40 }
 0x2da   : > { %4870 = vmatprep.mubr.bf16.mxu0 %v1834_v55  ;;  %4918 = vmatprep.mubr.bf16.mxu1 %v1834_v55 }
 0x2db   : > { %4871 = vmatmul.mubr.bf16.gmra.mrb[28].mxu0 %v1835_v11  ;;  %4919 = vmatmul.mubr.bf16.gmra.mrb[60].mxu1 %v1835_v11 }
 0x2f4   : > { %v4828_v53 = vpop.f32.mrb[32].mxu1 }
 0x2f5   : > { %v1662_v25 = vadd.f32 %v4828_v53, %v6252_v18  ;;  %v1653_v41 = vpop.f32.mrb[33].mxu1 }
 0x2f6   : > { %v1654_v5 = vadd.f32 %v1653_v41, %v6252_v18  ;;  %v4829_v49 = vpop.f32.mrb[34].mxu1 }
 0x2f7   : > { %v1766_v7 = vmul.f32 0.01, %v1662_v25  ;;  %v1665_v10 = vadd.f32 %v4829_v49, %v6252_v18  ;;  %v1656_v0 = vpop.f32.mrb[35].mxu1  ;;  %vm1734_vm0 = vcmp.gt.f32.partialorder %v1662_v25, 0.0 }
 0x2f8   : > { %v1764_v17 = vmul.f32 0.01, %v1654_v5  ;;  %v1657_v24 = vadd.f32 %v1656_v0, %v6252_v18  ;;  %vm1732_vm1 = vcmp.gt.f32.partialorder %v1654_v5, 0.0 }
 0x2f9   : > { %vm1735_vm2 = vcmp.gt.f32.partialorder %v1665_v10, 0.0  ;;  %v1767_v21 = vmul.f32 0.01, %v1665_v10  ;;  %v1798_v12 = vsel %vm1734_vm0, %v1662_v25, %v1766_v7 }
 0x2fa   : > { %vm1733_vm3 = vcmp.gt.f32.partialorder %v1657_v24, 0.0  ;;  %v1765_v13 = vmul.f32 0.01, %v1657_v24  ;;  %v1796_v28 = vsel %vm1732_vm1, %v1654_v5, %v1764_v17 }
 0x2fb   : > { %v1799_v61 = vsel %vm1735_vm2, %v1665_v10, %v1767_v21 }
 0x2fc   : > { %v1797_v44 = vsel %vm1733_vm3, %v1657_v24, %v1765_v13  ;;  %v1837_v27 = vpack.c.bf16 %v1799_v61, %v1798_v12 }
 0x2fd   : > { %v1836_v58 = vpack.c.bf16 %v1797_v44, %v1796_v28 }
 0x2ff   : > { %4874 = vmatprep.mubr.bf16.mxu0 %v1836_v58  ;;  %4922 = vmatprep.mubr.bf16.mxu1 %v1836_v58 }
 0x300   : > { %4875 = vmatmul.mubr.bf16.gmra.mrb[32].mxu0 %v1837_v27  ;;  %4923 = vmatmul.mubr.bf16.gmra.mrb[64].mxu1 %v1837_v27 }
 0x315   : > { %v4832_v63 = vpop.f32.mrb[36].mxu1 }
 0x316   : > { %v1678_v16 = vadd.f32 %v4832_v63, %v6252_v18  ;;  %v1669_v40 = vpop.f32.mrb[37].mxu1 }
 0x317   : > { %v1670_v57 = vadd.f32 %v1669_v40, %v6252_v18  ;;  %v4833_v11 = vpop.f32.mrb[38].mxu1 }
 0x318   : > { %v1770_v55 = vmul.f32 0.01, %v1678_v16  ;;  %v1681_v53 = vadd.f32 %v4833_v11, %v6252_v18  ;;  %v1672_v25 = vpop.f32.mrb[39].mxu1  ;;  %vm1738_vm4 = vcmp.gt.f32.partialorder %v1678_v16, 0.0 }
 0x319   : > { %v1768_v41 = vmul.f32 0.01, %v1670_v57  ;;  %v1673_v5 = vadd.f32 %v1672_v25, %v6252_v18  ;;  %vm1736_vm5 = vcmp.gt.f32.partialorder %v1670_v57, 0.0 }
 0x31a   : > { %vm1739_vm6 = vcmp.gt.f32.partialorder %v1681_v53, 0.0  ;;  %v1771_v49 = vmul.f32 0.01, %v1681_v53  ;;  %v1802_v10 = vsel %vm1738_vm4, %v1678_v16, %v1770_v55 }
 0x31b   : > { %vm1737_vm7 = vcmp.gt.f32.partialorder %v1673_v5, 0.0  ;;  %v1769_v7 = vmul.f32 0.01, %v1673_v5  ;;  %v1800_v17 = vsel %vm1736_vm5, %v1670_v57, %v1768_v41 }
 0x31c   : > { %v1803_v0 = vsel %vm1739_vm6, %v1681_v53, %v1771_v49 }
 0x31d   : > { %v1801_v24 = vsel %vm1737_vm7, %v1673_v5, %v1769_v7  ;;  %v1839_v21 = vpack.c.bf16 %v1803_v0, %v1802_v10 }
 0x31e   : > { %v1838_v13 = vpack.c.bf16 %v1801_v24, %v1800_v17 }
 0x320   : > { %4878 = vmatprep.mubr.bf16.mxu0 %v1838_v13  ;;  %4926 = vmatprep.mubr.bf16.mxu1 %v1838_v13 }
 0x321   : > { %4879 = vmatmul.mubr.bf16.gmra.mrb[36].mxu0 %v1839_v21  ;;  %4927 = vmatmul.mubr.bf16.gmra.mrb[68].mxu1 %v1839_v21 }
 0x33a   : > { %v4836_v12 = vpop.f32.mrb[40].mxu1 }
 0x33b   : > { %v1694_v61 = vadd.f32 %v4836_v12, %v6252_v18  ;;  %v1685_v28 = vpop.f32.mrb[41].mxu1 }
 0x33c   : > { %v1686_v44 = vadd.f32 %v1685_v28, %v6252_v18  ;;  %v4837_v27 = vpop.f32.mrb[42].mxu1 }
 0x33d   : > { %v1774_v58 = vmul.f32 0.01, %v1694_v61  ;;  %v1697_v63 = vadd.f32 %v4837_v27, %v6252_v18  ;;  %v1688_v16 = vpop.f32.mrb[43].mxu1  ;;  %vm1742_vm8 = vcmp.gt.f32.partialorder %v1694_v61, 0.0 }
 0x33e   : > { %v1772_v40 = vmul.f32 0.01, %v1686_v44  ;;  %v1689_v57 = vadd.f32 %v1688_v16, %v6252_v18  ;;  %vm1740_vm9 = vcmp.gt.f32.partialorder %v1686_v44, 0.0 }
 0x33f   : > { %vm1743_vm10 = vcmp.gt.f32.partialorder %v1697_v63, 0.0  ;;  %v1775_v11 = vmul.f32 0.01, %v1697_v63  ;;  %v1806_v53 = vsel %vm1742_vm8, %v1694_v61, %v1774_v58 }
 0x340   : > { %vm1741_vm11 = vcmp.gt.f32.partialorder %v1689_v57, 0.0  ;;  %v1773_v55 = vmul.f32 0.01, %v1689_v57  ;;  %v1804_v41 = vsel %vm1740_vm9, %v1686_v44, %v1772_v40 }
 0x341   : > { %v1807_v25 = vsel %vm1743_vm10, %v1697_v63, %v1775_v11 }
 0x342   : > { %v1805_v5 = vsel %vm1741_vm11, %v1689_v57, %v1773_v55  ;;  %v1841_v49 = vpack.c.bf16 %v1807_v25, %v1806_v53  ;;  %v407_v53 = vld [vmem:[%s7294_s6] sm:$0x3] }
 0x343   : > { %v1840_v7 = vpack.c.bf16 %v1805_v5, %v1804_v41 }
 0x345   : > { %4882 = vmatprep.mubr.bf16.mxu0 %v1840_v7  ;;  %4930 = vmatprep.mubr.bf16.mxu1 %v1840_v7 }
 0x346   : > { %4883 = vmatmul.mubr.bf16.gmra.mrb[40].mxu0 %v1841_v49  ;;  %4931 = vmatmul.mubr.bf16.gmra.mrb[72].mxu1 %v1841_v49 }
 0x35b   : > { %v4840_v10 = vpop.f32.mrb[44].mxu1 }
 0x35c   : > { %v1710_v0 = vadd.f32 %v4840_v10, %v6252_v18  ;;  %v1701_v17 = vpop.f32.mrb[45].mxu1 }
 0x35d   : > { %v1702_v24 = vadd.f32 %v1701_v17, %v6252_v18  ;;  %v4841_v21 = vpop.f32.mrb[46].mxu1 }
 0x35e   : > { %v1778_v13 = vmul.f32 0.01, %v1710_v0  ;;  %v1713_v12 = vadd.f32 %v4841_v21, %v6252_v18  ;;  %v1704_v61 = vpop.f32.mrb[47].mxu1  ;;  %vm1746_vm12 = vcmp.gt.f32.partialorder %v1710_v0, 0.0 }
 0x35f   : > { %v1776_v28 = vmul.f32 0.01, %v1702_v24  ;;  %v1705_v44 = vadd.f32 %v1704_v61, %v6252_v18  ;;  %vm1744_vm13 = vcmp.gt.f32.partialorder %v1702_v24, 0.0  ;;  %v6290_v18 = vrot.slane %v407_v53, %v5693_v3  ;;  %v5290_v53 = vld [vmem:[%s7290_s2 + $0xc8] sm:$0xff]  }
 0x360   : > { %vm1747_vm14 = vcmp.gt.f32.partialorder %v1713_v12, 0.0  ;;  %v1779_v27 = vmul.f32 0.01, %v1713_v12  ;;  %v1810_v63 = vsel %vm1746_vm12, %v1710_v0, %v1778_v13 }
 0x361   : > { %vm1745_vm15 = vcmp.gt.f32.partialorder %v1705_v44, 0.0  ;;  %v1777_v58 = vmul.f32 0.01, %v1705_v44  ;;  %v1808_v40 = vsel %vm1744_vm13, %v1702_v24, %v1776_v28 }
 0x362   : > { %v1811_v16 = vsel %vm1747_vm14, %v1713_v12, %v1779_v27 }
 0x363   : > { %v1809_v57 = vsel %vm1745_vm15, %v1705_v44, %v1777_v58  ;;  %v1843_v11 = vpack.c.bf16 %v1811_v16, %v1810_v63 }
 0x364   : > { %v1842_v55 = vpack.c.bf16 %v1809_v57, %v1808_v40 }
 0x366   : > { %4886 = vmatprep.mubr.bf16.mxu0 %v1842_v55  ;;  %4934 = vmatprep.mubr.bf16.mxu1 %v1842_v55 }
 0x367   : > { %4887 = vmatmul.mubr.bf16.gmra.mrb[44].mxu0 %v1843_v11  ;;  %4935 = vmatmul.mubr.bf16.gmra.mrb[76].mxu1 %v1843_v11  ;;  %v5289_v11 = vld [vmem:[%s7290_s2 + $0xc0] sm:$0xff]  }
 0x368   : > { %4938 = vmatprep.subr.bf16.mxu0 %v5289_v11 }
 0x369   : > { %4939 = vmatpush3.bf16.msra.mxu0 %v5289_v11 }
 0x36a   : > { %4940 = vmatprep.subr.bf16.mxu0 %v5290_v53 }
 0x36c   : > { %v4860_v25 = vpop.f32.mrb[16].mxu0  ;;  %v6292_v41 = vpop.f32.mrb[48].mxu1 }
 0x36d   : > { %v6295_v5 = vadd.f32 %v4860_v25, %v6290_v18  ;;  %v1930_v49 = vpop.f32.mrb[17].mxu0  ;;  %v6297_v7 = vpop.f32.mrb[49].mxu1  ;;  %v5291_v25 = vld [vmem:[%s7290_s2 + $0xd0] sm:$0xff]   ;;  %4941 = vmatpush3.bf16.msra.mxu0 %v5290_v53 }
 0x36e   : > { %v4861_v10 = vpop.f32.mrb[18].mxu0  ;;  %v6299_v0 = vpop.f32.mrb[50].mxu1  ;;  %v6306_v21 = vadd.f32 %v1930_v49, %v6290_v18  ;;  %4942 = vmatprep.subr.bf16.mxu0 %v5291_v25 }
 0x36f   : > { %7480 = vst [vmem:[#allocation81_spill] sm:$0xff] %v6295_v5  ;;  %v6301_v17 = vpop.f32.mrb[51].mxu1  ;;  %2546 = vperm.xlu1 %5168, %v6295_v5   ;;  %2157 = vperm.xlu0 %5169, %v6295_v5   ;;  %v1933_v24 = vpop.f32.mrb[19].mxu0  ;;  %v6332_v40 = vadd.f32 %v4861_v10, %v6290_v18  ;;  %v5292_v10 = vld [vmem:[%s7290_s2 + $0xd8] sm:$0xff]  }
 0x370   : > { %7481 = vst [vmem:[#allocation82_spill] sm:$0xff] %v6306_v21  ;;  %v6319_v58 = vadd.f32 %v1933_v24, %v6290_v18 }
 0x371   : > { %7483 = vst [vmem:[#allocation84_spill] sm:$0xff] %v6332_v40  ;;  %4943 = vmatpush3.bf16.msra.mxu0 %v5291_v25 }
 0x372   : > { %7482 = vst [vmem:[#allocation83_spill] sm:$0xff] %v6319_v58  ;;  %4944 = vmatprep.subr.bf16.mxu0 %v5292_v10 }
 0x373   : > { %5171 = vset.pattern.permute.xlu1 %v7422_v33  ;;  %5170 = vset.pattern.permute.xlu0 %v7425_v29 }
 0x374   : > { %v6310_v13 = vpop.f32.mrb[52].mxu1  ;;  %2350 = vperm.xlu0 %5170, %v6295_v5   ;;  %v4864_v12 = vpop.f32.mrb[20].mxu0  ;;  %2147 = vperm.xlu1 %5171, %v6306_v21   ;;  %v5294_v5 = vld [vmem:[%s7290_s2 + $0xe8] sm:$0xff]  }
 0x375   : > { %v1946_v61 = vpop.f32.mrb[21].mxu0  ;;  %v6314_v28 = vpop.f32.mrb[53].mxu1  ;;  %v6335_v57 = vadd.f32 %v4864_v12, %v6290_v18  ;;  %v5293_v12 = vld [vmem:[%s7290_s2 + $0xe0] sm:$0xff]   ;;  %4945 = vmatpush3.bf16.msra.mxu0 %v5292_v10  ;;  %v5295_v10 = vld [vmem:[%s7290_s2 + $0xf0] sm:$0xff]  }
 0x376   : > { %v4865_v44 = vpop.f32.mrb[22].mxu0  ;;  %v6316_v27 = vpop.f32.mrb[54].mxu1  ;;  %v6345_v55 = vadd.f32 %v1946_v61, %v6290_v18  ;;  %4946 = vmatprep.subr.bf16.mxu0 %v5293_v12 }
 0x377   : > { %v1949_v63 = vpop.f32.mrb[23].mxu0  ;;  %v6321_v16 = vpop.f32.mrb[55].mxu1  ;;  %7484 = vst [vmem:[#allocation85_spill] sm:$0xff] %v6335_v57  ;;  %v6362_v49 = vadd.f32 %v4865_v44, %v6290_v18 }
 0x378   : > { %5177 = vset.pattern.permute.xlu0 %v7422_v33  ;;  %5172 = vset.pattern.permute.xlu1 %v7425_v29  ;;  %7485 = vst [vmem:[#allocation86_spill] sm:$0xff] %v6345_v55  ;;  %v6371_v24 = vadd.f32 %v1949_v63, %v6290_v18 }
 0x379   : > { %2152 = vperm.xlu0 %5177, %v6319_v58   ;;  %2342 = vperm.xlu1 %5172, %v6306_v21   ;;  %7486 = vst [vmem:[#allocation87_spill] sm:$0xff] %v6362_v49 }
 0x37a   : > { %7487 = vst [vmem:[#allocation88_spill] sm:$0xff] %v6371_v24  ;;  %4947 = vmatpush3.bf16.msra.mxu0 %v5293_v12  ;;  %v5296_v12 = vld [vmem:[%s7290_s2 + $0xf8] sm:$0xff]  }
 0x37b   : > { %4948 = vmatprep.subr.bf16.mxu0 %v5294_v5 }
 0x37d   : > { %5179 = vset.pattern.permute.xlu0 %v7418_v23  ;;  %5173 = vset.pattern.permute.xlu1 %v7418_v23 }
 0x37e   : > { %2542 = vperm.xlu0 %5179, %v6319_v58   ;;  %2538 = vperm.xlu1 %5173, %v6306_v21  }
 0x37f   : > { %4949 = vmatpush3.bf16.msra.mxu0 %v5294_v5 }
 0x380   : > { %4950 = vmatprep.subr.bf16.mxu0 %v5295_v10 }
 0x382   : > { %5181 = vset.pattern.permute.xlu0 %v7425_v29  ;;  %5174 = vset.pattern.permute.xlu1 %v7422_v33 }
 0x383   : > { %2366 = vperm.xlu0 %5181, %v6335_v57   ;;  %2162 = vperm.xlu1 %5174, %v6332_v40  }
 0x384   : > { %4951 = vmatpush3.bf16.msra.mxu0 %v5295_v10 }
 0x385   : > { %4952 = vmatprep.subr.bf16.mxu0 %v5296_v12 }
 0x387   : > { %5183 = vset.pattern.permute.xlu0 %v7422_v33  ;;  %5175 = vset.pattern.permute.xlu1 %v7425_v29 }
 0x388   : > { %2167 = vperm.xlu0 %5183, %v6345_v55   ;;  %2354 = vperm.xlu1 %5175, %v6332_v40  }
 0x389   : > { %4953 = vmatpush3.bf16.msra.mxu0 %v5296_v12 }
 0x38c   : > { %5185 = vset.pattern.permute.xlu0 %v7418_v23  ;;  %5176 = vset.pattern.permute.xlu1 %v7418_v23 }
 0x38d   : > { %2554 = vperm.xlu0 %5185, %v6345_v55   ;;  %2550 = vperm.xlu1 %5176, %v6332_v40  }
 0x391   : > { %2566 = vperm.xlu0 %5185, %v6362_v49   ;;  %5178 = vset.pattern.permute.xlu1 %v7425_v29 }
 0x392   : > { %2346 = vperm.xlu1 %5178, %v6319_v58  }
 0x395   : > { %5189 = vset.pattern.permute.xlu0 %v7425_v29 }
 0x396   : > { %2362 = vperm.xlu0 %5189, %v6371_v24   ;;  %5180 = vset.pattern.permute.xlu1 %v7422_v33 }
 0x397   : > { %2177 = vperm.xlu1 %5180, %v6335_v57  }
 0x399   : > { %v4868_v61 = vpop.f32.mrb[24].mxu0  ;;  %v6379_v44 = vpop.f32.mrb[56].mxu1 }
 0x39a   : > { %v6383_v11 = vadd.f32 %v4868_v61, %v6290_v18  ;;  %v1962_v63 = vpop.f32.mrb[25].mxu0  ;;  %v6385_v53 = vpop.f32.mrb[57].mxu1  ;;  %5191 = vset.pattern.permute.xlu0 %v7422_v33 }
 0x39b   : > { %7489 = vst [vmem:[#allocation90_spill] sm:$0xff] %v6385_v53  ;;  %v6387_v25 = vpop.f32.mrb[26].mxu0  ;;  %v6389_v59 = vpop.f32.mrb[58].mxu1  ;;  %5182 = vset.pattern.permute.xlu1 %v7418_v23 }
 0x39c   : > { %7488 = vst [vmem:[#allocation89_spill] sm:$0xff] %v6383_v11  ;;  %7490 = vst [vmem:[#allocation91_spill] sm:$0xff] %v6389_v59  ;;  %v1965_v47 = vpop.f32.mrb[27].mxu0  ;;  %v6391_v40 = vpop.f32.mrb[59].mxu1  ;;  %2197 = vperm.xlu0 %5191, %v6383_v11   ;;  %2562 = vperm.xlu1 %5182, %v6335_v57  }
 0x39d   : > { %7491 = vst [vmem:[#allocation92_spill] sm:$0xff] %v6391_v40  ;;  %v6408_v61 = vadd.f32 %v1965_v47, %v6290_v18 }
 0x39f   : > { %7492 = vst [vmem:[#allocation93_spill] sm:$0xff] %v6408_v61 }
 0x3a0   : > { %5192 = vset.pattern.permute.xlu0 %v7425_v29  ;;  %5184 = vset.pattern.permute.xlu1 %v7425_v29 }
 0x3a1   : > { %2382 = vperm.xlu0 %5192, %v6383_v11   ;;  %2358 = vperm.xlu1 %5184, %v6345_v55  }
 0x3a5   : > { %5199 = vset.pattern.permute.xlu0 %v7422_v33  ;;  %5186 = vset.pattern.permute.xlu1 %v7422_v33 }
 0x3a6   : > { %2192 = vperm.xlu0 %5199, %v6408_v61   ;;  %2182 = vperm.xlu1 %5186, %v6362_v49  }
 0x3aa   : > { %5201 = vset.pattern.permute.xlu0 %v7418_v23  ;;  %5187 = vset.pattern.permute.xlu1 %v7425_v29 }
 0x3ab   : > { %2574 = vperm.xlu0 %5201, %v6408_v61   ;;  %2370 = vperm.xlu1 %5187, %v6362_v49  }
 0x3ae   : > { %v4872_v47 = vpop.f32.mrb[28].mxu0  ;;  %v6421_v5 = vpop.f32.mrb[60].mxu1 }
 0x3af   : > { %7493 = vst [vmem:[#allocation94_spill] sm:$0xff] %v6421_v5  ;;  %v6424_v57 = vadd.f32 %v4872_v47, %v6290_v18  ;;  %v1978_v55 = vpop.f32.mrb[29].mxu0  ;;  %v6426_v58 = vpop.f32.mrb[61].mxu1  ;;  %5203 = vset.pattern.permute.xlu0 %v7425_v29  ;;  %5188 = vset.pattern.permute.xlu1 %v7422_v33 }
 0x3b0   : > { %7495 = vst [vmem:[#allocation96_spill] sm:$0xff] %v6426_v58  ;;  %v4873_v10 = vpop.f32.mrb[30].mxu0  ;;  %v6428_v20 = vpop.f32.mrb[62].mxu1  ;;  %2172 = vperm.xlu1 %5188, %v6371_v24   ;;  %v6437_v12 = vadd.f32 %v1978_v55, %v6290_v18  ;;  %v6450_v55 = vadd.f32 %v1962_v63, %v6290_v18  ;;  %v6467_v63 = vadd.f32 %v6387_v25, %v6290_v18 }
 0x3b1   : > { %7494 = vst [vmem:[#allocation95_spill] sm:$0xff] %v6424_v57  ;;  %7496 = vst [vmem:[#allocation97_spill] sm:$0xff] %v6428_v20  ;;  %v1981_v21 = vpop.f32.mrb[31].mxu0  ;;  %v6431_v31 = vpop.f32.mrb[63].mxu1  ;;  %2398 = vperm.xlu0 %5203, %v6424_v57   ;;  %v6447_v47 = vadd.f32 %v4873_v10, %v6290_v18 }
 0x3b2   : > { %7497 = vst [vmem:[#allocation98_spill] sm:$0xff] %v6431_v31  ;;  %7498 = vst [vmem:[#allocation99_spill] sm:$0xff] %v6437_v12  ;;  %v6456_v49 = vadd.f32 %v1981_v21, %v6290_v18 }
 0x3b3   : > { %7499 = vst [vmem:[#allocation100_spill] sm:$0xff] %v6447_v47  ;;  %7500 = vst [vmem:[#allocation101_spill] sm:$0xff] %v6450_v55 }
 0x3b4   : > { %5190 = vset.pattern.permute.xlu1 %v7418_v23  ;;  %7501 = vst [vmem:[#allocation102_spill] sm:$0xff] %v6456_v49  ;;  %7502 = vst [vmem:[#allocation103_spill] sm:$0xff] %v6467_v63 }
 0x3b5   : > { %5205 = vset.pattern.permute.xlu0 %v7422_v33  ;;  %2558 = vperm.xlu1 %5190, %v6371_v24  }
 0x3b6   : > { %2207 = vperm.xlu0 %5205, %v6437_v12  }
 0x3b9   : > { %2578 = vperm.xlu1 %5190, %v6383_v11  }
 0x3ba   : > { %5207 = vset.pattern.permute.xlu0 %v7418_v23 }
 0x3bb   : > { %2586 = vperm.xlu0 %5207, %v6437_v12  }
 0x3bd   : > { %5193 = vset.pattern.permute.xlu1 %v7422_v33 }
 0x3be   : > { %2187 = vperm.xlu1 %5193, %v6450_v55  }
 0x3bf   : > { %2598 = vperm.xlu0 %5207, %v6447_v47  }
 0x3c2   : > { %5194 = vset.pattern.permute.xlu1 %v7425_v29 }
 0x3c3   : > { %5211 = vset.pattern.permute.xlu0 %v7425_v29  ;;  %2374 = vperm.xlu1 %5194, %v6450_v55  }
 0x3c4   : > { %2394 = vperm.xlu0 %5211, %v6456_v49  }
 0x3c7   : > { %5195 = vset.pattern.permute.xlu1 %v7418_v23 }
 0x3c8   : > { %5213 = vset.pattern.permute.xlu0 %v7422_v33  ;;  %2570 = vperm.xlu1 %5195, %v6450_v55  }
 0x3cc   : > { %5196 = vset.pattern.permute.xlu1 %v7422_v33 }
 0x3cd   : > { %2202 = vperm.xlu1 %5196, %v6467_v63  }
 0x3d1   : > { %5197 = vset.pattern.permute.xlu1 %v7425_v29 }
 0x3d2   : > { %2386 = vperm.xlu1 %5197, %v6467_v63  }
 0x3d3   : > { %v4876_v21 = vpop.f32.mrb[32].mxu0  ;;  %v6471_v10 = vpop.f32.mrb[64].mxu1 }
 0x3d4   : > { %7503 = vst [vmem:[#allocation104_spill] sm:$0xff] %v6471_v10  ;;  %v6475_v11 = vadd.f32 %v4876_v21, %v6290_v18  ;;  %v6477_v24 = vpop.f32.mrb[33].mxu0  ;;  %v6479_v50 = vpop.f32.mrb[65].mxu1 }
 0x3d5   : > { %7504 = vst [vmem:[#allocation105_spill] sm:$0xff] %v6479_v50  ;;  %v6482_v25 = vpop.f32.mrb[34].mxu0  ;;  %v6484_v55 = vpop.f32.mrb[66].mxu1 }
 0x3d6   : > { %7505 = vst [vmem:[#allocation106_spill] sm:$0xff] %v6484_v55  ;;  %v1997_v60 = vpop.f32.mrb[35].mxu0  ;;  %v6486_v30 = vpop.f32.mrb[67].mxu1  ;;  %2237 = vperm.xlu0 %5213, %v6475_v11   ;;  %5198 = vset.pattern.permute.xlu1 %v7418_v23 }
 0x3d7   : > { %7506 = vst [vmem:[#allocation107_spill] sm:$0xff] %v6486_v30  ;;  %2582 = vperm.xlu1 %5198, %v6467_v63   ;;  %v6494_v21 = vadd.f32 %v1997_v60, %v6290_v18 }
 0x3da   : > { %5214 = vset.pattern.permute.xlu0 %v7425_v29 }
 0x3db   : > { %2414 = vperm.xlu0 %5214, %v6475_v11   ;;  %5200 = vset.pattern.permute.xlu1 %v7425_v29 }
 0x3dc   : > { %2378 = vperm.xlu1 %5200, %v6408_v61  }
 0x3df   : > { %5221 = vset.pattern.permute.xlu0 %v7422_v33 }
 0x3e0   : > { %2232 = vperm.xlu0 %5221, %v6494_v21   ;;  %5202 = vset.pattern.permute.xlu1 %v7422_v33 }
 0x3e1   : > { %2217 = vperm.xlu1 %5202, %v6424_v57  }
 0x3e4   : > { %5223 = vset.pattern.permute.xlu0 %v7418_v23 }
 0x3e5   : > { %2606 = vperm.xlu0 %5223, %v6494_v21   ;;  %5204 = vset.pattern.permute.xlu1 %v7418_v23 }
 0x3e6   : > { %2594 = vperm.xlu1 %5204, %v6424_v57  }
 0x3e9   : > { %5225 = vset.pattern.permute.xlu0 %v7425_v29 }
 0x3ea   : > { %5206 = vset.pattern.permute.xlu1 %v7425_v29 }
 0x3eb   : > { %2390 = vperm.xlu1 %5206, %v6437_v12  }
 0x3ee   : > { %v2547_v60 = vpop.permute.xlu1 %2546  ;;  %v2158_v57 = vpop.permute.xlu0 %2157 }
 0x3ef   : > { %5208 = vset.pattern.permute.xlu1 %v7422_v33 }
 0x3f0   : > { %2222 = vperm.xlu1 %5208, %v6447_v47  }
 0x3f3   : > { %v2148_v10 = vpop.permute.xlu1 %2147 }
 0x3f4   : > { %v4880_v63 = vpop.f32.mrb[36].mxu0  ;;  %v6511_v61 = vpop.f32.mrb[68].mxu1  ;;  %5209 = vset.pattern.permute.xlu1 %v7425_v29 }
 0x3f5   : > { %7507 = vst [vmem:[#allocation108_spill] sm:$0xff] %v6511_v61  ;;  %v6514_v30 = vadd.f32 %v4880_v63, %v6290_v18  ;;  %v2010_v55 = vpop.f32.mrb[37].mxu0  ;;  %v6516_v50 = vpop.f32.mrb[69].mxu1  ;;  %2402 = vperm.xlu1 %5209, %v6447_v47  }
 0x3f6   : > { %7508 = vst [vmem:[#allocation109_spill] sm:$0xff] %v6516_v50  ;;  %v4881_v31 = vpop.f32.mrb[38].mxu0  ;;  %v6519_v12 = vpop.f32.mrb[70].mxu1  ;;  %v6526_v63 = vadd.f32 %v2010_v55, %v6290_v18  ;;  %v4492_v50 = vld [vmem:[%s7292_s4 + $0x4] sm:$0x7] }
 0x3f7   : > { %7509 = vst [vmem:[#allocation110_spill] sm:$0xff] %v6519_v12  ;;  %2430 = vperm.xlu0 %5225, %v6514_v30   ;;  %v2013_v42 = vpop.f32.mrb[39].mxu0  ;;  %v6523_v20 = vpop.f32.mrb[71].mxu1  ;;  %v6533_v58 = vrot.slane %v4492_v50, %v5699_v4  ;;  %v6539_v55 = vrot.slane %v4492_v50, %v5693_v3  ;;  %v6549_v32 = vrot.slane %v4492_v50, %v5708_v9 }
 0x3f8   : > { %7510 = vst [vmem:[#allocation111_spill] sm:$0xff] %v6523_v20  ;;  %v2343_v61 = vpop.permute.xlu1 %2342  ;;  %v2351_v47 = vpop.permute.xlu0 %2350  ;;  %v2950_v50 = vmul.f32 %v6560_v1, %v5769_v22  ;;  %v6570_v53 = vadd.f32 %v2013_v42, %v6290_v18  ;;  %v6574_v3 = vadd.f32 %v6477_v24, %v6290_v18  ;;  %v6579_v22 = vrot.slane %v4501_v6, %v5708_v9 }
 0x3f9   : > { %5210 = vset.pattern.permute.xlu1 %v7422_v33  ;;  %v2475_v20 = vmul.f32 %v6533_v58, %v2351_v47  ;;  %v2311_v5 = vmul.f32 %v6539_v55, %v2158_v57  ;;  %v6554_v47 = vadd.f32 %v4881_v31, %v6290_v18  ;;  %v2671_v57 = vmul.f32 %v6549_v32, %v2547_v60 }
 0x3fa   : > { %2212 = vperm.xlu1 %5210, %v6456_v49   ;;  %v2986_v31 = vmul.f32 %v6557_v38, %v5605_v36  ;;  %v2309_v36 = vmul.f32 %v6539_v55, %v2148_v10  ;;  %v3054_v24 = vmul.f32 %v6579_v22, %v5659_v52  ;;  %v2987_v10 = vmul.f32 %v6557_v38, %v5638_v46 }
 0x3fb   : > { %5227 = vset.pattern.permute.xlu0 %v7422_v33  ;;  %v2507_v35 = vadd.f32 %v2475_v20, %v2311_v5  ;;  %v2473_v20 = vmul.f32 %v6533_v58, %v2343_v61  ;;  %v2984_v52 = vmul.f32 %v6557_v38, %v5608_v37 }
 0x3fc   : > { %2247 = vperm.xlu0 %5227, %v6526_v63   ;;  %v2153_v40 = vpop.permute.xlu0 %2152  ;;  %v3018_v5 = vadd.f32 %v2986_v31, %v2950_v50  ;;  %v2948_v50 = vmul.f32 %v6560_v1, %v5723_v14  ;;  %v2951_v31 = vmul.f32 %v6560_v1, %v5627_v43  ;;  %v3055_v43 = vmul.f32 %v6579_v22, %v5665_v54 }
 0x3fd   : > { %v2539_v12 = vpop.permute.xlu1 %2538 }
 0x3fe   : > { %5212 = vset.pattern.permute.xlu1 %v7418_v23  ;;  %v3019_v37 = vadd.f32 %v2987_v10, %v2951_v31  ;;  %v2310_v31 = vmul.f32 %v6539_v55, %v2153_v40  ;;  %v3053_v40 = vmul.f32 %v6579_v22, %v5636_v45 }
 0x3ff   : > { %2590 = vperm.xlu1 %5212, %v6456_v49   ;;  %v2703_v49 = vadd.f32 %v2671_v57, %v2507_v35  ;;  %v2669_v35 = vmul.f32 %v6549_v32, %v2539_v12  ;;  %v2505_v57 = vadd.f32 %v2473_v20, %v2309_v36  ;;  %v3086_v12 = vadd.f32 %v3054_v24, %v3018_v5 }
 0x400   : > { %5229 = vset.pattern.permute.xlu0 %v7418_v23  ;;  %v2543_v42 = vpop.permute.xlu0 %2542 }
 0x401   : > { %2618 = vperm.xlu0 %5229, %v6526_v63   ;;  %v2824_v6 = vadd.f32 %v6292_v41, %v2703_v49  ;;  %v5313_v41 = vld [vmem:[%s5735_s18] sm:$0x3]  ;;  %v2701_v14 = vadd.f32 %v2669_v35, %v2505_v57  ;;  %v2949_v35 = vmul.f32 %v6560_v1, %v5747_v26  ;;  %v2670_v10 = vmul.f32 %v6549_v32, %v2543_v42  ;;  %s4576_s18 = sshll.u32 %s7626_s27, 3 }
 0x402   : > { %v2163_v59 = vpop.permute.xlu1 %2162  ;;  %v6602_v49 = vrot.slane %v5313_v41, %v5699_v4  ;;  %v3052_v41 = vmul.f32 %v6579_v22, %v5645_v48  ;;  %v3087_v4 = vadd.f32 %v3055_v43, %v3019_v37  ;;  %s370_s11 = scalar_lea.vmem %s7296_s8, %s4576_s18  ;;  %s360_s14 = scalar_lea.vmem %s7295_s7, %s4576_s18 }
 0x403   : > { %2610 = vperm.xlu1 %5212, %v6475_v11   ;;  %v2312_v9 = vmul.f32 %v6539_v55, %v2163_v59  ;;  %v3118_v46 = vadd.f32 %v3086_v12, %v2824_v6  ;;  %v2816_v57 = vadd.f32 %v6297_v7, %v2701_v14  ;;  %v6627_v14 = vadd.f32 %v6482_v25, %v6290_v18 }
 0x404   : > { %v2367_v36 = vpop.permute.xlu0 %2366 }
 0x405   : > { %2630 = vperm.xlu0 %5229, %v6554_v47   ;;  %v3154_v54 = vadd.f32 %v6602_v49, %v3118_v46 }
 0x407   : > { %5215 = vset.pattern.permute.xlu1 %v7422_v33  ;;  %v2355_v60 = vpop.permute.xlu1 %2354  ;;  %vm3186_vm0 = vcmp.gt.f32.partialorder %v3154_v54, 0.0 }
 0x408   : > { %2227 = vperm.xlu1 %5215, %v6574_v3   ;;  %v2476_v61 = vmul.f32 %v6533_v58, %v2355_v60  ;;  %v3016_v60 = vadd.f32 %v2984_v52, %v2948_v50  ;;  %v6623_v52 = vpop.permute.xlu0 %2167 }
 0x409   : > { %5233 = vset.pattern.permute.xlu0 %v7425_v29 }
 0x40a   : > { %2426 = vperm.xlu0 %5233, %v6570_v53   ;;  %v2508_v5 = vadd.f32 %v2476_v61, %v2312_v9  ;;  %v2985_v61 = vmul.f32 %v6557_v38, %v5613_v39  ;;  %v3084_v50 = vadd.f32 %v3052_v41, %v3016_v60  ;;  %v3218_v39 = vmul.f32 0.01, %v3154_v54 }
 0x40c   : > { %5216 = vset.pattern.permute.xlu1 %v7425_v29  ;;  %v2551_v20 = vpop.permute.xlu1 %2550  ;;  %v3017_v7 = vadd.f32 %v2985_v61, %v2949_v35  ;;  %v3116_v12 = vadd.f32 %v3084_v50, %v2816_v57  ;;  %v3250_v57 = vsel %vm3186_vm0, %v3154_v54, %v3218_v39 }
 0x40d   : > { %v2672_v59 = vmul.f32 %v6549_v32, %v2551_v20  ;;  %2406 = vperm.xlu1 %5216, %v6574_v3  }
 0x40e   : > { %5235 = vset.pattern.permute.xlu0 %v7422_v33  ;;  %v3085_v25 = vadd.f32 %v3053_v40, %v3017_v7 }
 0x40f   : > { %v2704_v24 = vadd.f32 %v2672_v59, %v2508_v5 }
 0x411   : > { %v2827_v9 = vadd.f32 %v6299_v0, %v2704_v24  ;;  %5217 = vset.pattern.permute.xlu1 %v7418_v23  ;;  %v2347_v6 = vpop.permute.xlu1 %2346  ;;  %v3152_v24 = vadd.f32 %v6602_v49, %v3116_v12  ;;  %v2479_v12 = vmul.f32 %v6533_v58, %v2367_v36  ;;  %v2954_v36 = vmul.f32 %v6560_v1, %v5681_v62 }
 0x412   : > { %v2474_v48 = vmul.f32 %v6533_v58, %v2347_v6  ;;  %2602 = vperm.xlu1 %5217, %v6574_v3   ;;  %v2555_v6 = vpop.permute.xlu0 %2554 }
 0x413   : > { %v3119_v26 = vadd.f32 %v3087_v4, %v2827_v9  ;;  %v3216_v7 = vmul.f32 0.01, %v3152_v24  ;;  %vm3184_vm2 = vcmp.gt.f32.partialorder %v3152_v24, 0.0 }
 0x414   : > { %v2506_v0 = vadd.f32 %v2474_v48, %v2310_v31 }
 0x415   : > { %v3155_v20 = vadd.f32 %v6602_v49, %v3119_v26 }
 0x416   : > { %v2702_v43 = vadd.f32 %v2670_v10, %v2506_v0  ;;  %5218 = vset.pattern.permute.xlu1 %v7422_v33  ;;  %v2178_v4 = vpop.permute.xlu1 %2177 }
 0x417   : > { %vm3187_vm1 = vcmp.gt.f32.partialorder %v3155_v20, 0.0  ;;  %v3219_v42 = vmul.f32 0.01, %v3155_v20  ;;  %2242 = vperm.xlu1 %5218, %v6627_v14   ;;  %v2315_v54 = vmul.f32 %v6539_v55, %v2178_v4 }
 0x418   : > { %v2819_v59 = vadd.f32 %v6301_v17, %v2702_v43  ;;  %v2567_v43 = vpop.permute.xlu0 %2566 }
 0x419   : > { %v4884_v46 = vpop.f32.mrb[40].mxu0  ;;  %v6634_v5 = vpop.f32.mrb[72].mxu1  ;;  %v3251_v9 = vsel %vm3187_vm1, %v3155_v20, %v3219_v42  ;;  %v3248_v20 = vsel %vm3184_vm2, %v3152_v24, %v3216_v7  ;;  %v2511_v4 = vadd.f32 %v2479_v12, %v2315_v54  ;;  %v7513_v54 = vld [vmem:[#allocation14_spill] sm:$0xff] }
 0x41a   : > { %v6638_v60 = vadd.f32 %v4884_v46, %v6290_v18  ;;  %v6640_v37 = vpop.f32.mrb[41].mxu0  ;;  %v6642_v45 = vpop.f32.mrb[73].mxu1  ;;  %v3117_v61 = vadd.f32 %v3085_v25, %v2819_v59  ;;  %v3298_v17 = vpack.c.bf16 %v3251_v9, %v3250_v57  ;;  %v7511_v57 = vld [vmem:[#allocation3_spill] sm:$0xff]  ;;  %v7514_v12 = vld [vmem:[#allocation18_spill] sm:$0xff] }
 0x41b   : > { %v6645_v41 = vpop.f32.mrb[42].mxu0  ;;  %v6647_v35 = vpop.f32.mrb[74].mxu1  ;;  %5219 = vset.pattern.permute.xlu1 %v7425_v29  ;;  %v2990_v9 = vmul.f32 %v6557_v38, %v7511_v57 }
 0x41c   : > { %v2029_v50 = vpop.f32.mrb[43].mxu0  ;;  %2277 = vperm.xlu0 %5235, %v6638_v60   ;;  %v2563_v31 = vpop.permute.xlu1 %2562  ;;  %2418 = vperm.xlu1 %5219, %v6627_v14   ;;  %v3153_v26 = vadd.f32 %v6602_v49, %v3117_v61  ;;  %v7512_v61 = vld [vmem:[#allocation20_spill] sm:$0xff] }
 0x41d   : > { %v6652_v48 = vpop.f32.mrb[75].mxu1  ;;  %v2675_v0 = vmul.f32 %v6549_v32, %v2563_v31  ;;  %v6664_v46 = vadd.f32 %v2029_v50, %v6290_v18  ;;  %v3058_v50 = vmul.f32 %v6579_v22, %v7512_v61  ;;  %v2313_v31 = vmul.f32 %v6539_v55, %v6623_v52  ;;  %v2363_v62 = vpop.permute.xlu0 %2362 }
 0x41e   : > { %vm3185_vm3 = vcmp.gt.f32.partialorder %v3153_v26, 0.0  ;;  %v3217_v10 = vmul.f32 0.01, %v3153_v26 }
 0x41f   : > { %v2707_v25 = vadd.f32 %v2675_v0, %v2511_v4  ;;  %v2991_v0 = vmul.f32 %v6557_v38, %v7514_v12 }
 0x420   : > { %5236 = vset.pattern.permute.xlu0 %v7425_v29  ;;  %5220 = vset.pattern.permute.xlu1 %v7418_v23  ;;  %v2359_v39 = vpop.permute.xlu1 %2358  ;;  %v3249_v40 = vsel %vm3185_vm3, %v3153_v26, %v3217_v10  ;;  %v3022_v26 = vadd.f32 %v2990_v9, %v2954_v36  ;;  %v2955_v10 = vmul.f32 %v6560_v1, %v7513_v54 }
 0x421   : > { %2446 = vperm.xlu0 %5236, %v6638_v60   ;;  %2614 = vperm.xlu1 %5220, %v6627_v14   ;;  %v3297_v42 = vpack.c.bf16 %v3249_v40, %v3248_v20  ;;  %v2477_v59 = vmul.f32 %v6533_v58, %v2359_v39  ;;  %v7515_v20 = vld [vmem:[#allocation21_spill] sm:$0xff]  ;;  %v2673_v40 = vmul.f32 %v6549_v32, %v2555_v6 }
 0x422   : > { %v3090_v39 = vadd.f32 %v3058_v50, %v3022_v26  ;;  %v2952_v52 = vmul.f32 %v6560_v1, %v7515_v20  ;;  %v3023_v61 = vadd.f32 %v2991_v0, %v2955_v10  ;;  %v2676_v50 = vmul.f32 %v6549_v32, %v2567_v43  ;;  %v7519_v10 = vld [vmem:[#allocation2_spill] sm:$0xff] }
 0x423   : > { %4954 = vmatprep.mubr.bf16.mxu0 %v3297_v42  ;;  %v2509_v7 = vadd.f32 %v2477_v59, %v2313_v31  ;;  %v2198_v42 = vpop.permute.xlu0 %2197  ;;  %v3059_v26 = vmul.f32 %v6579_v22, %v5655_v51  ;;  %v2989_v0 = vmul.f32 %v6557_v38, %v7519_v10 }
 0x424   : > { %4955 = vmatmul.mubr.bf16.vlgmr.msra.gmra.mrb[48].mxu0 %v3298_v17  ;;  %v2840_v17 = vadd.f32 %v6310_v13, %v2707_v25  ;;  %v7516_v25 = vld [vmem:[#allocation10_spill] sm:$0xff] }
 0x425   : > { %5243 = vset.pattern.permute.xlu0 %v7422_v33  ;;  %5222 = vset.pattern.permute.xlu1 %v7425_v29  ;;  %v2183_v24 = vpop.permute.xlu1 %2182  ;;  %v2988_v59 = vmul.f32 %v6557_v38, %v7516_v25  ;;  %v2705_v9 = vadd.f32 %v2673_v40, %v2509_v7  ;;  %v3091_v51 = vadd.f32 %v3059_v26, %v3023_v61  ;;  %v7520_v25 = vld [vmem:[#allocation19_spill] sm:$0xff] }
 0x426   : > { %2272 = vperm.xlu0 %5243, %v6664_v46   ;;  %2410 = vperm.xlu1 %5222, %v6494_v21   ;;  %v2316_v4 = vmul.f32 %v6539_v55, %v2183_v24  ;;  %v3122_v57 = vadd.f32 %v3090_v39, %v2840_v17  ;;  %v7517_v24 = vld [vmem:[#allocation7_spill] sm:$0xff] }
 0x427   : > { %v3020_v6 = vadd.f32 %v2988_v59, %v2952_v52  ;;  %v2953_v54 = vmul.f32 %v6560_v1, %v7517_v24  ;;  %v2832_v7 = vadd.f32 %v6314_v28, %v2705_v9  ;;  %v2383_v39 = vpop.permute.xlu0 %2382  ;;  %v3057_v59 = vmul.f32 %v6579_v22, %v7520_v25 }
 0x428   : > { %v3158_v43 = vadd.f32 %v6602_v49, %v3122_v57  ;;  %v2478_v28 = vmul.f32 %v6533_v58, %v2363_v62  ;;  %v2994_v57 = vmul.f32 %v6557_v38, %v5883_v34  ;;  %v2958_v62 = vmul.f32 %v6560_v1, %v5814_v15 }
 0x429   : > { %v2319_v34 = vmul.f32 %v6539_v55, %v2198_v42 }
 0x42a   : > { %5245 = vset.pattern.permute.xlu0 %v7418_v23  ;;  %5224 = vset.pattern.permute.xlu1 %v7422_v33  ;;  %v2371_v13 = vpop.permute.xlu1 %2370  ;;  %vm3190_vm4 = vcmp.gt.f32.partialorder %v3158_v43, 0.0 }
 0x42b   : > { %2638 = vperm.xlu0 %5245, %v6664_v46   ;;  %v2480_v36 = vmul.f32 %v6533_v58, %v2371_v13  ;;  %2257 = vperm.xlu1 %5224, %v6514_v30   ;;  %v7518_v13 = vld [vmem:[#allocation4_spill] sm:$0xff] }
 0x42c   : > { %v3056_v17 = vmul.f32 %v6579_v22, %v7518_v13  ;;  %v3026_v13 = vadd.f32 %v2994_v57, %v2958_v62 }
 0x42d   : > { %v2512_v31 = vadd.f32 %v2480_v36, %v2316_v4  ;;  %v3021_v36 = vadd.f32 %v2989_v0, %v2953_v54 }
 0x42e   : > { %v3088_v4 = vadd.f32 %v3056_v17, %v3020_v6 }
 0x42f   : > { %5247 = vset.pattern.permute.xlu0 %v7425_v29  ;;  %v2708_v12 = vadd.f32 %v2676_v50, %v2512_v31  ;;  %5226 = vset.pattern.permute.xlu1 %v7418_v23  ;;  %v2173_v20 = vpop.permute.xlu1 %2172  ;;  %v2483_v50 = vmul.f32 %v6533_v58, %v2383_v39  ;;  %v3089_v54 = vadd.f32 %v3057_v59, %v3021_v36 }
 0x430   : > { %2626 = vperm.xlu1 %5226, %v6514_v30   ;;  %v2314_v40 = vmul.f32 %v6539_v55, %v2173_v20  ;;  %v3120_v31 = vadd.f32 %v3088_v4, %v2832_v7 }
 0x431   : > { %v2843_v52 = vadd.f32 %v6316_v27, %v2708_v12  ;;  %v3222_v27 = vmul.f32 0.01, %v3158_v43  ;;  %v2515_v17 = vadd.f32 %v2483_v50, %v2319_v34 }
 0x432   : > { %v2510_v26 = vadd.f32 %v2478_v28, %v2314_v40  ;;  %v3156_v0 = vadd.f32 %v6602_v49, %v3120_v31 }
 0x433   : > { %v3123_v9 = vadd.f32 %v3091_v51, %v2843_v52  ;;  %v3254_v51 = vsel %vm3190_vm4, %v3158_v43, %v3222_v27  ;;  %v3062_v43 = vmul.f32 %v6579_v22, %v5860_v8 }
 0x434   : > { %5228 = vset.pattern.permute.xlu1 %v7425_v29  ;;  %v2559_v61 = vpop.permute.xlu1 %2558  ;;  %vm3188_vm6 = vcmp.gt.f32.partialorder %v3156_v0, 0.0 }
 0x435   : > { %v2674_v6 = vmul.f32 %v6549_v32, %v2559_v61  ;;  %2422 = vperm.xlu1 %5228, %v6526_v63   ;;  %v3159_v24 = vadd.f32 %v6602_v49, %v3123_v9  ;;  %v3094_v31 = vadd.f32 %v3062_v43, %v3026_v13  ;;  %v2995_v43 = vmul.f32 %v6557_v38, %v5840_v2  ;;  %v7523_v2 = vld [vmem:[#allocation28_spill] sm:$0xff] }
 0x437   : > { %v2706_v12 = vadd.f32 %v2674_v6, %v2510_v26  ;;  %vm3191_vm5 = vcmp.gt.f32.partialorder %v3159_v24, 0.0  ;;  %v3223_v20 = vmul.f32 0.01, %v3159_v24  ;;  %v3220_v6 = vmul.f32 0.01, %v3156_v0 }
 0x438   : > { %v2579_v7 = vpop.permute.xlu1 %2578 }
 0x439   : > { %v2835_v39 = vadd.f32 %v6321_v16, %v2706_v12  ;;  %v2679_v52 = vmul.f32 %v6549_v32, %v2579_v7  ;;  %5230 = vset.pattern.permute.xlu1 %v7422_v33  ;;  %v3255_v40 = vsel %vm3191_vm5, %v3159_v24, %v3223_v20  ;;  %v3252_v34 = vsel %vm3188_vm6, %v3156_v0, %v3220_v6 }
 0x43a   : > { %v4888_v10 = vpop.f32.mrb[44].mxu0  ;;  %v6731_v42 = vpop.f32.mrb[76].mxu1  ;;  %2262 = vperm.xlu1 %5230, %v6554_v47   ;;  %v3300_v25 = vpack.c.bf16 %v3255_v40, %v3254_v51  ;;  %v6770_v0 = vadd.f32 %v6640_v37, %v6290_v18  ;;  %v2959_v37 = vmul.f32 %v6560_v1, %v5830_v19 }
 0x43b   : > { %v6729_v15 = vadd.f32 %v4888_v10, %v6290_v18  ;;  %v2042_v4 = vpop.f32.mrb[45].mxu0  ;;  %v6734_v36 = vpop.f32.mrb[77].mxu1  ;;  %v3121_v16 = vadd.f32 %v3089_v54, %v2835_v39  ;;  %v2711_v59 = vadd.f32 %v2679_v52, %v2515_v17 }
 0x43c   : > { %v4889_v28 = vpop.f32.mrb[46].mxu0  ;;  %v6738_v9 = vpop.f32.mrb[78].mxu1  ;;  %v6746_v24 = vadd.f32 %v2042_v4, %v6290_v18 }
 0x43d   : > { %2462 = vperm.xlu0 %5247, %v6729_v15   ;;  %v2045_v57 = vpop.f32.mrb[47].mxu0  ;;  %v6741_v50 = vpop.f32.mrb[79].mxu1  ;;  %v3157_v61 = vadd.f32 %v6602_v49, %v3121_v16  ;;  %v2856_v27 = vadd.f32 %v6379_v44, %v2711_v59  ;;  %v6765_v7 = vadd.f32 %v4889_v28, %v6290_v18  ;;  %v2956_v28 = vmul.f32 %v6560_v1, %v5787_v56 }
 0x43e   : > { %v2188_v26 = vpop.permute.xlu1 %2187  ;;  %5231 = vset.pattern.permute.xlu1 %v7425_v29  ;;  %v6758_v13 = vadd.f32 %v2045_v57, %v6290_v18  ;;  %v2193_v10 = vpop.permute.xlu0 %2192  ;;  %v7521_v57 = vld [vmem:[#allocation23_spill] sm:$0xff] }
 0x43f   : > { %v3126_v8 = vadd.f32 %v3094_v31, %v2856_v27  ;;  %2434 = vperm.xlu1 %5231, %v6554_v47   ;;  %vm3189_vm7 = vcmp.gt.f32.partialorder %v3157_v61, 0.0  ;;  %v3221_v62 = vmul.f32 0.01, %v3157_v61  ;;  %v2317_v52 = vmul.f32 %v6539_v55, %v2188_v26  ;;  %v7522_v26 = vld [vmem:[#allocation31_spill] sm:$0xff] }
 0x440   : > { %v2992_v31 = vmul.f32 %v6557_v38, %v7521_v57  ;;  %v3063_v6 = vmul.f32 %v6579_v22, %v7522_v26  ;;  %v7527_v57 = vld [vmem:[#allocation22_spill] sm:$0xff] }
 0x441   : > { %5248 = vset.pattern.permute.xlu0 %v7422_v33  ;;  %v3253_v54 = vsel %vm3189_vm7, %v3157_v61, %v3221_v62 }
 0x442   : > { %2287 = vperm.xlu0 %5248, %v6746_v24   ;;  %v2375_v44 = vpop.permute.xlu1 %2374  ;;  %v3299_v12 = vpack.c.bf16 %v3253_v54, %v3252_v34  ;;  %v2575_v16 = vpop.permute.xlu0 %2574  ;;  %v3060_v34 = vmul.f32 %v6579_v22, %v7523_v2  ;;  %v3027_v54 = vadd.f32 %v2995_v43, %v2959_v37  ;;  %v2318_v43 = vmul.f32 %v6539_v55, %v2193_v10 }
 0x443   : > { %5232 = vset.pattern.permute.xlu1 %v7422_v33  ;;  %v2481_v51 = vmul.f32 %v6533_v58, %v2375_v44  ;;  %v2678_v26 = vmul.f32 %v6549_v32, %v2575_v16 }
 0x444   : > { %2252 = vperm.xlu1 %5232, %v6570_v53   ;;  %4958 = vmatprep.mubr.bf16.mxu0 %v3299_v12  ;;  %v3024_v12 = vadd.f32 %v2992_v31, %v2956_v28 }
 0x445   : > { %4959 = vmatmul.mubr.bf16.gmra.mrb[52].mxu0 %v3300_v25  ;;  %v2513_v25 = vadd.f32 %v2481_v51, %v2317_v52  ;;  %v7525_v51 = vld [vmem:[#allocation90_spill] sm:$0xff]  ;;  %v3095_v52 = vadd.f32 %v3063_v6, %v3027_v54  ;;  %v7528_v54 = vld [vmem:[#allocation5_spill] sm:$0xff] }
 0x446   : > { %5250 = vset.pattern.permute.xlu0 %v7418_v23  ;;  %v2399_v56 = vpop.permute.xlu0 %2398  ;;  %v3092_v37 = vadd.f32 %v3060_v34, %v3024_v12  ;;  %v3061_v10 = vmul.f32 %v6579_v22, %v7528_v54  ;;  %v5298_v54 = vld [vmem:[%s7290_s2 + $0x108] sm:$0xff]  }
 0x447   : > { %2650 = vperm.xlu0 %5250, %v6746_v24   ;;  %v2571_v20 = vpop.permute.xlu1 %2570 }
 0x448   : > { %5234 = vset.pattern.permute.xlu1 %v7418_v23  ;;  %v2677_v40 = vmul.f32 %v6549_v32, %v2571_v20  ;;  %v7524_v20 = vld [vmem:[#allocation24_spill] sm:$0xff] }
 0x449   : > { %2622 = vperm.xlu1 %5234, %v6570_v53  }
 0x44a   : > { %v2709_v61 = vadd.f32 %v2677_v40, %v2513_v25  ;;  %v3162_v40 = vadd.f32 %v6602_v49, %v3126_v8 }
 0x44b   : > { %5254 = vset.pattern.permute.xlu0 %v7425_v29 }
 0x44c   : > { %2458 = vperm.xlu0 %5254, %v6758_v13   ;;  %v2203_v17 = vpop.permute.xlu1 %2202  ;;  %v3226_v34 = vmul.f32 0.01, %v3162_v40  ;;  %vm3194_vm8 = vcmp.gt.f32.partialorder %v3162_v40, 0.0 }
 0x44d   : > { %2642 = vperm.xlu1 %5234, %v6638_v60   ;;  %v2320_v59 = vmul.f32 %v6539_v55, %v2203_v17  ;;  %v2993_v17 = vmul.f32 %v6557_v38, %v7524_v20 }
 0x450   : > { %5256 = vset.pattern.permute.xlu0 %v7418_v23 }
 0x451   : > { %2662 = vperm.xlu0 %5256, %v6765_v7   ;;  %5237 = vset.pattern.permute.xlu1 %v7422_v33  ;;  %v2387_v39 = vpop.permute.xlu1 %2386 }
 0x452   : > { %2267 = vperm.xlu1 %5237, %v6770_v0   ;;  %v2484_v4 = vmul.f32 %v6533_v58, %v2387_v39  ;;  %v2848_v39 = vadd.f32 %v7525_v51, %v2709_v61 }
 0x454   : > { %v2516_v19 = vadd.f32 %v2484_v4, %v2320_v59  ;;  %v7526_v4 = vld [vmem:[#allocation91_spill] sm:$0xff]  ;;  %v3124_v8 = vadd.f32 %v3092_v37, %v2848_v39  ;;  %v7530_v39 = vld [vmem:[#allocation36_spill] sm:$0xff]  ;;  %v2487_v37 = vmul.f32 %v6533_v58, %v2399_v56 }
 0x456   : > { %5238 = vset.pattern.permute.xlu1 %v7425_v29  ;;  %v2583_v27 = vpop.permute.xlu1 %2582 }
 0x457   : > { %v2680_v62 = vmul.f32 %v6549_v32, %v2583_v27  ;;  %2438 = vperm.xlu1 %5238, %v6770_v0   ;;  %v2957_v27 = vmul.f32 %v6560_v1, %v7527_v57 }
 0x459   : > { %v2712_v44 = vadd.f32 %v2680_v62, %v2516_v19  ;;  %v3025_v61 = vadd.f32 %v2993_v17, %v2957_v27  ;;  %v6809_v19 = vadd.f32 %v6645_v41, %v6290_v18  ;;  %v2208_v62 = vpop.permute.xlu0 %2207  ;;  %v3160_v18 = vadd.f32 %v6602_v49, %v3124_v8  ;;  %v7529_v41 = vld [vmem:[#allocation92_spill] sm:$0xff]  ;;  %v5297_v27 = vld [vmem:[%s7290_s2 + $0x100] sm:$0xff]  }
 0x45a   : > { %4986 = vmatprep.subr.bf16.mxu1 %v5297_v27 }
 0x45b   : > { %v2859_v25 = vadd.f32 %v7526_v4, %v2712_v44  ;;  %5239 = vset.pattern.permute.xlu1 %v7418_v23  ;;  %v2379_v59 = vpop.permute.xlu1 %2378  ;;  %v3093_v20 = vadd.f32 %v3061_v10, %v3025_v61  ;;  %v7531_v4 = vld [vmem:[#allocation40_spill] sm:$0xff]  ;;  %4987 = vmatpush3.bf16.msra.mxu1 %v5297_v27  ;;  %vm3192_vm10 = vcmp.gt.f32.partialorder %v3160_v18, 0.0  ;;  %v2321_v27 = vmul.f32 %v6539_v55, %v2208_v62 }
 0x45c   : > { %v2482_v28 = vmul.f32 %v6533_v58, %v2379_v59  ;;  %2634 = vperm.xlu1 %5239, %v6770_v0   ;;  %v3258_v59 = vsel %vm3194_vm8, %v3162_v40, %v3226_v34  ;;  %v3224_v34 = vmul.f32 0.01, %v3160_v18  ;;  %4988 = vmatprep.subr.bf16.mxu1 %v5298_v54 }
 0x45d   : > { %v3127_v31 = vadd.f32 %v3095_v52, %v2859_v25  ;;  %v2962_v52 = vmul.f32 %v6560_v1, %v7530_v39  ;;  %v2998_v25 = vmul.f32 %v6557_v38, %v7531_v4  ;;  %v5299_v4 = vld [vmem:[%s7290_s2 + $0x110] sm:$0xff]  }
 0x45e   : > { %v2514_v6 = vadd.f32 %v2482_v28, %v2318_v43 }
 0x45f   : > { %v3163_v2 = vadd.f32 %v6602_v49, %v3127_v31  ;;  %v7532_v31 = vld [vmem:[#allocation42_spill] sm:$0xff]  ;;  %v3030_v56 = vadd.f32 %v2998_v25, %v2962_v52  ;;  %4989 = vmatpush3.bf16.msra.mxu1 %v5298_v54  ;;  %v7537_v54 = vld [vmem:[#allocation25_spill] sm:$0xff] }
 0x460   : > { %v2710_v44 = vadd.f32 %v2678_v26, %v2514_v6  ;;  %5240 = vset.pattern.permute.xlu1 %v7422_v33  ;;  %v2218_v12 = vpop.permute.xlu1 %2217  ;;  %v3066_v61 = vmul.f32 %v6579_v22, %v7532_v31  ;;  %v2587_v26 = vpop.permute.xlu0 %2586  ;;  %4990 = vmatprep.subr.bf16.mxu1 %v5299_v4  ;;  %v7535_v31 = vld [vmem:[#allocation39_spill] sm:$0xff] }
 0x461   : > { %2282 = vperm.xlu1 %5240, %v6809_v19   ;;  %vm3195_vm9 = vcmp.gt.f32.partialorder %v3163_v2, 0.0  ;;  %v3227_v16 = vmul.f32 0.01, %v3163_v2  ;;  %v2323_v51 = vmul.f32 %v6539_v55, %v2218_v12 }
 0x462   : > { %v2851_v17 = vadd.f32 %v7529_v41, %v2710_v44  ;;  %v3098_v12 = vadd.f32 %v3066_v61, %v3030_v56  ;;  %v2999_v61 = vmul.f32 %v6557_v38, %v7535_v31 }
 0x463   : > { %v3259_v57 = vsel %vm3195_vm9, %v3163_v2, %v3227_v16  ;;  %v2519_v6 = vadd.f32 %v2487_v37, %v2323_v51  ;;  %v7533_v16 = vld [vmem:[#allocation94_spill] sm:$0xff]  ;;  %4991 = vmatpush3.bf16.msra.mxu1 %v5299_v4 }
 0x464   : > { %v3125_v43 = vadd.f32 %v3093_v20, %v2851_v17  ;;  %v3302_v28 = vpack.c.bf16 %v3259_v57, %v3258_v59  ;;  %v3256_v17 = vsel %vm3192_vm10, %v3160_v18, %v3224_v34  ;;  %v2599_v39 = vpop.permute.xlu0 %2598  ;;  %v5300_v57 = vld [vmem:[%s7290_s2 + $0x118] sm:$0xff]  }
 0x465   : > { %5241 = vset.pattern.permute.xlu1 %v7425_v29  ;;  %v2595_v8 = vpop.permute.xlu1 %2594  ;;  %4992 = vmatprep.subr.bf16.mxu1 %v5300_v57 }
 0x466   : > { %v2683_v40 = vmul.f32 %v6549_v32, %v2595_v8  ;;  %2450 = vperm.xlu1 %5241, %v6809_v19   ;;  %v3161_v2 = vadd.f32 %v6602_v49, %v3125_v43  ;;  %v5301_v8 = vld [vmem:[%s7290_s2 + $0x120] sm:$0xff]  }
 0x467   : > { %4993 = vmatpush3.bf16.msra.mxu1 %v5300_v57  ;;  %v7541_v57 = vld [vmem:[#allocation38_spill] sm:$0xff] }
 0x468   : > { %v2715_v10 = vadd.f32 %v2683_v40, %v2519_v6  ;;  %vm3193_vm11 = vcmp.gt.f32.partialorder %v3161_v2, 0.0  ;;  %v3225_v44 = vmul.f32 0.01, %v3161_v2  ;;  %v2395_v37 = vpop.permute.xlu0 %2394  ;;  %v7536_v6 = vld [vmem:[#allocation35_spill] sm:$0xff]  ;;  %v2681_v40 = vmul.f32 %v6549_v32, %v2587_v26  ;;  %4994 = vmatprep.subr.bf16.mxu1 %v5301_v8 }
 0x469   : > { %v2996_v62 = vmul.f32 %v6557_v38, %v7536_v6  ;;  %v2684_v26 = vmul.f32 %v6549_v32, %v2599_v39 }
 0x46a   : > { %v2872_v20 = vadd.f32 %v7533_v16, %v2715_v10  ;;  %5242 = vset.pattern.permute.xlu1 %v7418_v23  ;;  %v2391_v41 = vpop.permute.xlu1 %2390  ;;  %v3257_v51 = vsel %vm3193_vm11, %v3161_v2, %v3225_v44  ;;  %v2960_v10 = vmul.f32 %v6560_v1, %v7537_v54 }
 0x46b   : > { %2646 = vperm.xlu1 %5242, %v6809_v19   ;;  %v3301_v52 = vpack.c.bf16 %v3257_v51, %v3256_v17  ;;  %v2485_v59 = vmul.f32 %v6533_v58, %v2391_v41  ;;  %4995 = vmatpush3.bf16.msra.mxu1 %v5301_v8  ;;  %v7538_v41 = vld [vmem:[#allocation6_spill] sm:$0xff]  ;;  %v7543_v8 = vld [vmem:[#allocation97_spill] sm:$0xff] }
 0x46c   : > { %v3130_v25 = vadd.f32 %v3098_v12, %v2872_v20  ;;  %v5302_v20 = vld [vmem:[%s7290_s2 + $0x128] sm:$0xff]   ;;  %v3064_v17 = vmul.f32 %v6579_v22, %v7538_v41  ;;  %v3028_v51 = vadd.f32 %v2996_v62, %v2960_v10 }
 0x46d   : > { %4962 = vmatprep.mubr.bf16.mxu0 %v3301_v52  ;;  %v2517_v43 = vadd.f32 %v2485_v59, %v2321_v27  ;;  %v7539_v52 = vld [vmem:[#allocation8_spill] sm:$0xff]  ;;  %v7540_v59 = vld [vmem:[#allocation34_spill] sm:$0xff]  ;;  %4996 = vmatprep.subr.bf16.mxu1 %v5302_v20  ;;  %v2997_v27 = vmul.f32 %v6557_v38, %v7541_v57 }
 0x46e   : > { %4963 = vmatmul.mubr.bf16.gmra.mrb[56].mxu0 %v3302_v28  ;;  %v7534_v28 = vld [vmem:[#allocation37_spill] sm:$0xff]  ;;  %v3067_v4 = vmul.f32 %v6579_v22, %v7539_v52  ;;  %v7546_v52 = vld [vmem:[#allocation48_spill] sm:$0xff] }
 0x46f   : > { %2089 = vxpose.xlu0.b32.start [1/16] (narrow) %v6574_v3, 8  ;;  %5244 = vset.pattern.permute.xlu1 %v7425_v29  ;;  %v2223_v18 = vpop.permute.xlu1 %2222  ;;  %v2963_v3 = vmul.f32 %v6560_v1, %v7534_v28  ;;  %v2713_v44 = vadd.f32 %v2681_v40, %v2517_v43  ;;  %v3166_v43 = vadd.f32 %v6602_v49, %v3130_v25  ;;  %v7542_v28 = vld [vmem:[#allocation96_spill] sm:$0xff] }
 0x470   : > { %2442 = vperm.xlu1 %5244, %v6664_v46   ;;  %v2324_v34 = vmul.f32 %v6539_v55, %v2223_v18  ;;  %v2961_v18 = vmul.f32 %v6560_v1, %v7540_v59  ;;  %4997 = vmatpush3.bf16.msra.mxu1 %v5302_v20  ;;  %v5303_v40 = vld [vmem:[%s7290_s2 + $0x130] sm:$0xff]  }
 0x471   : > { %v3031_v12 = vadd.f32 %v2999_v61, %v2963_v3  ;;  %v2864_v3 = vadd.f32 %v7542_v28, %v2713_v44  ;;  %4998 = vmatprep.subr.bf16.mxu1 %v5303_v40  ;;  %vm3198_vm12 = vcmp.gt.f32.partialorder %v3166_v43, 0.0 }
 0x473   : > { %2090 = vxpose.xlu0.b32.cont [2/16] (narrow) %v6494_v21, 8  ;;  %v2238_v21 = vpop.permute.xlu0 %2237  ;;  %v3099_v31 = vadd.f32 %v3067_v4, %v3031_v12 }
 0x474   : > { %5246 = vset.pattern.permute.xlu1 %v7422_v33  ;;  %v2403_v2 = vpop.permute.xlu1 %2402  ;;  %4999 = vmatpush3.bf16.msra.mxu1 %v5303_v40  ;;  %v2327_v4 = vmul.f32 %v6539_v55, %v2238_v21 }
 0x475   : > { %v2488_v56 = vmul.f32 %v6533_v58, %v2403_v2  ;;  %2297 = vperm.xlu1 %5246, %v6729_v15   ;;  %v3096_v2 = vadd.f32 %v3064_v17, %v3028_v51  ;;  %v7545_v17 = vld [vmem:[#allocation27_spill] sm:$0xff] }
 0x476   : > { %v2966_v51 = vmul.f32 %v6560_v1, %v7545_v17 }
 0x477   : > { %2091 = vxpose.xlu0.b32.cont [3/16] (narrow) %v6475_v11, 8  ;;  %v2520_v16 = vadd.f32 %v2488_v56, %v2324_v34  ;;  %v2415_v61 = vpop.permute.xlu0 %2414  ;;  %v7544_v34 = vld [vmem:[#allocation41_spill] sm:$0xff]  ;;  %v2486_v56 = vmul.f32 %v6533_v58, %v2395_v37  ;;  %v3128_v44 = vadd.f32 %v3096_v2, %v2864_v3 }
 0x478   : > { %v3065_v25 = vmul.f32 %v6579_v22, %v7544_v34  ;;  %v2491_v10 = vmul.f32 %v6533_v58, %v2415_v61  ;;  %v5304_v37 = vld [vmem:[%s7290_s2 + $0x138] sm:$0xff]   ;;  %v7548_v61 = vld [vmem:[#allocation98_spill] sm:$0xff] }
 0x479   : > { %v2716_v11 = vadd.f32 %v2684_v26, %v2520_v16  ;;  %5249 = vset.pattern.permute.xlu1 %v7425_v29  ;;  %v2213_v39 = vpop.permute.xlu1 %2212  ;;  %v3230_v26 = vmul.f32 0.01, %v3166_v43  ;;  %5000 = vmatprep.subr.bf16.mxu1 %v5304_v37  ;;  %v3164_v3 = vadd.f32 %v6602_v49, %v3128_v44 }
 0x47a   : > { %2454 = vperm.xlu1 %5249, %v6746_v24   ;;  %v2322_v62 = vmul.f32 %v6539_v55, %v2213_v39  ;;  %v7547_v39 = vld [vmem:[#allocation50_spill] sm:$0xff]  ;;  %5001 = vmatpush3.bf16.msra.mxu1 %v5304_v37 }
 0x47b   : > { %2092 = vxpose.xlu0.b32.cont [4/16] (narrow) %v6627_v14, 8  ;;  %v2875_v6 = vadd.f32 %v7543_v8, %v2716_v11  ;;  %v3029_v14 = vadd.f32 %v2997_v27, %v2961_v18  ;;  %v3070_v57 = vmul.f32 %v6579_v22, %v7547_v39  ;;  %v2523_v27 = vadd.f32 %v2491_v10, %v2327_v4 }
 0x47c   : > { %v2518_v16 = vadd.f32 %v2486_v56, %v2322_v62  ;;  %vm3196_vm14 = vcmp.gt.f32.partialorder %v3164_v3, 0.0 }
 0x47d   : > { %v3131_v54 = vadd.f32 %v3099_v31, %v2875_v6  ;;  %v3097_v59 = vadd.f32 %v3065_v25, %v3029_v14  ;;  %v3262_v31 = vsel %vm3198_vm12, %v3166_v43, %v3230_v26  ;;  %v7549_v43 = vld [vmem:[#allocation104_spill] sm:$0xff]  ;;  %v3228_v14 = vmul.f32 0.01, %v3164_v3 }
 0x47e   : > { %5251 = vset.pattern.permute.xlu1 %v7422_v33  ;;  %v2591_v12 = vpop.permute.xlu1 %2590 }
 0x47f   : > { %2093 = vxpose.xlu0.b32.cont [5/16] (narrow) %v6526_v63, 8  ;;  %v2682_v20 = vmul.f32 %v6549_v32, %v2591_v12  ;;  %2302 = vperm.xlu1 %5251, %v6765_v7   ;;  %v3167_v41 = vadd.f32 %v6602_v49, %v3131_v54  ;;  %v3002_v63 = vmul.f32 %v6557_v38, %v7546_v52 }
 0x480   : > { %v3260_v44 = vsel %vm3196_vm14, %v3164_v3, %v3228_v14 }
 0x481   : > { %v2714_v18 = vadd.f32 %v2682_v20, %v2518_v16  ;;  %vm3199_vm13 = vcmp.gt.f32.partialorder %v3167_v41, 0.0  ;;  %v3231_v11 = vmul.f32 0.01, %v3167_v41  ;;  %v3034_v40 = vadd.f32 %v3002_v63, %v2966_v51  ;;  %v7550_v51 = vld [vmem:[#allocation46_spill] sm:$0xff] }
 0x482   : > { %v2611_v28 = vpop.permute.xlu1 %2610  ;;  %v2967_v52 = vmul.f32 %v6560_v1, %v7550_v51 }
 0x483   : > { %2094 = vxpose.xlu0.b32.cont [6/16] (narrow) %v6570_v53, 8  ;;  %v2867_v8 = vadd.f32 %v7548_v61, %v2714_v18  ;;  %v2687_v21 = vmul.f32 %v6549_v32, %v2611_v28  ;;  %5252 = vset.pattern.permute.xlu1 %v7425_v29  ;;  %v3263_v6 = vsel %vm3199_vm13, %v3167_v41, %v3231_v11  ;;  %v7553_v18 = vld [vmem:[#allocation44_spill] sm:$0xff]  ;;  %v7555_v61 = vld [vmem:[#allocation49_spill] sm:$0xff] }
 0x484   : > { %2466 = vperm.xlu1 %5252, %v6765_v7   ;;  %v3304_v62 = vpack.c.bf16 %v3263_v6, %v3262_v31  ;;  %v3102_v53 = vadd.f32 %v3070_v57, %v3034_v40  ;;  %v3000_v11 = vmul.f32 %v6557_v38, %v7553_v18  ;;  %v7556_v40 = vld [vmem:[#allocation45_spill] sm:$0xff]  ;;  %v7562_v18 = vld [vmem:[#allocation54_spill] sm:$0xff] }
 0x485   : > { %v3129_v2 = vadd.f32 %v3097_v59, %v2867_v8  ;;  %v2719_v34 = vadd.f32 %v2687_v21, %v2523_v27  ;;  %v7554_v27 = vld [vmem:[#allocation51_spill] sm:$0xff]  ;;  %v3068_v8 = vmul.f32 %v6579_v22, %v7555_v61 }
 0x486   : > { %v3071_v28 = vmul.f32 %v6579_v22, %v7554_v27 }
 0x487   : > { %2095 = vxpose.xlu0.b32.cont [7/16] (narrow) %v6514_v30, 8  ;;  %v3165_v25 = vadd.f32 %v6602_v49, %v3129_v2  ;;  %v2888_v56 = vadd.f32 %v7549_v43, %v2719_v34  ;;  %v2228_v54 = vpop.permute.xlu1 %2227  ;;  %v3001_v2 = vmul.f32 %v6557_v38, %v7556_v40  ;;  %v7557_v34 = vld [vmem:[#allocation105_spill] sm:$0xff] }
 0x488   : > { %5253 = vset.pattern.permute.xlu1 %v7422_v33  ;;  %v2325_v41 = vmul.f32 %v6539_v55, %v2228_v54 }
 0x489   : > { %v3134_v29 = vadd.f32 %v3102_v53, %v2888_v56  ;;  %2292 = vperm.xlu1 %5253, %v6758_v13   ;;  %vm3197_vm15 = vcmp.gt.f32.partialorder %v3165_v25, 0.0  ;;  %v3229_v10 = vmul.f32 0.01, %v3165_v25  ;;  %v7558_v56 = vld [vmem:[#allocation106_spill] sm:$0xff] }
 0x48b   : > { %2096 = vxpose.xlu0.b32.cont [8/16] (narrow) %v6554_v47, 8  ;;  %v3261_v12 = vsel %vm3197_vm15, %v3165_v25, %v3229_v10  ;;  %v2233_v47 = vpop.permute.xlu0 %2232  ;;  %v3170_v43 = vadd.f32 %v6602_v49, %v3134_v29  ;;  %v7559_v10 = vld [vmem:[#allocation26_spill] sm:$0xff] }
 0x48c   : > { %v2407_v30 = vpop.permute.xlu1 %2406  ;;  %v3303_v26 = vpack.c.bf16 %v3261_v12, %v3260_v44  ;;  %v2965_v44 = vmul.f32 %v6560_v1, %v7559_v10 }
 0x48d   : > { %5255 = vset.pattern.permute.xlu1 %v7418_v23  ;;  %v2489_v20 = vmul.f32 %v6533_v58, %v2407_v30  ;;  %v2326_v30 = vmul.f32 %v6539_v55, %v2233_v47  ;;  %vm3202_vm0 = vcmp.gt.f32.partialorder %v3170_v43, 0.0 }
 0x48e   : > { %2654 = vperm.xlu1 %5255, %v6758_v13   ;;  %4966 = vmatprep.mubr.bf16.mxu0 %v3303_v26 }
 0x48f   : > { %2097 = vxpose.xlu0.b32.cont [9/16] (narrow) %v6770_v0, 8  ;;  %4967 = vmatmul.mubr.bf16.gmra.mrb[60].mxu0 %v3304_v62  ;;  %v2521_v17 = vadd.f32 %v2489_v20, %v2325_v41 }
 0x491   : > { %v2603_v33 = vpop.permute.xlu1 %2602 }
 0x492   : > { %2658 = vperm.xlu1 %5255, %v6729_v15   ;;  %v2685_v37 = vmul.f32 %v6549_v32, %v2603_v33  ;;  %v3033_v33 = vadd.f32 %v3001_v2, %v2965_v44 }
 0x493   : > { %2098 = vxpose.xlu0.b32.cont [10/16] (narrow) %v6664_v46, 8  ;;  %v7551_v46 = vld [vmem:[#allocation47_spill] sm:$0xff] }
 0x494   : > { %v3003_v63 = vmul.f32 %v6557_v38, %v7551_v46  ;;  %v2717_v39 = vadd.f32 %v2685_v37, %v2521_v17  ;;  %v3234_v37 = vmul.f32 0.01, %v3170_v43 }
 0x496   : > { %v2243_v16 = vpop.permute.xlu1 %2242  ;;  %v3035_v21 = vadd.f32 %v3003_v63, %v2967_v52  ;;  %v2880_v53 = vadd.f32 %v7557_v34, %v2717_v39  ;;  %v7561_v63 = vld [vmem:[#allocation107_spill] sm:$0xff] }
 0x497   : > { %2099 = vxpose.xlu0.b32.cont [11/16] (narrow) %v6638_v60, 8  ;;  %v2607_v60 = vpop.permute.xlu0 %2606  ;;  %v2328_v4 = vmul.f32 %v6539_v55, %v2243_v16 }
 0x498   : > { %v3103_v25 = vadd.f32 %v3071_v28, %v3035_v21  ;;  %v2686_v16 = vmul.f32 %v6549_v32, %v2607_v60  ;;  %v7563_v28 = vld [vmem:[#allocation59_spill] sm:$0xff] }
 0x49b   : > { %2100 = vxpose.xlu0.b32.cont [12/16] (narrow) %v6809_v19, 8  ;;  %v2419_v23 = vpop.permute.xlu1 %2418  ;;  %v7552_v19 = vld [vmem:[#allocation43_spill] sm:$0xff]  ;;  %v2431_v6 = vpop.permute.xlu0 %2430 }
 0x49c   : > { %v2492_v0 = vmul.f32 %v6533_v58, %v2419_v23  ;;  %v2964_v59 = vmul.f32 %v6560_v1, %v7552_v19  ;;  %v3266_v19 = vsel %vm3202_vm0, %v3170_v43, %v3234_v37  ;;  %v2495_v39 = vmul.f32 %v6533_v58, %v2431_v6 }
 0x49e   : > { %v2524_v3 = vadd.f32 %v2492_v0, %v2328_v4  ;;  %v3032_v62 = vadd.f32 %v3000_v11, %v2964_v59  ;;  %v7560_v0 = vld [vmem:[#allocation9_spill] sm:$0xff]  ;;  %v2970_v11 = vmul.f32 %v6560_v1, %v7562_v18 }
 0x49f   : > { %2101 = vxpose.xlu0.b32.cont [13/16] (narrow) %v6746_v24, 8  ;;  %v2248_v29 = vpop.permute.xlu0 %2247  ;;  %v3069_v17 = vmul.f32 %v6579_v22, %v7560_v0 }
 0x4a0   : > { %v2615_v57 = vpop.permute.xlu1 %2614  ;;  %v3100_v12 = vadd.f32 %v3068_v8, %v3032_v62 }
 0x4a1   : > { %v2688_v31 = vmul.f32 %v6549_v32, %v2615_v57 }
 0x4a2   : > { %v3132_v20 = vadd.f32 %v3100_v12, %v2880_v53 }
 0x4a3   : > { %v2720_v24 = vadd.f32 %v2688_v31, %v2524_v3  ;;  %2102 = vxpose.xlu0.b32.cont [14/16] (narrow) %v6758_v13, 8  ;;  %v7564_v3 = vld [vmem:[#allocation60_spill] sm:$0xff]  ;;  %v2619_v61 = vpop.permute.xlu0 %2618 }
 0x4a4   : > { %v3168_v46 = vadd.f32 %v6602_v49, %v3132_v20  ;;  %v3074_v31 = vmul.f32 %v6579_v22, %v7564_v3  ;;  %v7567_v20 = vld [vmem:[#allocation55_spill] sm:$0xff] }
 0x4a5   : > { %v2891_v54 = vadd.f32 %v7558_v56, %v2720_v24  ;;  %v2411_v14 = vpop.permute.xlu1 %2410 }
 0x4a6   : > { %v2490_v13 = vmul.f32 %v6533_v58, %v2411_v14  ;;  %v3232_v40 = vmul.f32 0.01, %v3168_v46  ;;  %vm3200_vm2 = vcmp.gt.f32.partialorder %v3168_v46, 0.0 }
 0x4a7   : > { %v3135_v26 = vadd.f32 %v3103_v25, %v2891_v54  ;;  %2103 = vxpose.xlu0.b32.cont [15/16] (narrow) %v6729_v15, 8  ;;  %v3101_v15 = vadd.f32 %v3069_v17, %v3033_v33  ;;  %v7565_v25 = vld [vmem:[#allocation108_spill] sm:$0xff]  ;;  %v2631_v10 = vpop.permute.xlu0 %2630 }
 0x4a8   : > { %v2522_v23 = vadd.f32 %v2490_v13, %v2326_v30  ;;  %v3264_v54 = vsel %vm3200_vm2, %v3168_v46, %v3232_v40 }
 0x4a9   : > { %v3171_v41 = vadd.f32 %v6602_v49, %v3135_v26  ;;  %v2329_v26 = vmul.f32 %v6539_v55, %v2248_v29 }
 0x4aa   : > { %v2718_v51 = vadd.f32 %v2686_v16, %v2522_v23  ;;  %v2258_v52 = vpop.permute.xlu1 %2257  ;;  %v7566_v16 = vld [vmem:[#allocation82_spill] sm:$0xff]  ;;  %v2971_v23 = vmul.f32 %v6560_v1, %v7567_v20 }
 0x4ab   : > { %2104 = vxpose.xlu0.b32.end [16/16] (narrow) %v6765_v7, 8  ;;  %vm3203_vm1 = vcmp.gt.f32.partialorder %v3171_v41, 0.0  ;;  %v3235_v47 = vmul.f32 0.01, %v3171_v41  ;;  %v2331_v4 = vmul.f32 %v6539_v55, %v2258_v52  ;;  %v3006_v7 = vmul.f32 %v6557_v38, %v7563_v28  ;;  %v2427_v33 = vpop.permute.xlu0 %2426 }
 0x4ac   : > { %v2883_v60 = vadd.f32 %v7561_v63, %v2718_v51  ;;  %v7569_v51 = vld [vmem:[#allocation53_spill] sm:$0xff]  ;;  %v7570_v63 = vld [vmem:[#allocation83_spill] sm:$0xff] }
 0x4ad   : > { %v3267_v59 = vsel %vm3203_vm1, %v3171_v41, %v3235_v47  ;;  %v2527_v21 = vadd.f32 %v2495_v39, %v2331_v4  ;;  %v3038_v2 = vadd.f32 %v3006_v7, %v2970_v11  ;;  %v7568_v41 = vld [vmem:[#allocation57_spill] sm:$0xff]  ;;  %v3004_v52 = vmul.f32 %v6557_v38, %v7569_v51 }
 0x4ae   : > { %v3133_v57 = vadd.f32 %v3101_v15, %v2883_v60  ;;  %v3306_v27 = vpack.c.bf16 %v3267_v59, %v3266_v19  ;;  %v3007_v37 = vmul.f32 %v6557_v38, %v7568_v41  ;;  %v2689_v47 = vmul.f32 %v6549_v32, %v2619_v61  ;;  %v7571_v60 = vld [vmem:[#allocation29_spill] sm:$0xff] }
 0x4af   : > { %v2627_v8 = vpop.permute.xlu1 %2626  ;;  %v3106_v53 = vadd.f32 %v3074_v31, %v3038_v2  ;;  %v2278_v15 = vpop.permute.xlu0 %2277  ;;  %v2968_v4 = vmul.f32 %v6560_v1, %v7571_v60  ;;  %v2692_v59 = vmul.f32 %v6549_v32, %v2631_v10  ;;  %v7572_v39 = vld [vmem:[#allocation13_spill] sm:$0xff]  ;;  %v7574_v31 = vld [vmem:[#allocation11_spill] sm:$0xff]  ;;  %v7576_v2 = vld [vmem:[#allocation110_spill] sm:$0xff] }
 0x4b0   : > { %v2691_v24 = vmul.f32 %v6549_v32, %v2627_v8  ;;  %v3169_v62 = vadd.f32 %v6602_v49, %v3133_v57  ;;  %v3039_v19 = vadd.f32 %v3007_v37, %v2971_v23  ;;  %v3075_v57 = vmul.f32 %v6579_v22, %v7572_v39  ;;  %v7573_v7 = vld [vmem:[#allocation81_spill] sm:$0xff]  ;;  %v7585_v39 = vld [vmem:[#allocation111_spill] sm:$0xff] }
 0x4b1   : > { %v3072_v61 = vmul.f32 %v6579_v22, %v7574_v31  ;;  %v2335_v51 = vmul.f32 %v6539_v55, %v2278_v15 }
 0x4b2   : > { %v2723_v34 = vadd.f32 %v2691_v24, %v2527_v21  ;;  %vm3201_vm3 = vcmp.gt.f32.partialorder %v3169_v62, 0.0  ;;  %v3233_v6 = vmul.f32 0.01, %v3169_v62  ;;  %v3107_v21 = vadd.f32 %v3075_v57, %v3039_v19 }
 0x4b3   : > { %v2447_v24 = vpop.permute.xlu0 %2446 }
 0x4b4   : > { %v2904_v43 = vadd.f32 %v7565_v25, %v2723_v34  ;;  %v2423_v56 = vpop.permute.xlu1 %2422  ;;  %v3265_v14 = vsel %vm3201_vm3, %v3169_v62, %v3233_v6  ;;  %v7575_v62 = vld [vmem:[#allocation109_spill] sm:$0xff] }
 0x4b5   : > { %v3305_v44 = vpack.c.bf16 %v3265_v14, %v3264_v54  ;;  %v2493_v30 = vmul.f32 %v6533_v58, %v2423_v56  ;;  %v2494_v14 = vmul.f32 %v6533_v58, %v2427_v33 }
 0x4b6   : > { %v3138_v12 = vadd.f32 %v3106_v53, %v2904_v43  ;;  %v7577_v53 = vld [vmem:[#allocation52_spill] sm:$0xff] }
 0x4b7   : > { %4970 = vmatprep.mubr.bf16.mxu0 %v3305_v44  ;;  %v2525_v0 = vadd.f32 %v2493_v30, %v2329_v26  ;;  %v2969_v25 = vmul.f32 %v6560_v1, %v7577_v53  ;;  %v7578_v43 = vld [vmem:[#allocation56_spill] sm:$0xff] }
 0x4b8   : > { %4971 = vmatmul.mubr.bf16.gmra.mrb[64].mxu0 %v3306_v27  ;;  %v3036_v27 = vadd.f32 %v3004_v52, %v2968_v4  ;;  %v3174_v8 = vadd.f32 %v6602_v49, %v3138_v12  ;;  %v3005_v56 = vmul.f32 %v6557_v38, %v7578_v43  ;;  %v7579_v44 = vld [vmem:[#allocation84_spill] sm:$0xff]  ;;  %v7580_v12 = vld [vmem:[#allocation58_spill] sm:$0xff] }
 0x4b9   : > { %v2263_v13 = vpop.permute.xlu1 %2262  ;;  %v2721_v18 = vadd.f32 %v2689_v47, %v2525_v0  ;;  %v3073_v30 = vmul.f32 %v6579_v22, %v7580_v12  ;;  %v7581_v0 = vld [vmem:[#allocation32_spill] sm:$0xff]  ;;  %v7582_v52 = vld [vmem:[#allocation66_spill] sm:$0xff]  ;;  %v2273_v12 = vpop.permute.xlu0 %2272 }
 0x4ba   : > { %v2332_v46 = vmul.f32 %v6539_v55, %v2263_v13  ;;  %v3104_v54 = vadd.f32 %v3072_v61, %v3036_v27  ;;  %v2499_v13 = vmul.f32 %v6533_v58, %v2447_v24  ;;  %vm3206_vm4 = vcmp.gt.f32.partialorder %v3174_v8, 0.0  ;;  %v7584_v4 = vld [vmem:[#allocation68_spill] sm:$0xff] }
 0x4bb   : > { %2057 = vxpose.xlu1.b32.start [1/16] (narrow) %v7566_v16, 8  ;;  %v2896_v40 = vadd.f32 %v7575_v62, %v2721_v18  ;;  %v3238_v16 = vmul.f32 0.01, %v3174_v8  ;;  %v2974_v33 = vmul.f32 %v6560_v1, %v7581_v0  ;;  %v3010_v47 = vmul.f32 %v6557_v38, %v7582_v52  ;;  %v7594_v52 = vld [vmem:[#allocation62_spill] sm:$0xff] }
 0x4bc   : > { %v3078_v19 = vmul.f32 %v6579_v22, %v7584_v4 }
 0x4bd   : > { %v3136_v20 = vadd.f32 %v3104_v54, %v2896_v40 }
 0x4be   : > { %v2435_v17 = vpop.permute.xlu1 %2434 }
 0x4bf   : > { %v2496_v29 = vmul.f32 %v6533_v58, %v2435_v17  ;;  %2058 = vxpose.xlu1.b32.cont [2/16] (narrow) %v7570_v63, 8  ;;  %v3037_v17 = vadd.f32 %v3005_v56, %v2969_v25  ;;  %v3172_v27 = vadd.f32 %v6602_v49, %v3136_v20 }
 0x4c1   : > { %v2528_v11 = vadd.f32 %v2496_v29, %v2332_v46  ;;  %v7583_v29 = vld [vmem:[#allocation86_spill] sm:$0xff]  ;;  %v3105_v60 = vadd.f32 %v3073_v30, %v3037_v17  ;;  %vm3204_vm6 = vcmp.gt.f32.partialorder %v3172_v27, 0.0  ;;  %v7593_v17 = vld [vmem:[#allocation61_spill] sm:$0xff] }
 0x4c3   : > { %v2724_v28 = vadd.f32 %v2692_v59, %v2528_v11  ;;  %2059 = vxpose.xlu1.b32.cont [3/16] (narrow) %v7573_v7, 8  ;;  %v2253_v3 = vpop.permute.xlu1 %2252  ;;  %v2531_v59 = vadd.f32 %v2499_v13, %v2335_v51  ;;  %v3270_v11 = vsel %vm3206_vm4, %v3174_v8, %v3238_v16  ;;  %v3236_v8 = vmul.f32 0.01, %v3172_v27 }
 0x4c4   : > { %v2330_v6 = vmul.f32 %v6539_v55, %v2253_v3  ;;  %v3042_v3 = vadd.f32 %v3010_v47, %v2974_v33  ;;  %v7592_v33 = vld [vmem:[#allocation103_spill] sm:$0xff]  ;;  %v2972_v51 = vmul.f32 %v6560_v1, %v7593_v17  ;;  %v3008_v47 = vmul.f32 %v6557_v38, %v7594_v52 }
 0x4c5   : > { %v2907_v34 = vadd.f32 %v7576_v2, %v2724_v28  ;;  %v3268_v25 = vsel %vm3204_vm6, %v3172_v27, %v3236_v8 }
 0x4c6   : > { %v2526_v23 = vadd.f32 %v2494_v14, %v2330_v6  ;;  %v3110_v24 = vadd.f32 %v3078_v19, %v3042_v3  ;;  %v7587_v6 = vld [vmem:[#allocation85_spill] sm:$0xff]  ;;  %v7588_v14 = vld [vmem:[#allocation87_spill] sm:$0xff]  ;;  %v3040_v3 = vadd.f32 %v3008_v47, %v2972_v51 }
 0x4c7   : > { %v3139_v10 = vadd.f32 %v3107_v21, %v2907_v34  ;;  %2060 = vxpose.xlu1.b32.cont [4/16] (narrow) %v7579_v44, 8  ;;  %v7586_v21 = vld [vmem:[#allocation88_spill] sm:$0xff]  ;;  %v7607_v47 = vld [vmem:[#allocation33_spill] sm:$0xff] }
 0x4c8   : > { %v2623_v26 = vpop.permute.xlu1 %2622 }
 0x4c9   : > { %v2690_v41 = vmul.f32 %v6549_v32, %v2623_v26  ;;  %v3175_v37 = vadd.f32 %v6602_v49, %v3139_v10  ;;  %v7589_v10 = vld [vmem:[#allocation101_spill] sm:$0xff] }
 0x4ca   : > { %v7591_v26 = vld [vmem:[#allocation89_spill] sm:$0xff] }
 0x4cb   : > { %v2722_v46 = vadd.f32 %v2690_v41, %v2526_v23  ;;  %2061 = vxpose.xlu1.b32.cont [5/16] (narrow) %v7583_v29, 8  ;;  %vm3207_vm5 = vcmp.gt.f32.partialorder %v3175_v37, 0.0  ;;  %v3239_v63 = vmul.f32 0.01, %v3175_v37  ;;  %v2639_v41 = vpop.permute.xlu0 %2638 }
 0x4cc   : > { %v2643_v18 = vpop.permute.xlu1 %2642 }
 0x4cd   : > { %v2899_v57 = vadd.f32 %v7585_v39, %v2722_v46  ;;  %v2695_v15 = vmul.f32 %v6549_v32, %v2643_v18  ;;  %v3271_v28 = vsel %vm3207_vm5, %v3175_v37, %v3239_v63  ;;  %v7595_v46 = vld [vmem:[#allocation64_spill] sm:$0xff]  ;;  %v7596_v63 = vld [vmem:[#allocation65_spill] sm:$0xff] }
 0x4ce   : > { %v3308_v7 = vpack.c.bf16 %v3271_v28, %v3270_v11  ;;  %v2975_v29 = vmul.f32 %v6560_v1, %v7595_v46  ;;  %v7597_v11 = vld [vmem:[#allocation67_spill] sm:$0xff]  ;;  %v2976_v46 = vmul.f32 %v6560_v1, %v7607_v47 }
 0x4cf   : > { %v3137_v31 = vadd.f32 %v3105_v60, %v2899_v57  ;;  %v2727_v61 = vadd.f32 %v2695_v15, %v2531_v59  ;;  %2062 = vxpose.xlu1.b32.cont [6/16] (narrow) %v7586_v21, 8  ;;  %v3011_v60 = vmul.f32 %v6557_v38, %v7596_v63  ;;  %v7047_v59 = vpop.permute.xlu0 %2462  ;;  %v3076_v39 = vmul.f32 %v6579_v22, %v7597_v11  ;;  %v7598_v57 = vld [vmem:[#allocation69_spill] sm:$0xff]  ;;  %v7609_v11 = vld [vmem:[#allocation100_spill] sm:$0xff] }
 0x4d0   : > { %v3079_v15 = vmul.f32 %v6579_v22, %v7598_v57 }
 0x4d1   : > { %v3173_v62 = vadd.f32 %v6602_v49, %v3137_v31  ;;  %v2920_v40 = vadd.f32 %v6634_v5, %v2727_v61  ;;  %v2268_v2 = vpop.permute.xlu1 %2267  ;;  %v7590_v5 = vld [vmem:[#allocation93_spill] sm:$0xff]  ;;  %v3043_v31 = vadd.f32 %v3011_v60, %v2975_v29 }
 0x4d2   : > { %v2333_v16 = vmul.f32 %v6539_v55, %v2268_v2 }
 0x4d3   : > { %v3142_v34 = vadd.f32 %v3110_v24, %v2920_v40  ;;  %2063 = vxpose.xlu1.b32.cont [7/16] (narrow) %v7587_v6, 8  ;;  %vm3205_vm7 = vcmp.gt.f32.partialorder %v3173_v62, 0.0  ;;  %v3237_v53 = vmul.f32 0.01, %v3173_v62  ;;  %v7600_v24 = vld [vmem:[#allocation63_spill] sm:$0xff]  ;;  %v3108_v40 = vadd.f32 %v3076_v39, %v3040_v3 }
 0x4d4   : > { %v3111_v2 = vadd.f32 %v3079_v15, %v3043_v31 }
 0x4d5   : > { %v3269_v43 = vsel %vm3205_vm7, %v3173_v62, %v3237_v53  ;;  %v3009_v62 = vmul.f32 %v6557_v38, %v7600_v24  ;;  %v3178_v8 = vadd.f32 %v6602_v49, %v3142_v34  ;;  %v7601_v53 = vld [vmem:[#allocation102_spill] sm:$0xff]  ;;  %v7603_v34 = vld [vmem:[#allocation16_spill] sm:$0xff] }
 0x4d6   : > { %v2439_v56 = vpop.permute.xlu1 %2438  ;;  %v3307_v54 = vpack.c.bf16 %v3269_v43, %v3268_v25  ;;  %v7602_v43 = vld [vmem:[#allocation30_spill] sm:$0xff] }
 0x4d7   : > { %2064 = vxpose.xlu1.b32.cont [8/16] (narrow) %v7588_v14, 8  ;;  %v2497_v13 = vmul.f32 %v6533_v58, %v2439_v56  ;;  %v2973_v56 = vmul.f32 %v6560_v1, %v7602_v43  ;;  %v2288_v14 = vpop.permute.xlu0 %2287  ;;  %vm3210_vm8 = vcmp.gt.f32.partialorder %v3178_v8, 0.0 }
 0x4d8   : > { %4974 = vmatprep.mubr.bf16.mxu0 %v3307_v54  ;;  %v2334_v54 = vmul.f32 %v6539_v55, %v2273_v12  ;;  %v2337_v31 = vmul.f32 %v6539_v55, %v2288_v14 }
 0x4d9   : > { %4975 = vmatmul.mubr.bf16.gmra.mrb[68].mxu0 %v3308_v7  ;;  %v2529_v37 = vadd.f32 %v2497_v13, %v2333_v16  ;;  %v7599_v7 = vld [vmem:[#allocation99_spill] sm:$0xff] }
 0x4da   : > { %v7604_v16 = vld [vmem:[#allocation95_spill] sm:$0xff] }
 0x4db   : > { %2065 = vxpose.xlu1.b32.cont [9/16] (narrow) %v7589_v10, 8  ;;  %v2635_v44 = vpop.permute.xlu1 %2634  ;;  %v2651_v63 = vpop.permute.xlu0 %2650 }
 0x4dc   : > { %v2693_v20 = vmul.f32 %v6549_v32, %v2635_v44 }
 0x4de   : > { %v2725_v4 = vadd.f32 %v2693_v20, %v2529_v37  ;;  %v3242_v20 = vmul.f32 0.01, %v3178_v8 }
 0x4df   : > { %2066 = vxpose.xlu1.b32.cont [10/16] (narrow) %v7590_v5, 8  ;;  %v3041_v5 = vadd.f32 %v3009_v62, %v2973_v56 }
 0x4e0   : > { %v2283_v30 = vpop.permute.xlu1 %2282  ;;  %v2912_v61 = vadd.f32 %v6642_v45, %v2725_v4  ;;  %v7608_v4 = vld [vmem:[#allocation75_spill] sm:$0xff]  ;;  %v3274_v39 = vsel %vm3210_vm8, %v3178_v8, %v3242_v20 }
 0x4e1   : > { %v2336_v19 = vmul.f32 %v6539_v55, %v2283_v30  ;;  %v2694_v30 = vmul.f32 %v6549_v32, %v2639_v41  ;;  %v7606_v41 = vld [vmem:[#allocation17_spill] sm:$0xff] }
 0x4e2   : > { %v3140_v10 = vadd.f32 %v3108_v40, %v2912_v61  ;;  %v2697_v61 = vmul.f32 %v6549_v32, %v2651_v63 }
 0x4e3   : > { %2067 = vxpose.xlu1.b32.cont [11/16] (narrow) %v7591_v26, 8 }
 0x4e4   : > { %v3176_v51 = vadd.f32 %v6602_v49, %v3140_v10 }
 0x4e5   : > { %v2451_v23 = vpop.permute.xlu1 %2450 }
 0x4e6   : > { %v2500_v0 = vmul.f32 %v6533_v58, %v2451_v23  ;;  %v7605_v23 = vld [vmem:[#allocation72_spill] sm:$0xff]  ;;  %vm3208_vm10 = vcmp.gt.f32.partialorder %v3176_v51, 0.0 }
 0x4e7   : > { %2068 = vxpose.xlu1.b32.cont [12/16] (narrow) %v7592_v33, 8  ;;  %v3012_v12 = vmul.f32 %v6557_v38, %v7605_v23  ;;  %v7077_v33 = vld [vmem:[%s7293_s5] sm:$0xf] }
 0x4e8   : > { %v2532_v27 = vadd.f32 %v2500_v0, %v2336_v19  ;;  %v7081_v17 = vrot.slane %v7077_v33, %v7606_v41  ;;  %v3080_v19 = vmul.f32 %v6579_v22, %v7608_v4 }
 0x4e9   : > { %v3044_v15 = vadd.f32 %v3012_v12, %v2976_v46 }
 0x4ea   : > { %v2647_v18 = vpop.permute.xlu1 %2646 }
 0x4eb   : > { %v2696_v28 = vmul.f32 %v6549_v32, %v2647_v18  ;;  %2069 = vxpose.xlu1.b32.cont [13/16] (narrow) %v7599_v7, 8  ;;  %v3112_v23 = vadd.f32 %v3080_v19, %v3044_v15  ;;  %v7611_v19 = vld [vmem:[#allocation78_spill] sm:$0xff] }
 0x4ec   : > { %v7612_v15 = vld [vmem:[#allocation70_spill] sm:$0xff] }
 0x4ed   : > { %v2728_v21 = vadd.f32 %v2696_v28, %v2532_v27 }
 0x4ef   : > { %v2923_v6 = vadd.f32 %v6647_v35, %v2728_v21  ;;  %2070 = vxpose.xlu1.b32.cont [14/16] (narrow) %v7601_v53, 8  ;;  %v2443_v25 = vpop.permute.xlu1 %2442  ;;  %v3077_v35 = vmul.f32 %v6579_v22, %v7603_v34  ;;  %v2459_v34 = vpop.permute.xlu0 %2458 }
 0x4f0   : > { %v2498_v45 = vmul.f32 %v6533_v58, %v2443_v25 }
 0x4f1   : > { %v3143_v44 = vadd.f32 %v3111_v2, %v2923_v6  ;;  %v3109_v29 = vadd.f32 %v3077_v35, %v3041_v5  ;;  %v3240_v6 = vmul.f32 0.01, %v3176_v51 }
 0x4f2   : > { %v2530_v13 = vadd.f32 %v2498_v45, %v2334_v54 }
 0x4f3   : > { %v3179_v26 = vadd.f32 %v6602_v49, %v3143_v44  ;;  %2071 = vxpose.xlu1.b32.cont [15/16] (narrow) %v7604_v16, 8 }
 0x4f4   : > { %v2726_v37 = vadd.f32 %v2694_v30, %v2530_v13  ;;  %v7072_v0 = vpop.permute.xlu1 %2297  ;;  %v3272_v13 = vsel %vm3208_vm10, %v3176_v51, %v3240_v6 }
 0x4f5   : > { %vm3211_vm9 = vcmp.gt.f32.partialorder %v3179_v26, 0.0  ;;  %v3243_v52 = vmul.f32 0.01, %v3179_v26 }
 0x4f6   : > { %v2915_v60 = vadd.f32 %v6652_v48, %v2726_v37 }
 0x4f7   : > { %v4956_v18 = vpop.f32.mrb[48].mxu0  ;;  %2072 = vxpose.xlu1.b32.end [16/16] (narrow) %v7609_v11, 8  ;;  %v3275_v57 = vsel %vm3211_vm9, %v3179_v26, %v3243_v52 }
 0x4f8   : > { %v3141_v27 = vadd.f32 %v3109_v29, %v2915_v60  ;;  %v3408_v28 = vadd.f32 %v4956_v18, %v7081_v17  ;;  %v3399_v7 = vpop.f32.mrb[49].mxu0  ;;  %v3310_v3 = vpack.c.bf16 %v3275_v57, %v3274_v39  ;;  %v2663_v29 = vpop.permute.xlu0 %2662  ;;  %v7610_v60 = vld [vmem:[#allocation76_spill] sm:$0xff] }
 0x4f9   : > { %v3400_v48 = vadd.f32 %v3399_v7, %v7081_v17  ;;  %v4957_v21 = vpop.f32.mrb[50].mxu0  ;;  %v2455_v24 = vpop.permute.xlu1 %2454  ;;  %v2979_v4 = vmul.f32 %v6560_v1, %v7610_v60  ;;  %v2700_v18 = vmul.f32 %v6549_v32, %v2663_v29  ;;  %v7613_v7 = vld [vmem:[#allocation77_spill] sm:$0xff] }
 0x4fa   : > { %v3560_v62 = vmul.f32 0.01, %v3408_v28  ;;  %v3411_v40 = vadd.f32 %v4957_v21, %v7081_v17  ;;  %v2501_v2 = vmul.f32 %v6533_v58, %v2455_v24  ;;  %v3402_v8 = vpop.f32.mrb[51].mxu0  ;;  %vm3528_vm11 = vcmp.gt.f32.partialorder %v3408_v28, 0.0  ;;  %v7615_v21 = vld [vmem:[#allocation79_spill] sm:$0xff] }
 0x4fb   : > { %v3558_v53 = vmul.f32 0.01, %v3400_v48  ;;  %v3403_v25 = vadd.f32 %v3402_v8, %v7081_v17  ;;  %v3177_v43 = vadd.f32 %v6602_v49, %v3141_v27  ;;  %vm3526_vm12 = vcmp.gt.f32.partialorder %v3400_v48, 0.0 }
 0x4fc   : > { %vm3529_vm13 = vcmp.gt.f32.partialorder %v3411_v40, 0.0  ;;  %v3561_v56 = vmul.f32 0.01, %v3411_v40  ;;  %v2533_v54 = vadd.f32 %v2501_v2, %v2337_v31  ;;  %v3592_v10 = vsel %vm3528_vm11, %v3408_v28, %v3560_v62 }
 0x4fd   : > { %vm3527_vm14 = vcmp.gt.f32.partialorder %v3403_v25, 0.0  ;;  %v3559_v14 = vmul.f32 0.01, %v3403_v25  ;;  %vm3209_vm15 = vcmp.gt.f32.partialorder %v3177_v43, 0.0  ;;  %v3241_v45 = vmul.f32 0.01, %v3177_v43 }
 0x4fe   : > { %v3593_v44 = vsel %vm3529_vm13, %v3411_v40, %v3561_v56  ;;  %v2729_v5 = vadd.f32 %v2697_v61, %v2533_v54  ;;  %v2303_v30 = vpop.permute.xlu1 %2302  ;;  %v3590_v16 = vsel %vm3526_vm12, %v3400_v48, %v3558_v53  ;;  %v2977_v27 = vmul.f32 %v6560_v1, %v7612_v15  ;;  %v7614_v61 = vld [vmem:[#allocation71_spill] sm:$0xff] }
 0x4ff   : > { %v3640_v35 = vpack.c.bf16 %v3593_v44, %v3592_v10  ;;  %v3273_v26 = vsel %vm3209_vm15, %v3177_v43, %v3241_v45  ;;  %v3591_v20 = vsel %vm3527_vm14, %v3403_v25, %v3559_v14  ;;  %v2340_v46 = vmul.f32 %v6539_v55, %v2303_v30  ;;  %v7616_v25 = vld [vmem:[#allocation74_spill] sm:$0xff]  ;;  %v7617_v45 = vld [vmem:[#allocation73_spill] sm:$0xff] }
 0x500   : > { %v2928_v12 = vadd.f32 %v6734_v36, %v2729_v5  ;;  %v3309_v37 = vpack.c.bf16 %v3273_v26, %v3272_v13  ;;  %v3639_v41 = vpack.c.bf16 %v3591_v20, %v3590_v16  ;;  %v3015_v36 = vmul.f32 %v6557_v38, %v7611_v19  ;;  %v7618_v5 = vld [vmem:[#allocation80_spill] sm:$0xff] }
 0x501   : > { %v2502_v31 = vmul.f32 %v6533_v58, %v2459_v34  ;;  %v3013_v48 = vmul.f32 %v6557_v38, %v7614_v61  ;;  %v3081_v24 = vmul.f32 %v6579_v22, %v7615_v21  ;;  %v2339_v40 = vmul.f32 %v6539_v55, %v7072_v0  ;;  %v5306_v21 = vld [vmem:[%s7291_s3 + $0x48] sm:$0xff]  }
 0x502   : > { %v3144_v52 = vadd.f32 %v3112_v23, %v2928_v12  ;;  %4978 = vmatprep.mubr.bf16.mxu0 %v3309_v37  ;;  %5002 = vmatprep.mubr.bf16.mxu1 %v3639_v41  ;;  %v3047_v28 = vadd.f32 %v3015_v36, %v2979_v4  ;;  %v2978_v43 = vmul.f32 %v6560_v1, %v7616_v25 }
 0x503   : > { %4979 = vmatmul.mubr.bf16.gmra.mrb[72].mxu0 %v3310_v3  ;;  %5003 = vmatmul.mubr.bf16.vlgmr.msra.gmra.mrb[80].mxu1 %v3640_v35  ;;  %v2467_v47 = vpop.permute.xlu1 %2466  ;;  %v3083_v3 = vmul.f32 %v6579_v22, %v7613_v7  ;;  %v3045_v53 = vadd.f32 %v3013_v48, %v2977_v27  ;;  %v2503_v54 = vmul.f32 %v6533_v58, %v7047_v59  ;;  %v5305_v48 = vld [vmem:[%s7291_s3 + $0x40] sm:$0xff]  }
 0x504   : > { %v2504_v51 = vmul.f32 %v6533_v58, %v2467_v47  ;;  %v3014_v10 = vmul.f32 %v6557_v38, %v7617_v45  ;;  %v3180_v0 = vadd.f32 %v6602_v49, %v3144_v52  ;;  %5034 = vmatprep.subr.bf16.mxu0 %v5305_v48 }
 0x505   : > { %v3115_v56 = vadd.f32 %v3083_v3, %v3047_v28  ;;  %v3113_v44 = vadd.f32 %v3081_v24, %v3045_v53  ;;  %v2535_v30 = vadd.f32 %v2503_v54, %v2339_v40  ;;  %5035 = vmatpush3.bf16.msra.mxu0 %v5305_v48  ;;  %v5307_v24 = vld [vmem:[%s7291_s3 + $0x50] sm:$0xff]   ;;  %v5309_v54 = vld [vmem:[%s7291_s3 + $0x60] sm:$0xff]  }
 0x506   : > { %v2536_v63 = vadd.f32 %v2504_v51, %v2340_v46  ;;  %v3046_v35 = vadd.f32 %v3014_v10, %v2978_v43  ;;  %v3244_v16 = vmul.f32 0.01, %v3180_v0  ;;  %vm3212_vm0 = vcmp.gt.f32.partialorder %v3180_v0, 0.0  ;;  %5036 = vmatprep.subr.bf16.mxu0 %v5306_v21 }
 0x508   : > { %v2293_v11 = vpop.permute.xlu1 %2292  ;;  %v2732_v39 = vadd.f32 %v2700_v18, %v2536_v63 }
 0x509   : > { %v2338_v57 = vmul.f32 %v6539_v55, %v2293_v11  ;;  %v3082_v55 = vmul.f32 %v6579_v22, %v7618_v5  ;;  %5037 = vmatpush3.bf16.msra.mxu0 %v5306_v21 }
 0x50a   : > { %v2939_v2 = vadd.f32 %v6738_v9, %v2732_v39  ;;  %5038 = vmatprep.subr.bf16.mxu0 %v5307_v24 }
 0x50b   : > { %v2534_v8 = vadd.f32 %v2502_v31, %v2338_v57  ;;  %v3114_v59 = vadd.f32 %v3082_v55, %v3046_v35  ;;  %v5312_v35 = vld [vmem:[%s7291_s3 + $0x78] sm:$0xff]  }
 0x50c   : > { %v3147_v13 = vadd.f32 %v3115_v56, %v2939_v2 }
 0x50d   : > { %v2655_v62 = vpop.permute.xlu1 %2654  ;;  %5039 = vmatpush3.bf16.msra.mxu0 %v5307_v24 }
 0x50e   : > { %v2698_v6 = vmul.f32 %v6549_v32, %v2655_v62  ;;  %v3183_v22 = vadd.f32 %v6602_v49, %v3147_v13  ;;  %v5308_v62 = vld [vmem:[%s7291_s3 + $0x58] sm:$0xff]  }
 0x50f   : > { %5040 = vmatprep.subr.bf16.mxu0 %v5308_v62 }
 0x510   : > { %v2730_v14 = vadd.f32 %v2698_v6, %v2534_v8  ;;  %vm3215_vm2 = vcmp.gt.f32.partialorder %v3183_v22, 0.0  ;;  %v3247_v4 = vmul.f32 0.01, %v3183_v22 }
 0x511   : > { %v2659_v9 = vpop.permute.xlu1 %2658  ;;  %5041 = vmatpush3.bf16.msra.mxu0 %v5308_v62 }
 0x512   : > { %v2931_v34 = vadd.f32 %v6741_v50, %v2730_v14  ;;  %v2699_v1 = vmul.f32 %v6549_v32, %v2659_v9  ;;  %v3276_v32 = vsel %vm3212_vm0, %v3180_v0, %v3244_v16  ;;  %v3279_v57 = vsel %vm3215_vm2, %v3183_v22, %v3247_v4  ;;  %5042 = vmatprep.subr.bf16.mxu0 %v5309_v54 }
 0x514   : > { %v3145_v26 = vadd.f32 %v3113_v44, %v2931_v34  ;;  %v2731_v58 = vadd.f32 %v2699_v1, %v2535_v30  ;;  %v5310_v34 = vld [vmem:[%s7291_s3 + $0x68] sm:$0xff]   ;;  %v5311_v1 = vld [vmem:[%s7291_s3 + $0x70] sm:$0xff]  }
 0x515   : > { %5043 = vmatpush3.bf16.msra.mxu0 %v5309_v54 }
 0x516   : > { %v3181_v38 = vadd.f32 %v6602_v49, %v3145_v26  ;;  %v2936_v20 = vadd.f32 %v6731_v42, %v2731_v58  ;;  %5044 = vmatprep.subr.bf16.mxu0 %v5310_v34 }
 0x518   : > { %v3146_v23 = vadd.f32 %v3114_v59, %v2936_v20  ;;  %v4960_v12 = vpop.f32.mrb[52].mxu0  ;;  %vm3213_vm1 = vcmp.gt.f32.partialorder %v3181_v38, 0.0  ;;  %v3245_v37 = vmul.f32 0.01, %v3181_v38 }
 0x519   : > { %v3424_v50 = vadd.f32 %v4960_v12, %v7081_v17  ;;  %v3415_v41 = vpop.f32.mrb[53].mxu0  ;;  %5045 = vmatpush3.bf16.msra.mxu0 %v5310_v34 }
 0x51a   : > { %v3182_v52 = vadd.f32 %v6602_v49, %v3146_v23  ;;  %v3416_v47 = vadd.f32 %v3415_v41, %v7081_v17  ;;  %v4961_v46 = vpop.f32.mrb[54].mxu0  ;;  %v3277_v51 = vsel %vm3213_vm1, %v3181_v38, %v3245_v37  ;;  %5046 = vmatprep.subr.bf16.mxu0 %v5311_v1 }
 0x51b   : > { %v3564_v29 = vmul.f32 0.01, %v3424_v50  ;;  %v3427_v42 = vadd.f32 %v4961_v46, %v7081_v17  ;;  %v3418_v63 = vpop.f32.mrb[55].mxu0  ;;  %v3311_v60 = vpack.c.bf16 %v3277_v51, %v3276_v32  ;;  %vm3532_vm3 = vcmp.gt.f32.partialorder %v3424_v50, 0.0 }
 0x51c   : > { %v3562_v19 = vmul.f32 0.01, %v3416_v47  ;;  %v3419_v36 = vadd.f32 %v3418_v63, %v7081_v17  ;;  %vm3214_vm4 = vcmp.gt.f32.partialorder %v3182_v52, 0.0  ;;  %vm3530_vm5 = vcmp.gt.f32.partialorder %v3416_v47, 0.0 }
 0x51d   : > { %vm3533_vm6 = vcmp.gt.f32.partialorder %v3427_v42, 0.0  ;;  %v3565_v18 = vmul.f32 0.01, %v3427_v42  ;;  %4982 = vmatprep.mubr.bf16.mxu0 %v3311_v60  ;;  %v3246_v49 = vmul.f32 0.01, %v3182_v52  ;;  %v3596_v15 = vsel %vm3532_vm3, %v3424_v50, %v3564_v29  ;;  %5047 = vmatpush3.bf16.msra.mxu0 %v5311_v1 }
 0x51e   : > { %vm3531_vm7 = vcmp.gt.f32.partialorder %v3419_v36, 0.0  ;;  %v3563_v11 = vmul.f32 0.01, %v3419_v36  ;;  %v3594_v7 = vsel %vm3530_vm5, %v3416_v47, %v3562_v19  ;;  %5048 = vmatprep.subr.bf16.mxu0 %v5312_v35 }
 0x51f   : > { %v3278_v39 = vsel %vm3214_vm4, %v3182_v52, %v3246_v49  ;;  %v3597_v27 = vsel %vm3533_vm6, %v3427_v42, %v3565_v18 }
 0x520   : > { %v3312_v28 = vpack.c.bf16 %v3279_v57, %v3278_v39  ;;  %v3595_v3 = vsel %vm3531_vm7, %v3419_v36, %v3563_v11  ;;  %v3642_v31 = vpack.c.bf16 %v3597_v27, %v3596_v15 }
 0x521   : > { %v3641_v61 = vpack.c.bf16 %v3595_v3, %v3594_v7  ;;  %5049 = vmatpush3.bf16.msra.mxu0 %v5312_v35 }
 0x522   : > { %4983 = vmatmul.mubr.bf16.gmra.mrb[76].mxu0 %v3312_v28 }
 0x523   : > { %5006 = vmatprep.mubr.bf16.mxu1 %v3641_v61 }
 0x524   : > { %5007 = vmatmul.mubr.bf16.gmra.mrb[84].mxu1 %v3642_v31 }
 0x541   : > { %v4964_v40 = vpop.f32.mrb[56].mxu0 }
 0x542   : > { %v3440_v2 = vadd.f32 %v4964_v40, %v7081_v17  ;;  %v3431_v8 = vpop.f32.mrb[57].mxu0 }
 0x543   : > { %v3432_v6 = vadd.f32 %v3431_v8, %v7081_v17  ;;  %v4965_v53 = vpop.f32.mrb[58].mxu0 }
 0x544   : > { %v3568_v25 = vmul.f32 0.01, %v3440_v2  ;;  %v3443_v43 = vadd.f32 %v4965_v53, %v7081_v17  ;;  %v3434_v56 = vpop.f32.mrb[59].mxu0  ;;  %vm3536_vm8 = vcmp.gt.f32.partialorder %v3440_v2, 0.0 }
 0x545   : > { %v3566_v14 = vmul.f32 0.01, %v3432_v6  ;;  %v3435_v45 = vadd.f32 %v3434_v56, %v7081_v17  ;;  %vm3534_vm9 = vcmp.gt.f32.partialorder %v3432_v6, 0.0 }
 0x546   : > { %vm3537_vm10 = vcmp.gt.f32.partialorder %v3443_v43, 0.0  ;;  %v3569_v10 = vmul.f32 0.01, %v3443_v43  ;;  %v3600_v5 = vsel %vm3536_vm8, %v3440_v2, %v3568_v25 }
 0x547   : > { %vm3535_vm11 = vcmp.gt.f32.partialorder %v3435_v45, 0.0  ;;  %v3567_v44 = vmul.f32 0.01, %v3435_v45  ;;  %v3598_v9 = vsel %vm3534_vm9, %v3432_v6, %v3566_v14 }
 0x548   : > { %v3601_v55 = vsel %vm3537_vm10, %v3443_v43, %v3569_v10 }
 0x549   : > { %v3599_v0 = vsel %vm3535_vm11, %v3435_v45, %v3567_v44  ;;  %v3644_v30 = vpack.c.bf16 %v3601_v55, %v3600_v5  ;;  %v7619_v55 = vld [vmem:[#allocation12_spill] sm:$0xff] }
 0x54a   : > { %v3643_v13 = vpack.c.bf16 %v3599_v0, %v3598_v9  ;;  %v3657_v9 = vsub.s32 3, %v7619_v55 }
 0x54c   : > { %5010 = vmatprep.mubr.bf16.mxu1 %v3643_v13  ;;  %v7184_v0 = vrot.slane %v7077_v33, %v3657_v9 }
 0x54d   : > { %5011 = vmatmul.mubr.bf16.gmra.mrb[88].mxu1 %v3644_v30 }
 0x562   : > { %v4968_v26 = vpop.f32.mrb[60].mxu0 }
 0x563   : > { %v3456_v58 = vadd.f32 %v4968_v26, %v7081_v17  ;;  %v3447_v59 = vpop.f32.mrb[61].mxu0 }
 0x564   : > { %v3448_v16 = vadd.f32 %v3447_v59, %v7081_v17  ;;  %v4969_v38 = vpop.f32.mrb[62].mxu0 }
 0x565   : > { %v3572_v20 = vmul.f32 0.01, %v3456_v58  ;;  %v3459_v22 = vadd.f32 %v4969_v38, %v7081_v17  ;;  %v3450_v23 = vpop.f32.mrb[63].mxu0  ;;  %vm3540_vm12 = vcmp.gt.f32.partialorder %v3456_v58, 0.0 }
 0x566   : > { %v3570_v12 = vmul.f32 0.01, %v3448_v16  ;;  %v3451_v37 = vadd.f32 %v3450_v23, %v7081_v17  ;;  %vm3538_vm13 = vcmp.gt.f32.partialorder %v3448_v16, 0.0 }
 0x567   : > { %vm3541_vm14 = vcmp.gt.f32.partialorder %v3459_v22, 0.0  ;;  %v3573_v50 = vmul.f32 0.01, %v3459_v22  ;;  %v3604_v32 = vsel %vm3540_vm12, %v3456_v58, %v3572_v20 }
 0x568   : > { %vm3539_vm15 = vcmp.gt.f32.partialorder %v3451_v37, 0.0  ;;  %v3571_v41 = vmul.f32 0.01, %v3451_v37  ;;  %v3602_v47 = vsel %vm3538_vm13, %v3448_v16, %v3570_v12 }
 0x569   : > { %v3605_v52 = vsel %vm3541_vm14, %v3459_v22, %v3573_v50 }
 0x56a   : > { %v3603_v46 = vsel %vm3539_vm15, %v3451_v37, %v3571_v41  ;;  %v3646_v51 = vpack.c.bf16 %v3605_v52, %v3604_v32 }
 0x56b   : > { %v3645_v29 = vpack.c.bf16 %v3603_v46, %v3602_v47 }
 0x56d   : > { %5014 = vmatprep.mubr.bf16.mxu1 %v3645_v29 }
 0x56e   : > { %5015 = vmatmul.mubr.bf16.gmra.mrb[92].mxu1 %v3646_v51 }
 0x58b   : > { %v4972_v42 = vpop.f32.mrb[64].mxu0 }
 0x58c   : > { %v3472_v63 = vadd.f32 %v4972_v42, %v7081_v17  ;;  %v3463_v60 = vpop.f32.mrb[65].mxu0 }
 0x58d   : > { %v3464_v4 = vadd.f32 %v3463_v60, %v7081_v17  ;;  %v4973_v19 = vpop.f32.mrb[66].mxu0 }
 0x58e   : > { %v3576_v36 = vmul.f32 0.01, %v3472_v63  ;;  %v3475_v18 = vadd.f32 %v4973_v19, %v7081_v17  ;;  %v3466_v49 = vpop.f32.mrb[67].mxu0  ;;  %vm3544_vm0 = vcmp.gt.f32.partialorder %v3472_v63, 0.0 }
 0x58f   : > { %v3574_v11 = vmul.f32 0.01, %v3464_v4  ;;  %v3467_v39 = vadd.f32 %v3466_v49, %v7081_v17  ;;  %vm3542_vm1 = vcmp.gt.f32.partialorder %v3464_v4, 0.0 }
 0x590   : > { %vm3545_vm2 = vcmp.gt.f32.partialorder %v3475_v18, 0.0  ;;  %v3577_v57 = vmul.f32 0.01, %v3475_v18  ;;  %v3608_v27 = vsel %vm3544_vm0, %v3472_v63, %v3576_v36 }
 0x591   : > { %vm3543_vm3 = vcmp.gt.f32.partialorder %v3467_v39, 0.0  ;;  %v3575_v15 = vmul.f32 0.01, %v3467_v39  ;;  %v3606_v7 = vsel %vm3542_vm1, %v3464_v4, %v3574_v11 }
 0x592   : > { %v3609_v28 = vsel %vm3545_vm2, %v3475_v18, %v3577_v57 }
 0x593   : > { %v3607_v3 = vsel %vm3543_vm3, %v3467_v39, %v3575_v15  ;;  %v3648_v31 = vpack.c.bf16 %v3609_v28, %v3608_v27 }
 0x594   : > { %v3647_v61 = vpack.c.bf16 %v3607_v3, %v3606_v7 }
 0x596   : > { %5018 = vmatprep.mubr.bf16.mxu1 %v3647_v61 }
 0x597   : > { %5019 = vmatmul.mubr.bf16.gmra.mrb[96].mxu1 %v3648_v31 }
 0x5ac   : > { %v4976_v48 = vpop.f32.mrb[68].mxu0 }
 0x5ad   : > { %v3488_v21 = vadd.f32 %v4976_v48, %v7081_v17  ;;  %v3479_v24 = vpop.f32.mrb[69].mxu0 }
 0x5ae   : > { %v3480_v62 = vadd.f32 %v3479_v24, %v7081_v17  ;;  %v4977_v40 = vpop.f32.mrb[70].mxu0 }
 0x5af   : > { %v3580_v2 = vmul.f32 0.01, %v3488_v21  ;;  %v3491_v8 = vadd.f32 %v4977_v40, %v7081_v17  ;;  %v3482_v6 = vpop.f32.mrb[71].mxu0  ;;  %vm3548_vm4 = vcmp.gt.f32.partialorder %v3488_v21, 0.0 }
 0x5b0   : > { %v3578_v53 = vmul.f32 0.01, %v3480_v62  ;;  %v3483_v25 = vadd.f32 %v3482_v6, %v7081_v17  ;;  %vm3546_vm5 = vcmp.gt.f32.partialorder %v3480_v62, 0.0 }
 0x5b1   : > { %vm3549_vm6 = vcmp.gt.f32.partialorder %v3491_v8, 0.0  ;;  %v3581_v43 = vmul.f32 0.01, %v3491_v8  ;;  %v3612_v54 = vsel %vm3548_vm4, %v3488_v21, %v3580_v2 }
 0x5b2   : > { %vm3547_vm7 = vcmp.gt.f32.partialorder %v3483_v25, 0.0  ;;  %v3579_v56 = vmul.f32 0.01, %v3483_v25  ;;  %v3610_v45 = vsel %vm3546_vm5, %v3480_v62, %v3578_v53 }
 0x5b3   : > { %v3613_v14 = vsel %vm3549_vm6, %v3491_v8, %v3581_v43 }
 0x5b4   : > { %v3611_v10 = vsel %vm3547_vm7, %v3483_v25, %v3579_v56  ;;  %v3650_v44 = vpack.c.bf16 %v3613_v14, %v3612_v54 }
 0x5b5   : > { %v3649_v5 = vpack.c.bf16 %v3611_v10, %v3610_v45 }
 0x5b7   : > { %5022 = vmatprep.mubr.bf16.mxu1 %v3649_v5 }
 0x5b8   : > { %5023 = vmatmul.mubr.bf16.gmra.mrb[100].mxu1 %v3650_v44 }
 0x5d6   : > { %v4980_v30 = vpop.f32.mrb[72].mxu0  ;;  %v5004_v13 = vpop.f32.mrb[80].mxu1 }
 0x5d7   : > { %v3504_v34 = vadd.f32 %v4980_v30, %v7081_v17  ;;  %v3495_v1 = vpop.f32.mrb[73].mxu0  ;;  %v3750_v35 = vadd.f32 %v5004_v13, %v7184_v0  ;;  %v3741_v26 = vpop.f32.mrb[81].mxu1 }
 0x5d8   : > { %v3496_v58 = vadd.f32 %v3495_v1, %v7081_v17  ;;  %v4981_v59 = vpop.f32.mrb[74].mxu0  ;;  %v3742_v16 = vadd.f32 %v3741_v26, %v7184_v0  ;;  %v5005_v38 = vpop.f32.mrb[82].mxu1 }
 0x5d9   : > { %v3584_v20 = vmul.f32 0.01, %v3504_v34  ;;  %vm3870_vm8 = vcmp.gt.f32.partialorder %v3750_v35, 0.0  ;;  %v3902_v22 = vmul.f32 0.01, %v3750_v35  ;;  %vm3552_vm9 = vcmp.gt.f32.partialorder %v3504_v34, 0.0 }
 0x5da   : > { %vm3550_vm10 = vcmp.gt.f32.partialorder %v3496_v58, 0.0  ;;  %v3582_v33 = vmul.f32 0.01, %v3496_v58  ;;  %v3507_v23 = vadd.f32 %v4981_v59, %v7081_v17  ;;  %v3498_v12 = vpop.f32.mrb[75].mxu0  ;;  %v3744_v37 = vpop.f32.mrb[83].mxu1  ;;  %vm3868_vm11 = vcmp.gt.f32.partialorder %v3742_v16, 0.0 }
 0x5db   : > { %v3934_v50 = vsel %vm3870_vm8, %v3750_v35, %v3902_v22  ;;  %v3499_v41 = vadd.f32 %v3498_v12, %v7081_v17  ;;  %v3753_v32 = vadd.f32 %v5005_v38, %v7184_v0  ;;  %v3900_v47 = vmul.f32 0.01, %v3742_v16 }
 0x5dc   : > { %vm3553_vm12 = vcmp.gt.f32.partialorder %v3507_v23, 0.0  ;;  %v3585_v52 = vmul.f32 0.01, %v3507_v23  ;;  %v3745_v46 = vadd.f32 %v3744_v37, %v7184_v0  ;;  %v3616_v63 = vsel %vm3552_vm9, %v3504_v34, %v3584_v20 }
 0x5dd   : > { %vm3551_vm13 = vcmp.gt.f32.partialorder %v3499_v41, 0.0  ;;  %v3583_v51 = vmul.f32 0.01, %v3499_v41  ;;  %vm3871_vm14 = vcmp.gt.f32.partialorder %v3753_v32, 0.0  ;;  %v3903_v29 = vmul.f32 0.01, %v3753_v32 }
 0x5de   : > { %vm3869_vm15 = vcmp.gt.f32.partialorder %v3745_v46, 0.0  ;;  %v3901_v42 = vmul.f32 0.01, %v3745_v46  ;;  %v3617_v60 = vsel %vm3553_vm12, %v3507_v23, %v3585_v52  ;;  %v3614_v19 = vsel %vm3550_vm10, %v3496_v58, %v3582_v33 }
 0x5df   : > { %v3935_v4 = vsel %vm3871_vm14, %v3753_v32, %v3903_v29  ;;  %v3615_v36 = vsel %vm3551_vm13, %v3499_v41, %v3583_v51  ;;  %v3652_v18 = vpack.c.bf16 %v3617_v60, %v3616_v63  ;;  %v3932_v39 = vsel %vm3868_vm11, %v3742_v16, %v3900_v47 }
 0x5e0   : > { %v3982_v49 = vpack.c.bf16 %v3935_v4, %v3934_v50  ;;  %v3651_v11 = vpack.c.bf16 %v3615_v36, %v3614_v19  ;;  %v3933_v57 = vsel %vm3869_vm15, %v3745_v46, %v3901_v42 }
 0x5e1   : > { %v3981_v15 = vpack.c.bf16 %v3933_v57, %v3932_v39 }
 0x5e2   : > { %5026 = vmatprep.mubr.bf16.mxu1 %v3651_v11 }
 0x5e3   : > { %5027 = vmatmul.mubr.bf16.gmra.mrb[104].mxu1 %v3652_v18  ;;  %5050 = vmatprep.mubr.bf16.mxu0 %v3981_v15 }
 0x5e4   : > { %5051 = vmatmul.mubr.bf16.vlgmr.msra.gmra.mrb[80].mxu0 %v3982_v49 }
 0x5f5   : > { %v4984_v27 = vpop.f32.mrb[76].mxu0 }
 0x5f6   : > { %v3520_v28 = vadd.f32 %v4984_v27, %v7081_v17  ;;  %v3511_v7 = vpop.f32.mrb[77].mxu0 }
 0x5f7   : > { %v3512_v3 = vadd.f32 %v3511_v7, %v7081_v17  ;;  %v4985_v31 = vpop.f32.mrb[78].mxu0  ;;  %v5008_v61 = vpop.f32.mrb[84].mxu1 }
 0x5f8   : > { %v3588_v48 = vmul.f32 0.01, %v3520_v28  ;;  %v3523_v21 = vadd.f32 %v4985_v31, %v7081_v17  ;;  %v3514_v24 = vpop.f32.mrb[79].mxu0  ;;  %v3766_v62 = vadd.f32 %v5008_v61, %v7184_v0  ;;  %v3757_v40 = vpop.f32.mrb[85].mxu1  ;;  %vm3556_vm0 = vcmp.gt.f32.partialorder %v3520_v28, 0.0 }
 0x5f9   : > { %v3586_v2 = vmul.f32 0.01, %v3512_v3  ;;  %v3515_v8 = vadd.f32 %v3514_v24, %v7081_v17  ;;  %v3758_v6 = vadd.f32 %v3757_v40, %v7184_v0  ;;  %v5009_v53 = vpop.f32.mrb[86].mxu1  ;;  %vm3554_vm1 = vcmp.gt.f32.partialorder %v3512_v3, 0.0 }
 0x5fa   : > { %vm3557_vm2 = vcmp.gt.f32.partialorder %v3523_v21, 0.0  ;;  %v3589_v25 = vmul.f32 0.01, %v3523_v21  ;;  %vm3874_vm4 = vcmp.gt.f32.partialorder %v3766_v62, 0.0  ;;  %v3906_v56 = vmul.f32 0.01, %v3766_v62 }
 0x5fb   : > { %vm3555_vm3 = vcmp.gt.f32.partialorder %v3515_v8, 0.0  ;;  %v3587_v43 = vmul.f32 0.01, %v3515_v8  ;;  %v3904_v54 = vmul.f32 0.01, %v3758_v6  ;;  %v3769_v14 = vadd.f32 %v5009_v53, %v7184_v0  ;;  %v3760_v45 = vpop.f32.mrb[87].mxu1 }
 0x5fc   : > { %v3620_v10 = vsel %vm3556_vm0, %v3520_v28, %v3588_v48  ;;  %v3621_v44 = vsel %vm3557_vm2, %v3523_v21, %v3589_v25  ;;  %v3761_v5 = vadd.f32 %v3760_v45, %v7184_v0  ;;  %v3618_v55 = vsel %vm3554_vm1, %v3512_v3, %v3586_v2 }
 0x5fd   : > { %v3619_v17 = vsel %vm3555_vm3, %v3515_v8, %v3587_v43  ;;  %v3654_v9 = vpack.c.bf16 %v3621_v44, %v3620_v10  ;;  %vm3872_vm5 = vcmp.gt.f32.partialorder %v3758_v6, 0.0  ;;  %vm3875_vm6 = vcmp.gt.f32.partialorder %v3769_v14, 0.0 }
 0x5fe   : > { %v3907_v30 = vmul.f32 0.01, %v3769_v14  ;;  %v3653_v13 = vpack.c.bf16 %v3619_v17, %v3618_v55  ;;  %vm3873_vm7 = vcmp.gt.f32.partialorder %v3761_v5, 0.0  ;;  %v3905_v34 = vmul.f32 0.01, %v3761_v5 }
 0x5ff   : > { %v3938_v1 = vsel %vm3874_vm4, %v3766_v62, %v3906_v56  ;;  %v3936_v26 = vsel %vm3872_vm5, %v3758_v6, %v3904_v54 }
 0x600   : > { %5030 = vmatprep.mubr.bf16.mxu1 %v3653_v13  ;;  %v3939_v35 = vsel %vm3875_vm6, %v3769_v14, %v3907_v30  ;;  %v3937_v58 = vsel %vm3873_vm7, %v3761_v5, %v3905_v34 }
 0x601   : > { %5031 = vmatmul.mubr.bf16.gmra.mrb[108].mxu1 %v3654_v9  ;;  %v3984_v59 = vpack.c.bf16 %v3939_v35, %v3938_v1  ;;  %v3983_v16 = vpack.c.bf16 %v3937_v58, %v3936_v26 }
 0x603   : > { %5054 = vmatprep.mubr.bf16.mxu0 %v3983_v16 }
 0x604   : > { %5055 = vmatmul.mubr.bf16.gmra.mrb[84].mxu0 %v3984_v59 }
 0x620   : > { %v5012_v38 = vpop.f32.mrb[88].mxu1 }
 0x621   : > { %v3782_v20 = vadd.f32 %v5012_v38, %v7184_v0  ;;  %v3773_v22 = vpop.f32.mrb[89].mxu1 }
 0x622   : > { %v3774_v33 = vadd.f32 %v3773_v22, %v7184_v0  ;;  %v5013_v23 = vpop.f32.mrb[90].mxu1 }
 0x623   : > { %v3910_v12 = vmul.f32 0.01, %v3782_v20  ;;  %v3785_v37 = vadd.f32 %v5013_v23, %v7184_v0  ;;  %v3776_v50 = vpop.f32.mrb[91].mxu1  ;;  %vm3878_vm8 = vcmp.gt.f32.partialorder %v3782_v20, 0.0 }
 0x624   : > { %v3908_v41 = vmul.f32 0.01, %v3774_v33  ;;  %v3777_v32 = vadd.f32 %v3776_v50, %v7184_v0  ;;  %vm3876_vm9 = vcmp.gt.f32.partialorder %v3774_v33, 0.0 }
 0x625   : > { %vm3879_vm10 = vcmp.gt.f32.partialorder %v3785_v37, 0.0  ;;  %v3911_v52 = vmul.f32 0.01, %v3785_v37  ;;  %v3942_v46 = vsel %vm3878_vm8, %v3782_v20, %v3910_v12 }
 0x626   : > { %vm3877_vm11 = vcmp.gt.f32.partialorder %v3777_v32, 0.0  ;;  %v3909_v47 = vmul.f32 0.01, %v3777_v32  ;;  %v3940_v29 = vsel %vm3876_vm9, %v3774_v33, %v3908_v41 }
 0x627   : > { %v3943_v51 = vsel %vm3879_vm10, %v3785_v37, %v3911_v52  ;;  %v7620_v52 = vld [vmem:[#allocation15_spill] sm:$0xff] }
 0x628   : > { %v3941_v42 = vsel %vm3877_vm11, %v3777_v32, %v3909_v47  ;;  %v3986_v63 = vpack.c.bf16 %v3943_v51, %v3942_v46  ;;  %v5315_v32 = vld [vmem:[%s7294_s6] sm:$0x3] }
 0x629   : > { %v3985_v60 = vpack.c.bf16 %v3941_v42, %v3940_v29  ;;  %v7226_v47 = vrot.slane %v5315_v32, %v7620_v52 }
 0x62b   : > { %5058 = vmatprep.mubr.bf16.mxu0 %v3985_v60 }
 0x62c   : > { %5059 = vmatmul.mubr.bf16.gmra.mrb[88].mxu0 %v3986_v63 }
 0x641   : > { %v5016_v4 = vpop.f32.mrb[92].mxu1 }
 0x642   : > { %v3798_v19 = vadd.f32 %v5016_v4, %v7184_v0  ;;  %v3789_v36 = vpop.f32.mrb[93].mxu1 }
 0x643   : > { %v3790_v18 = vadd.f32 %v3789_v36, %v7184_v0  ;;  %v5017_v49 = vpop.f32.mrb[94].mxu1 }
 0x644   : > { %v3914_v11 = vmul.f32 0.01, %v3798_v19  ;;  %v3801_v39 = vadd.f32 %v5017_v49, %v7184_v0  ;;  %v3792_v57 = vpop.f32.mrb[95].mxu1  ;;  %vm3882_vm12 = vcmp.gt.f32.partialorder %v3798_v19, 0.0 }
 0x645   : > { %v3912_v15 = vmul.f32 0.01, %v3790_v18  ;;  %v3793_v27 = vadd.f32 %v3792_v57, %v7184_v0  ;;  %vm3880_vm13 = vcmp.gt.f32.partialorder %v3790_v18, 0.0 }
 0x646   : > { %vm3883_vm14 = vcmp.gt.f32.partialorder %v3801_v39, 0.0  ;;  %v3915_v28 = vmul.f32 0.01, %v3801_v39  ;;  %v3946_v3 = vsel %vm3882_vm12, %v3798_v19, %v3914_v11 }
 0x647   : > { %vm3881_vm15 = vcmp.gt.f32.partialorder %v3793_v27, 0.0  ;;  %v3913_v7 = vmul.f32 0.01, %v3793_v27  ;;  %v3944_v61 = vsel %vm3880_vm13, %v3790_v18, %v3912_v15 }
 0x648   : > { %v3947_v31 = vsel %vm3883_vm14, %v3801_v39, %v3915_v28 }
 0x649   : > { %v3945_v48 = vsel %vm3881_vm15, %v3793_v27, %v3913_v7  ;;  %v3988_v21 = vpack.c.bf16 %v3947_v31, %v3946_v3 }
 0x64a   : > { %v3987_v24 = vpack.c.bf16 %v3945_v48, %v3944_v61 }
 0x64c   : > { %5062 = vmatprep.mubr.bf16.mxu0 %v3987_v24 }
 0x64d   : > { %5063 = vmatmul.mubr.bf16.gmra.mrb[92].mxu0 %v3988_v21 }
 0x66a   : > { %v5020_v62 = vpop.f32.mrb[96].mxu1 }
 0x66b   : > { %v3814_v40 = vadd.f32 %v5020_v62, %v7184_v0  ;;  %v3805_v2 = vpop.f32.mrb[97].mxu1 }
 0x66c   : > { %v3806_v8 = vadd.f32 %v3805_v2, %v7184_v0  ;;  %v5021_v6 = vpop.f32.mrb[98].mxu1 }
 0x66d   : > { %v3918_v53 = vmul.f32 0.01, %v3814_v40  ;;  %v3817_v25 = vadd.f32 %v5021_v6, %v7184_v0  ;;  %v3808_v43 = vpop.f32.mrb[99].mxu1  ;;  %vm3886_vm0 = vcmp.gt.f32.partialorder %v3814_v40, 0.0 }
 0x66e   : > { %v3916_v56 = vmul.f32 0.01, %v3806_v8  ;;  %v3809_v54 = vadd.f32 %v3808_v43, %v7184_v0  ;;  %vm3884_vm1 = vcmp.gt.f32.partialorder %v3806_v8, 0.0 }
 0x66f   : > { %vm3887_vm2 = vcmp.gt.f32.partialorder %v3817_v25, 0.0  ;;  %v3919_v14 = vmul.f32 0.01, %v3817_v25  ;;  %v3950_v10 = vsel %vm3886_vm0, %v3814_v40, %v3918_v53 }
 0x670   : > { %vm3885_vm3 = vcmp.gt.f32.partialorder %v3809_v54, 0.0  ;;  %v3917_v45 = vmul.f32 0.01, %v3809_v54  ;;  %v3948_v5 = vsel %vm3884_vm1, %v3806_v8, %v3916_v56 }
 0x671   : > { %v3951_v44 = vsel %vm3887_vm2, %v3817_v25, %v3919_v14 }
 0x672   : > { %v3949_v55 = vsel %vm3885_vm3, %v3809_v54, %v3917_v45  ;;  %v3990_v17 = vpack.c.bf16 %v3951_v44, %v3950_v10 }
 0x673   : > { %v3989_v9 = vpack.c.bf16 %v3949_v55, %v3948_v5 }
 0x675   : > { %5066 = vmatprep.mubr.bf16.mxu0 %v3989_v9 }
 0x676   : > { %5067 = vmatmul.mubr.bf16.gmra.mrb[96].mxu0 %v3990_v17 }
 0x68b   : > { %v5024_v30 = vpop.f32.mrb[100].mxu1 }
 0x68c   : > { %v3830_v13 = vadd.f32 %v5024_v30, %v7184_v0  ;;  %v3821_v34 = vpop.f32.mrb[101].mxu1 }
 0x68d   : > { %v3822_v1 = vadd.f32 %v3821_v34, %v7184_v0  ;;  %v5025_v35 = vpop.f32.mrb[102].mxu1 }
 0x68e   : > { %v3922_v26 = vmul.f32 0.01, %v3830_v13  ;;  %v3833_v58 = vadd.f32 %v5025_v35, %v7184_v0  ;;  %v3824_v59 = vpop.f32.mrb[103].mxu1  ;;  %vm3890_vm4 = vcmp.gt.f32.partialorder %v3830_v13, 0.0 }
 0x68f   : > { %v3920_v16 = vmul.f32 0.01, %v3822_v1  ;;  %v3825_v38 = vadd.f32 %v3824_v59, %v7184_v0  ;;  %vm3888_vm5 = vcmp.gt.f32.partialorder %v3822_v1, 0.0 }
 0x690   : > { %vm3891_vm6 = vcmp.gt.f32.partialorder %v3833_v58, 0.0  ;;  %v3923_v20 = vmul.f32 0.01, %v3833_v58  ;;  %v3954_v33 = vsel %vm3890_vm4, %v3830_v13, %v3922_v26 }
 0x691   : > { %vm3889_vm7 = vcmp.gt.f32.partialorder %v3825_v38, 0.0  ;;  %v3921_v22 = vmul.f32 0.01, %v3825_v38  ;;  %v3952_v12 = vsel %vm3888_vm5, %v3822_v1, %v3920_v16 }
 0x692   : > { %v3955_v23 = vsel %vm3891_vm6, %v3833_v58, %v3923_v20 }
 0x693   : > { %v3953_v37 = vsel %vm3889_vm7, %v3825_v38, %v3921_v22  ;;  %v3992_v50 = vpack.c.bf16 %v3955_v23, %v3954_v33 }
 0x694   : > { %v3991_v41 = vpack.c.bf16 %v3953_v37, %v3952_v12 }
 0x696   : > { %5070 = vmatprep.mubr.bf16.mxu0 %v3991_v41 }
 0x697   : > { %5071 = vmatmul.mubr.bf16.gmra.mrb[100].mxu0 %v3992_v50 }
 0x6b6   : > { %v5028_v46 = vpop.f32.mrb[104].mxu1 }
 0x6b7   : > { %v3846_v51 = vadd.f32 %v5028_v46, %v7184_v0  ;;  %v3837_v29 = vpop.f32.mrb[105].mxu1  ;;  %v5052_v42 = vpop.f32.mrb[80].mxu0 }
 0x6b8   : > { %v3838_v63 = vadd.f32 %v3837_v29, %v7184_v0  ;;  %v5029_v60 = vpop.f32.mrb[106].mxu1  ;;  %v4083_v4 = vpop.f32.mrb[81].mxu0  ;;  %v4092_v62 = vadd.f32 %v5052_v42, %v7226_v47 }
 0x6b9   : > { %v3926_v19 = vmul.f32 0.01, %v3846_v51  ;;  %v3849_v36 = vadd.f32 %v5029_v60, %v7184_v0  ;;  %v4084_v18 = vadd.f32 %v4083_v4, %v7226_v47  ;;  %v3840_v49 = vpop.f32.mrb[107].mxu1  ;;  %v5053_v11 = vpop.f32.mrb[82].mxu0  ;;  %vm3894_vm8 = vcmp.gt.f32.partialorder %v3846_v51, 0.0 }
 0x6ba   : > { %v3924_v39 = vmul.f32 0.01, %v3838_v63  ;;  %v3841_v57 = vadd.f32 %v3840_v49, %v7184_v0  ;;  %v4086_v15 = vpop.f32.mrb[83].mxu0  ;;  %vm3892_vm9 = vcmp.gt.f32.partialorder %v3838_v63, 0.0  ;;  %v4095_v40 = vadd.f32 %v5053_v11, %v7226_v47  ;;  %v2105_v60 = vpop.trf.xlu0 }
 0x6bb   : > { %vm3895_vm10 = vcmp.gt.f32.partialorder %v3849_v36, 0.0  ;;  %v3927_v27 = vmul.f32 0.01, %v3849_v36  ;;  %4210 = vxpose.xlu0.b32.start [1/16] (narrow) %v4084_v18, 8  ;;  %v4087_v7 = vadd.f32 %v4086_v15, %v7226_v47  ;;  %v3958_v3 = vsel %vm3894_vm8, %v3846_v51, %v3926_v19  ;;  %v2073_v4 = vpop.trf.xlu1 }
 0x6bc   : > { %vm3893_vm11 = vcmp.gt.f32.partialorder %v3841_v57, 0.0  ;;  %v3925_v28 = vmul.f32 0.01, %v3841_v57  ;;  %v3956_v61 = vsel %vm3892_vm9, %v3838_v63, %v3924_v39  ;;  %v2123_v19 = vcombine.low %v2073_v4, %v2105_v60 }
 0x6bd   : > { %v3959_v31 = vsel %vm3895_vm10, %v3849_v36, %v3927_v27 }
 0x6be   : > { %v3957_v48 = vsel %vm3893_vm11, %v3841_v57, %v3925_v28  ;;  %v3994_v21 = vpack.c.bf16 %v3959_v31, %v3958_v3  ;;  %2125 = vst [vmem:[%s370_s11] sm:$0x77] %v2123_v19 }
 0x6bf   : > { %4211 = vxpose.xlu0.b32.cont [2/16] (narrow) %v4087_v7, 8  ;;  %v3993_v24 = vpack.c.bf16 %v3957_v48, %v3956_v61 }
 0x6c1   : > { %5074 = vmatprep.mubr.bf16.mxu0 %v3993_v24 }
 0x6c2   : > { %5075 = vmatmul.mubr.bf16.gmra.mrb[104].mxu0 %v3994_v21 }
 0x6c3   : > { %4212 = vxpose.xlu0.b32.cont [3/16] (narrow) %v4092_v62, 8 }
 0x6c7   : > { %4213 = vxpose.xlu0.b32.cont [4/16] (narrow) %v4095_v40, 8 }
 0x6d4   : > { %v5032_v2 = vpop.f32.mrb[108].mxu1 }
 0x6d5   : > { %v3862_v8 = vadd.f32 %v5032_v2, %v7184_v0  ;;  %v3853_v6 = vpop.f32.mrb[109].mxu1 }
 0x6d6   : > { %v3854_v53 = vadd.f32 %v3853_v6, %v7184_v0  ;;  %v5033_v25 = vpop.f32.mrb[110].mxu1 }
 0x6d7   : > { %v3930_v43 = vmul.f32 0.01, %v3862_v8  ;;  %v3865_v56 = vadd.f32 %v5033_v25, %v7184_v0  ;;  %v3856_v54 = vpop.f32.mrb[111].mxu1  ;;  %vm3898_vm12 = vcmp.gt.f32.partialorder %v3862_v8, 0.0  ;;  %v5056_v10 = vpop.f32.mrb[84].mxu0 }
 0x6d8   : > { %v3928_v14 = vmul.f32 0.01, %v3854_v53  ;;  %v3857_v45 = vadd.f32 %v3856_v54, %v7184_v0  ;;  %vm3896_vm13 = vcmp.gt.f32.partialorder %v3854_v53, 0.0  ;;  %v4099_v5 = vpop.f32.mrb[85].mxu0  ;;  %v4108_v59 = vadd.f32 %v5056_v10, %v7226_v47 }
 0x6d9   : > { %vm3899_vm14 = vcmp.gt.f32.partialorder %v3865_v56, 0.0  ;;  %v3931_v44 = vmul.f32 0.01, %v3865_v56  ;;  %v4100_v17 = vadd.f32 %v4099_v5, %v7226_v47  ;;  %v5057_v9 = vpop.f32.mrb[86].mxu0  ;;  %v3962_v13 = vsel %vm3898_vm12, %v3862_v8, %v3930_v43 }
 0x6da   : > { %vm3897_vm15 = vcmp.gt.f32.partialorder %v3857_v45, 0.0  ;;  %v3929_v55 = vmul.f32 0.01, %v3857_v45  ;;  %v4102_v30 = vpop.f32.mrb[87].mxu0  ;;  %v3960_v1 = vsel %vm3896_vm13, %v3854_v53, %v3928_v14  ;;  %v4111_v16 = vadd.f32 %v5057_v9, %v7226_v47 }
 0x6db   : > { %v3963_v34 = vsel %vm3899_vm14, %v3865_v56, %v3931_v44  ;;  %4214 = vxpose.xlu0.b32.cont [5/16] (narrow) %v4100_v17, 8  ;;  %v4103_v0 = vadd.f32 %v4102_v30, %v7226_v47 }
 0x6dc   : > { %v3961_v35 = vsel %vm3897_vm15, %v3857_v45, %v3929_v55  ;;  %v3996_v26 = vpack.c.bf16 %v3963_v34, %v3962_v13 }
 0x6dd   : > { %v3995_v58 = vpack.c.bf16 %v3961_v35, %v3960_v1 }
 0x6df   : > { %5078 = vmatprep.mubr.bf16.mxu0 %v3995_v58  ;;  %4215 = vxpose.xlu0.b32.cont [6/16] (narrow) %v4103_v0, 8 }
 0x6e0   : > { %5079 = vmatmul.mubr.bf16.gmra.mrb[108].mxu0 %v3996_v26 }
 0x6e3   : > { %4216 = vxpose.xlu0.b32.cont [7/16] (narrow) %v4108_v59, 8 }
 0x6e7   : > { %4217 = vxpose.xlu0.b32.cont [8/16] (narrow) %v4111_v16, 8 }
 0x6ff   : > { %v5060_v38 = vpop.f32.mrb[88].mxu0 }
 0x700   : > { %v4115_v20 = vpop.f32.mrb[89].mxu0  ;;  %v4124_v37 = vadd.f32 %v5060_v38, %v7226_v47 }
 0x701   : > { %v4116_v22 = vadd.f32 %v4115_v20, %v7226_v47  ;;  %v5061_v33 = vpop.f32.mrb[90].mxu0 }
 0x702   : > { %v4118_v23 = vpop.f32.mrb[91].mxu0  ;;  %v4127_v50 = vadd.f32 %v5061_v33, %v7226_v47 }
 0x703   : > { %4218 = vxpose.xlu0.b32.cont [9/16] (narrow) %v4116_v22, 8  ;;  %v4119_v12 = vadd.f32 %v4118_v23, %v7226_v47 }
 0x707   : > { %4219 = vxpose.xlu0.b32.cont [10/16] (narrow) %v4119_v12, 8 }
 0x70b   : > { %4220 = vxpose.xlu0.b32.cont [11/16] (narrow) %v4124_v37, 8 }
 0x70f   : > { %4221 = vxpose.xlu0.b32.cont [12/16] (narrow) %v4127_v50, 8 }
 0x720   : > { %v5064_v41 = vpop.f32.mrb[92].mxu0 }
 0x721   : > { %v4131_v32 = vpop.f32.mrb[93].mxu0  ;;  %v4140_v42 = vadd.f32 %v5064_v41, %v7226_v47 }
 0x722   : > { %v4132_v52 = vadd.f32 %v4131_v32, %v7226_v47  ;;  %v5065_v46 = vpop.f32.mrb[94].mxu0 }
 0x723   : > { %v4134_v51 = vpop.f32.mrb[95].mxu0  ;;  %v4143_v63 = vadd.f32 %v5065_v46, %v7226_v47 }
 0x724   : > { %4222 = vxpose.xlu0.b32.cont [13/16] (narrow) %v4132_v52, 8  ;;  %v4135_v29 = vadd.f32 %v4134_v51, %v7226_v47 }
 0x728   : > { %4223 = vxpose.xlu0.b32.cont [14/16] (narrow) %v4135_v29, 8 }
 0x72c   : > { %4224 = vxpose.xlu0.b32.cont [15/16] (narrow) %v4140_v42, 8 }
 0x730   : > { %4225 = vxpose.xlu0.b32.end [16/16] (narrow) %v4143_v63, 8 }
 0x749   : > { %v5068_v36 = vpop.f32.mrb[96].mxu0 }
 0x74a   : > { %v4147_v18 = vpop.f32.mrb[97].mxu0  ;;  %v4156_v15 = vadd.f32 %v5068_v36, %v7226_v47 }
 0x74b   : > { %v4148_v49 = vadd.f32 %v4147_v18, %v7226_v47  ;;  %v5069_v11 = vpop.f32.mrb[98].mxu0 }
 0x74c   : > { %v4150_v39 = vpop.f32.mrb[99].mxu0  ;;  %v4159_v27 = vadd.f32 %v5069_v11, %v7226_v47 }
 0x74d   : > { %4242 = vxpose.xlu1.b32.start [1/16] (narrow) %v4148_v49, 8  ;;  %v4151_v57 = vadd.f32 %v4150_v39, %v7226_v47 }
 0x751   : > { %4243 = vxpose.xlu1.b32.cont [2/16] (narrow) %v4151_v57, 8 }
 0x755   : > { %4244 = vxpose.xlu1.b32.cont [3/16] (narrow) %v4156_v15, 8 }
 0x759   : > { %4245 = vxpose.xlu1.b32.cont [4/16] (narrow) %v4159_v27, 8 }
 0x76a   : > { %v5072_v28 = vpop.f32.mrb[100].mxu0 }
 0x76b   : > { %v4163_v7 = vpop.f32.mrb[101].mxu0  ;;  %v4172_v21 = vadd.f32 %v5072_v28, %v7226_v47 }
 0x76c   : > { %v4164_v3 = vadd.f32 %v4163_v7, %v7226_v47  ;;  %v5073_v31 = vpop.f32.mrb[102].mxu0 }
 0x76d   : > { %v4166_v61 = vpop.f32.mrb[103].mxu0  ;;  %v4175_v24 = vadd.f32 %v5073_v31, %v7226_v47 }
 0x76e   : > { %4246 = vxpose.xlu1.b32.cont [5/16] (narrow) %v4164_v3, 8  ;;  %v4167_v48 = vadd.f32 %v4166_v61, %v7226_v47 }
 0x772   : > { %4247 = vxpose.xlu1.b32.cont [6/16] (narrow) %v4167_v48, 8 }
 0x774   : > { %v4226_v17 = vpop.trf.xlu0 }
 0x776   : > { %4248 = vxpose.xlu1.b32.cont [7/16] (narrow) %v4172_v21, 8 }
 0x77a   : > { %4249 = vxpose.xlu1.b32.cont [8/16] (narrow) %v4175_v24, 8 }
 0x795   : > { %v5076_v62 = vpop.f32.mrb[104].mxu0 }
 0x796   : > { %v4179_v40 = vpop.f32.mrb[105].mxu0  ;;  %v4188_v25 = vadd.f32 %v5076_v62, %v7226_v47 }
 0x797   : > { %v4180_v2 = vadd.f32 %v4179_v40, %v7226_v47  ;;  %v5077_v8 = vpop.f32.mrb[106].mxu0 }
 0x798   : > { %v4182_v6 = vpop.f32.mrb[107].mxu0  ;;  %v4191_v43 = vadd.f32 %v5077_v8, %v7226_v47 }
 0x799   : > { %4250 = vxpose.xlu1.b32.cont [9/16] (narrow) %v4180_v2, 8  ;;  %v4183_v53 = vadd.f32 %v4182_v6, %v7226_v47 }
 0x79d   : > { %4251 = vxpose.xlu1.b32.cont [10/16] (narrow) %v4183_v53, 8 }
 0x7a1   : > { %4252 = vxpose.xlu1.b32.cont [11/16] (narrow) %v4188_v25, 8 }
 0x7a5   : > { %4253 = vxpose.xlu1.b32.cont [12/16] (narrow) %v4191_v43, 8 }
 0x7b3   : > { %v5080_v56 = vpop.f32.mrb[108].mxu0 }
 0x7b4   : > { %v4195_v54 = vpop.f32.mrb[109].mxu0  ;;  %v4204_v5 = vadd.f32 %v5080_v56, %v7226_v47 }
 0x7b5   : > { %v4196_v14 = vadd.f32 %v4195_v54, %v7226_v47  ;;  %v5081_v45 = vpop.f32.mrb[110].mxu0 }
 0x7b6   : > { %v4198_v10 = vpop.f32.mrb[111].mxu0  ;;  %v4207_v55 = vadd.f32 %v5081_v45, %v7226_v47 }
 0x7b7   : > { %4254 = vxpose.xlu1.b32.cont [13/16] (narrow) %v4196_v14, 8  ;;  %v4199_v44 = vadd.f32 %v4198_v10, %v7226_v47 }
 0x7bb   : > { %4255 = vxpose.xlu1.b32.cont [14/16] (narrow) %v4199_v44, 8 }
 0x7bf   : > { %4256 = vxpose.xlu1.b32.cont [15/16] (narrow) %v4204_v5, 8 }
 0x7c3   : > { %4257 = vxpose.xlu1.b32.end [16/16] (narrow) %v4207_v55, 8 }
 0x807   : > { %v4258_v9 = vpop.trf.xlu1 }
 0x808   : > { %v4276_v30 = vcombine.low %v4226_v17, %v4258_v9 }
 0x80a   : > { %4278 = vst [vmem:[%s360_s14] sm:$0x77] %v4276_v30 }
 0x80b PF: > { %s19_s29 = sadd.s32 1, %s5338_s29   ;;  %s7621_s27 = smov %s5334_s28 }
 0x80c   : > { %p16_p5 = scmp.ge.s32.totalorder %s19_s29, 4   ;;  %s7622_s28 = smov %s7624_s30 }
 0x80e   :  { %18 = sbr.rel (!%p16_p5) target bundleno = 2 (0x2), region = 100 }

</bundles_post_ra>
